<compile_context>
chip_gen: v5e
topology: v5e:2x2
jax: 0.10.0
libtpu: 0.0.40
codegen_flags: <defaults>
</compile_context>

<pallas_src>
import functools

import jax
import jax.numpy as jnp
import numpy as np
from jax.experimental import pallas as pl
from jax.experimental.pallas import tpu as pltpu


# ----------------------------- kernel body -----------------------------

def _conv_relu_block(x, w_cat, b, L):
    """Conv1d(Cin, Cout, kernel_size=3, padding=1) + ReLU on stacked length-L segments.

    x:     (M, Cin) f32, M = Bb * L (Bb batch elements stacked, L rows each)
    w_cat: (3*Cin, Cout) bf16, tap-major rows: [0:Cin]=x[r-1], [Cin:2Cin]=x[r], [2Cin:]=x[r+1]
    b:     (1, Cout) f32
    """
    M, cin = x.shape
    # Narrow (M, 1) row-position mask; `& (L-1)` when L is a power of two (trace-time).
    pos = jax.lax.broadcasted_iota(jnp.int32, (M, 1), 0)
    pos = (pos & (L - 1)) if (L & (L - 1)) == 0 else (pos % L)
    x_prev = jnp.where(pos == 0, 0.0, pltpu.roll(x, shift=1, axis=0))          # x[r-1]
    x_next = jnp.where(pos == L - 1, 0.0, pltpu.roll(x, shift=M - 1, axis=0))  # x[r+1]
    # NOTE: an alternative is three accumulating K=Cin dots (no lane concat); both are
    # noise-level at these sizes, keep the single K=3*Cin MXU push.
    taps = jnp.concatenate([x_prev, x, x_next], axis=1).astype(jnp.bfloat16)   # (M, 3*Cin)
    y = jnp.dot(taps, w_cat, preferred_element_type=jnp.float32) + b
    return jnp.maximum(y, 0.0)


def _maxpool2(x):
    # MaxPool1d(kernel_size=2, stride=2) on stacked rows (M, C) -> (M//2, C).
    # Valid across the whole stack because each length-L segment has even length.
    M, C = x.shape
    return jnp.max(x.reshape(M // 2, 2, C), axis=1)


def cnn_kernel(x_ref, w1_ref, b1_ref, w2_ref, b2_ref, w3_ref, b3_ref,
               wf_ref, bf_ref, o_ref, *, seq_len):
    L = seq_len
    x = x_ref[...]                       # (M, Cin) f32, pre-flattened in the wrapper
    M = x.shape[0]
    Bb = M // L

    h = _maxpool2(_conv_relu_block(x, w1_ref[...], b1_ref[...], L))        # (M/2, 16)
    h = _maxpool2(_conv_relu_block(h, w2_ref[...], b2_ref[...], L // 2))   # (M/4, 32)
    h = _maxpool2(_conv_relu_block(h, w3_ref[...], b3_ref[...], L // 4))   # (M/8, 64)

    # Natural (position, channel) flatten; the FC weight rows were permuted once in the
    # wrapper to match torch's channel-major x.view(B, -1), so no in-kernel transpose.
    flat = h.reshape(Bb, (L // 8) * h.shape[-1]).astype(jnp.bfloat16)
    out = jnp.dot(flat, wf_ref[...], preferred_element_type=jnp.float32) + bf_ref[...]
    o_ref[...] = out                     # (Bb, OUT_PAD) dense 2-D store


# ----------------------------- wrapper -----------------------------

def _num_tensorcores():
    """Best-effort TensorCores-per-device count (decides whether to split the grid)."""
    try:
        info = pltpu.get_tpu_info()
        for name in ("num_cores", "core_count", "num_tensorcores",
                     "tensor_core_count", "cores_per_chip"):
            v = getattr(info, name, None)
            if isinstance(v, int) and v > 0:
                return v
    except Exception:
        pass
    try:
        kind = jax.devices()[0].device_kind.lower()
        if any(tag in kind for tag in ("v3", "v4", "v5p", "7")):
            return 2
    except Exception:
        pass
    return 1


def _pick_block_batch(B, n_tc):
    # The kernel is per-step-overhead bound: prefer one fat grid step unless a second
    # TensorCore can run a second step in parallel. Splitting also requires the
    # half-batch to stay 8-sublane aligned for the (bb, out_pad) output block.
    if n_tc >= 2 and B % 16 == 0:
        return B // 2
    return B


def cnn_forward(x, params, block_batch=None):
    """x: (B, seq_len, input_channels) float32. Returns (B, output_size)."""
    B, L, Cin = x.shape
    assert L % 8 == 0, "seq_len must be divisible by 8 (three maxpools of 2)"
    w1, b1, w2, b2, w3, b3, wf, bf = params          # torch layouts
    out_size, fc_in = wf.shape
    Lp = L // 8
    C3 = w3.shape[0]
    assert fc_in == C3 * Lp, "fc weight size inconsistent with seq_len / channels"

    # Conv weights (Cout, Cin, 3) -> tap-major (3*Cin, Cout), bf16 for the MXU.
    def conv_w(w):
        co, ci, k = w.shape
        return jnp.transpose(w, (2, 1, 0)).reshape(k * ci, co).astype(jnp.bfloat16)

    w1k, w2k, w3k = conv_w(w1), conv_w(w2), conv_w(w3)
    b1k = b1.reshape(1, -1).astype(jnp.float32)
    b2k = b2.reshape(1, -1).astype(jnp.float32)
    b3k = b3.reshape(1, -1).astype(jnp.float32)

    # FC: torch flattens (B, C, L') channel-major (idx = c*L' + l); the kernel's natural
    # flatten is position-major (idx = l*C + c) -> permute the weight rows once here.
    out_pad = ((out_size + 127) // 128) * 128        # lane-dense output slab
    wfk = jnp.transpose(wf).reshape(C3, Lp, out_size)
    wfk = jnp.transpose(wfk, (1, 0, 2)).reshape(fc_in, out_size)
    wfk = jnp.pad(wfk, ((0, 0), (0, out_pad - out_size))).astype(jnp.bfloat16)
    bfk = jnp.pad(bf.reshape(1, -1), ((0, 0), (0, out_pad - out_size))).astype(jnp.float32)

    bb = _pick_block_batch(B, _num_tensorcores()) if block_batch is None else block_batch
    assert B % bb == 0

    # Free, contiguous flatten in HBM; avoids an in-kernel reshape (VMEM relayout risk).
    x_flat = x.reshape(B * L, Cin).astype(jnp.float32)

    def const_spec(a):
        nd = a.ndim
        return pl.BlockSpec(a.shape, lambda i, nd=nd: (0,) * nd)

    out = pl.pallas_call(
        functools.partial(cnn_kernel, seq_len=L),
        out_shape=jax.ShapeDtypeStruct((B, out_pad), jnp.float32),
        grid=(B // bb,),
        in_specs=[
            pl.BlockSpec((bb * L, Cin), lambda i: (i, 0)),
            const_spec(w1k), const_spec(b1k),
            const_spec(w2k), const_spec(b2k),
            const_spec(w3k), const_spec(b3k),
            const_spec(wfk), const_spec(bfk),
        ],
        out_specs=pl.BlockSpec((bb, out_pad), lambda i: (i, 0)),
        compiler_params=pltpu.CompilerParams(dimension_semantics=("parallel",)),
    )(x_flat, w1k, b1k, w2k, b2k, w3k, b3k, wfk, bfk)

    return out[:, :out_size]


# ----------------------------- pure-JAX reference -----------------------------

def cnn_reference(x, params):
    w1, b1, w2, b2, w3, b3, wf, bf = params
    h = jnp.transpose(x, (0, 2, 1))  # (B, Cin, L) — torch permute(0, 2, 1)

    def conv_relu(h, w, b):
        y = jax.lax.conv_general_dilated(
            h, w, window_strides=(1,), padding=((1, 1),),
            dimension_numbers=('NCH', 'OIH', 'NCH'))
        return jax.nn.relu(y + b[None, :, None])

    def pool(h):
        B, C, L = h.shape
        return jnp.max(h.reshape(B, C, L // 2, 2), axis=-1)

    h = pool(conv_relu(h, w1, b1))
    h = pool(conv_relu(h, w2, b2))
    h = pool(conv_relu(h, w3, b3))
    flat = h.reshape(h.shape[0], -1)
    return flat @ wf.T + bf


# ----------------------------- main -----------------------------

if __name__ == "__main__":
    # Shapes consistent with the torch module:
    #   seq_len=8 -> flattened size 64*(8//8)=64 and fc_input = 16*(input_channels//8)
    #   => input_channels = 32.  batch_size = 2**5 per the spec.
    B, SEQ, CIN, OUT = 32, 8, 32, 10

    key = jax.random.PRNGKey(0)
    ks = jax.random.split(key, 9)
    scale = 0.1
    w1 = scale * jax.random.normal(ks[0], (16, CIN, 3), jnp.float32)
    b1 = scale * jax.random.normal(ks[1], (16,), jnp.float32)
    w2 = scale * jax.random.normal(ks[2], (32, 16, 3), jnp.float32)
    b2 = scale * jax.random.normal(ks[3], (32,), jnp.float32)
    w3 = scale * jax.random.normal(ks[4], (64, 32, 3), jnp.float32)
    b3 = scale * jax.random.normal(ks[5], (64,), jnp.float32)
    fc_in = 16 * (CIN // 8)  # 64
    wf = scale * jax.random.normal(ks[6], (OUT, fc_in), jnp.float32)
    bf = scale * jax.random.normal(ks[7], (OUT,), jnp.float32)
    params = (w1, b1, w2, b2, w3, b3, wf, bf)

    x = jax.random.normal(ks[8], (B, SEQ, CIN), jnp.float32)

    y = cnn_forward(x, params)
    jax.block_until_ready(y)

    # Reference is full f32; kernel uses bf16 MXU inputs with f32 accumulation,
    # so compare at bf16-appropriate tolerance.
    y_ref = cnn_reference(x, params)
    np.testing.assert_allclose(np.asarray(y), np.asarray(y_ref), rtol=2e-2, atol=2e-2)

    print("KERNEL_OK")
</pallas_src>

<mosaic_0001>
module attributes {stable_mosaic.version = 11 : i64} {
  func.func @cnn_kernel(%arg0: i32, %arg1: memref<256x32xf32, #tpu.memory_space<vmem>>, %arg2: memref<96x16xbf16, #tpu.memory_space<vmem>>, %arg3: memref<1x16xf32, #tpu.memory_space<vmem>>, %arg4: memref<48x32xbf16, #tpu.memory_space<vmem>>, %arg5: memref<1x32xf32, #tpu.memory_space<vmem>>, %arg6: memref<96x64xbf16, #tpu.memory_space<vmem>>, %arg7: memref<1x64xf32, #tpu.memory_space<vmem>>, %arg8: memref<64x128xbf16, #tpu.memory_space<vmem>>, %arg9: memref<1x128xf32, #tpu.memory_space<vmem>>, %arg10: memref<32x128xf32, #tpu.memory_space<vmem>>) attributes {dimension_semantics = [#tpu.dimension_semantics<parallel>], iteration_bounds = array<i64: 1>, scalar_prefetch = 0 : i64, scratch_operands = 0 : i64, tpu.core_type = #tpu.core_type<tc>, window_params = [{transform_indices = @transform_0, window_bounds = array<i64: 256, 32>}, {pipeline_mode = #tpu.pipeline_mode<synchronous>, transform_indices = @transform_1, window_bounds = array<i64: 96, 16>}, {pipeline_mode = #tpu.pipeline_mode<synchronous>, transform_indices = @transform_2, window_bounds = array<i64: 1, 16>}, {pipeline_mode = #tpu.pipeline_mode<synchronous>, transform_indices = @transform_3, window_bounds = array<i64: 48, 32>}, {pipeline_mode = #tpu.pipeline_mode<synchronous>, transform_indices = @transform_4, window_bounds = array<i64: 1, 32>}, {pipeline_mode = #tpu.pipeline_mode<synchronous>, transform_indices = @transform_5, window_bounds = array<i64: 96, 64>}, {pipeline_mode = #tpu.pipeline_mode<synchronous>, transform_indices = @transform_6, window_bounds = array<i64: 1, 64>}, {pipeline_mode = #tpu.pipeline_mode<synchronous>, transform_indices = @transform_7, window_bounds = array<i64: 64, 128>}, {pipeline_mode = #tpu.pipeline_mode<synchronous>, transform_indices = @transform_8, window_bounds = array<i64: 1, 128>}, {transform_indices = @transform_9, window_bounds = array<i64: 32, 128>}]} {
    %c0 = arith.constant 0 : index
    %c0_0 = arith.constant 0 : index
    %0 = vector.load %arg1[%c0, %c0_0] : memref<256x32xf32, #tpu.memory_space<vmem>>, vector<256x32xf32>
    %c0_1 = arith.constant 0 : index
    %c0_2 = arith.constant 0 : index
    %1 = vector.load %arg2[%c0_1, %c0_2] : memref<96x16xbf16, #tpu.memory_space<vmem>>, vector<96x16xbf16>
    %c0_3 = arith.constant 0 : index
    %c0_4 = arith.constant 0 : index
    %2 = vector.load %arg3[%c0_3, %c0_4] : memref<1x16xf32, #tpu.memory_space<vmem>>, vector<1x16xf32>
    %3 = tpu.iota {dimensions = array<i32: 0>} : vector<256x1xi32>
    %c7_i32 = arith.constant 7 : i32
    %4 = vector.broadcast %c7_i32 : i32 to vector<256x1xi32>
    %5 = arith.andi %3, %4 : vector<256x1xi32>
    %c0_i32 = arith.constant 0 : i32
    %6 = vector.broadcast %c0_i32 : i32 to vector<256x1xi32>
    %7 = arith.cmpi eq, %5, %6 : vector<256x1xi32>
    %c1_i32 = arith.constant 1 : i32
    %8 = tpu.dynamic_rotate %0 by %c1_i32 dim 0 : vector<256x32xf32>, i32 -> vector<256x32xf32>
    %cst = arith.constant 0.000000e+00 : f32
    %9 = vector.shape_cast %7 : vector<256x1xi1> to vector<256x1xi1>
    %10 = vector.broadcast %9 : vector<256x1xi1> to vector<256x32xi1>
    %11 = vector.broadcast %cst : f32 to vector<256x32xf32>
    %12 = arith.select %10, %11, %8 : vector<256x32xi1>, vector<256x32xf32>
    %c7_i32_5 = arith.constant 7 : i32
    %13 = vector.broadcast %c7_i32_5 : i32 to vector<256x1xi32>
    %14 = arith.cmpi eq, %5, %13 : vector<256x1xi32>
    %c255_i32 = arith.constant 255 : i32
    %15 = tpu.dynamic_rotate %0 by %c255_i32 dim 0 : vector<256x32xf32>, i32 -> vector<256x32xf32>
    %cst_6 = arith.constant 0.000000e+00 : f32
    %16 = vector.shape_cast %14 : vector<256x1xi1> to vector<256x1xi1>
    %17 = vector.broadcast %16 : vector<256x1xi1> to vector<256x32xi1>
    %18 = vector.broadcast %cst_6 : f32 to vector<256x32xf32>
    %19 = arith.select %17, %18, %15 : vector<256x32xi1>, vector<256x32xf32>
    %20 = tpu.concatenate %12, %0, %19 in 1 : vector<256x32xf32>, vector<256x32xf32>, vector<256x32xf32> -> vector<256x96xf32>
    %21 = arith.truncf %20 : vector<256x96xf32> to vector<256x96xbf16>
    %cst_7 = arith.constant dense<0.000000e+00> : vector<256x16xf32>
    %22 = tpu.matmul %21, %1, %cst_7 {dimension_numbers = #tpu.dot_dimension_numbers<[1], [0], [0], [1], [0, 0, 1, 1], [], []>} : vector<256x96xbf16>, vector<96x16xbf16>, vector<256x16xf32> -> vector<256x16xf32>
    %23 = vector.broadcast %2 : vector<1x16xf32> to vector<256x16xf32>
    %24 = arith.addf %22, %23 : vector<256x16xf32>
    %cst_8 = arith.constant 0.000000e+00 : f32
    %25 = vector.broadcast %cst_8 : f32 to vector<256x16xf32>
    %26 = arith.maximumf %24, %25 : vector<256x16xf32>
    %27 = vector.shape_cast %26 : vector<256x16xf32> to vector<128x2x16xf32>
    %cst_9 = arith.constant dense<0xFF800000> : vector<128x16xf32>
    %28 = vector.multi_reduction <maximumf>, %27, %cst_9 [1] : vector<128x2x16xf32> to vector<128x16xf32>
    %c0_10 = arith.constant 0 : index
    %c0_11 = arith.constant 0 : index
    %29 = vector.load %arg4[%c0_10, %c0_11] : memref<48x32xbf16, #tpu.memory_space<vmem>>, vector<48x32xbf16>
    %c0_12 = arith.constant 0 : index
    %c0_13 = arith.constant 0 : index
    %30 = vector.load %arg5[%c0_12, %c0_13] : memref<1x32xf32, #tpu.memory_space<vmem>>, vector<1x32xf32>
    %31 = tpu.iota {dimensions = array<i32: 0>} : vector<128x1xi32>
    %c3_i32 = arith.constant 3 : i32
    %32 = vector.broadcast %c3_i32 : i32 to vector<128x1xi32>
    %33 = arith.andi %31, %32 : vector<128x1xi32>
    %c0_i32_14 = arith.constant 0 : i32
    %34 = vector.broadcast %c0_i32_14 : i32 to vector<128x1xi32>
    %35 = arith.cmpi eq, %33, %34 : vector<128x1xi32>
    %c1_i32_15 = arith.constant 1 : i32
    %36 = tpu.dynamic_rotate %28 by %c1_i32_15 dim 0 : vector<128x16xf32>, i32 -> vector<128x16xf32>
    %cst_16 = arith.constant 0.000000e+00 : f32
    %37 = vector.shape_cast %35 : vector<128x1xi1> to vector<128x1xi1>
    %38 = vector.broadcast %37 : vector<128x1xi1> to vector<128x16xi1>
    %39 = vector.broadcast %cst_16 : f32 to vector<128x16xf32>
    %40 = arith.select %38, %39, %36 : vector<128x16xi1>, vector<128x16xf32>
    %c3_i32_17 = arith.constant 3 : i32
    %41 = vector.broadcast %c3_i32_17 : i32 to vector<128x1xi32>
    %42 = arith.cmpi eq, %33, %41 : vector<128x1xi32>
    %c127_i32 = arith.constant 127 : i32
    %43 = tpu.dynamic_rotate %28 by %c127_i32 dim 0 : vector<128x16xf32>, i32 -> vector<128x16xf32>
    %cst_18 = arith.constant 0.000000e+00 : f32
    %44 = vector.shape_cast %42 : vector<128x1xi1> to vector<128x1xi1>
    %45 = vector.broadcast %44 : vector<128x1xi1> to vector<128x16xi1>
    %46 = vector.broadcast %cst_18 : f32 to vector<128x16xf32>
    %47 = arith.select %45, %46, %43 : vector<128x16xi1>, vector<128x16xf32>
    %48 = tpu.concatenate %40, %28, %47 in 1 : vector<128x16xf32>, vector<128x16xf32>, vector<128x16xf32> -> vector<128x48xf32>
    %49 = arith.truncf %48 : vector<128x48xf32> to vector<128x48xbf16>
    %cst_19 = arith.constant dense<0.000000e+00> : vector<128x32xf32>
    %50 = tpu.matmul %49, %29, %cst_19 {dimension_numbers = #tpu.dot_dimension_numbers<[1], [0], [0], [1], [0, 0, 1, 1], [], []>} : vector<128x48xbf16>, vector<48x32xbf16>, vector<128x32xf32> -> vector<128x32xf32>
    %51 = vector.broadcast %30 : vector<1x32xf32> to vector<128x32xf32>
    %52 = arith.addf %50, %51 : vector<128x32xf32>
    %cst_20 = arith.constant 0.000000e+00 : f32
    %53 = vector.broadcast %cst_20 : f32 to vector<128x32xf32>
    %54 = arith.maximumf %52, %53 : vector<128x32xf32>
    %55 = vector.shape_cast %54 : vector<128x32xf32> to vector<64x2x32xf32>
    %cst_21 = arith.constant dense<0xFF800000> : vector<64x32xf32>
    %56 = vector.multi_reduction <maximumf>, %55, %cst_21 [1] : vector<64x2x32xf32> to vector<64x32xf32>
    %c0_22 = arith.constant 0 : index
    %c0_23 = arith.constant 0 : index
    %57 = vector.load %arg6[%c0_22, %c0_23] : memref<96x64xbf16, #tpu.memory_space<vmem>>, vector<96x64xbf16>
    %c0_24 = arith.constant 0 : index
    %c0_25 = arith.constant 0 : index
    %58 = vector.load %arg7[%c0_24, %c0_25] : memref<1x64xf32, #tpu.memory_space<vmem>>, vector<1x64xf32>
    %59 = tpu.iota {dimensions = array<i32: 0>} : vector<64x1xi32>
    %c1_i32_26 = arith.constant 1 : i32
    %60 = vector.broadcast %c1_i32_26 : i32 to vector<64x1xi32>
    %61 = arith.andi %59, %60 : vector<64x1xi32>
    %c0_i32_27 = arith.constant 0 : i32
    %62 = vector.broadcast %c0_i32_27 : i32 to vector<64x1xi32>
    %63 = arith.cmpi eq, %61, %62 : vector<64x1xi32>
    %c1_i32_28 = arith.constant 1 : i32
    %64 = tpu.dynamic_rotate %56 by %c1_i32_28 dim 0 : vector<64x32xf32>, i32 -> vector<64x32xf32>
    %cst_29 = arith.constant 0.000000e+00 : f32
    %65 = vector.shape_cast %63 : vector<64x1xi1> to vector<64x1xi1>
    %66 = vector.broadcast %65 : vector<64x1xi1> to vector<64x32xi1>
    %67 = vector.broadcast %cst_29 : f32 to vector<64x32xf32>
    %68 = arith.select %66, %67, %64 : vector<64x32xi1>, vector<64x32xf32>
    %c1_i32_30 = arith.constant 1 : i32
    %69 = vector.broadcast %c1_i32_30 : i32 to vector<64x1xi32>
    %70 = arith.cmpi eq, %61, %69 : vector<64x1xi32>
    %c63_i32 = arith.constant 63 : i32
    %71 = tpu.dynamic_rotate %56 by %c63_i32 dim 0 : vector<64x32xf32>, i32 -> vector<64x32xf32>
    %cst_31 = arith.constant 0.000000e+00 : f32
    %72 = vector.shape_cast %70 : vector<64x1xi1> to vector<64x1xi1>
    %73 = vector.broadcast %72 : vector<64x1xi1> to vector<64x32xi1>
    %74 = vector.broadcast %cst_31 : f32 to vector<64x32xf32>
    %75 = arith.select %73, %74, %71 : vector<64x32xi1>, vector<64x32xf32>
    %76 = tpu.concatenate %68, %56, %75 in 1 : vector<64x32xf32>, vector<64x32xf32>, vector<64x32xf32> -> vector<64x96xf32>
    %77 = arith.truncf %76 : vector<64x96xf32> to vector<64x96xbf16>
    %cst_32 = arith.constant dense<0.000000e+00> : vector<64x64xf32>
    %78 = tpu.matmul %77, %57, %cst_32 {dimension_numbers = #tpu.dot_dimension_numbers<[1], [0], [0], [1], [0, 0, 1, 1], [], []>} : vector<64x96xbf16>, vector<96x64xbf16>, vector<64x64xf32> -> vector<64x64xf32>
    %79 = vector.broadcast %58 : vector<1x64xf32> to vector<64x64xf32>
    %80 = arith.addf %78, %79 : vector<64x64xf32>
    %cst_33 = arith.constant 0.000000e+00 : f32
    %81 = vector.broadcast %cst_33 : f32 to vector<64x64xf32>
    %82 = arith.maximumf %80, %81 : vector<64x64xf32>
    %83 = vector.shape_cast %82 : vector<64x64xf32> to vector<32x2x64xf32>
    %cst_34 = arith.constant dense<0xFF800000> : vector<32x64xf32>
    %84 = vector.multi_reduction <maximumf>, %83, %cst_34 [1] : vector<32x2x64xf32> to vector<32x64xf32>
    %85 = arith.truncf %84 : vector<32x64xf32> to vector<32x64xbf16>
    %c0_35 = arith.constant 0 : index
    %c0_36 = arith.constant 0 : index
    %86 = vector.load %arg8[%c0_35, %c0_36] : memref<64x128xbf16, #tpu.memory_space<vmem>>, vector<64x128xbf16>
    %cst_37 = arith.constant dense<0.000000e+00> : vector<32x128xf32>
    %87 = tpu.matmul %85, %86, %cst_37 {dimension_numbers = #tpu.dot_dimension_numbers<[1], [0], [0], [1], [0, 0, 1, 1], [], []>} : vector<32x64xbf16>, vector<64x128xbf16>, vector<32x128xf32> -> vector<32x128xf32>
    %c0_38 = arith.constant 0 : index
    %c0_39 = arith.constant 0 : index
    %88 = vector.load %arg9[%c0_38, %c0_39] : memref<1x128xf32, #tpu.memory_space<vmem>>, vector<1x128xf32>
    %89 = vector.broadcast %88 : vector<1x128xf32> to vector<32x128xf32>
    %90 = arith.addf %87, %89 : vector<32x128xf32>
    %c0_40 = arith.constant 0 : index
    %c0_41 = arith.constant 0 : index
    %91 = vector.load %arg10[%c0_40, %c0_41] : memref<32x128xf32, #tpu.memory_space<vmem>>, vector<32x128xf32>
    tpu.vector_store %arg10[%c0_40, %c0_41], %90 {strides = array<i32>} : memref<32x128xf32, #tpu.memory_space<vmem>>, vector<32x128xf32>,
    return
  }
  func.func @transform_0(%arg0: i32) -> (i32, i32) {
    %c0_i32 = arith.constant 0 : i32
    %c0_i32_0 = arith.constant 0 : i32
    return %arg0, %c0_i32 : i32, i32
  }
  func.func @transform_1(%arg0: i32) -> (i32, i32) {
    %c0_i32 = arith.constant 0 : i32
    %c0_i32_0 = arith.constant 0 : i32
    %c0_i32_1 = arith.constant 0 : i32
    return %c0_i32, %c0_i32_0 : i32, i32
  }
  func.func @transform_2(%arg0: i32) -> (i32, i32) {
    %c0_i32 = arith.constant 0 : i32
    %c0_i32_0 = arith.constant 0 : i32
    %c0_i32_1 = arith.constant 0 : i32
    return %c0_i32, %c0_i32_0 : i32, i32
  }
  func.func @transform_3(%arg0: i32) -> (i32, i32) {
    %c0_i32 = arith.constant 0 : i32
    %c0_i32_0 = arith.constant 0 : i32
    %c0_i32_1 = arith.constant 0 : i32
    return %c0_i32, %c0_i32_0 : i32, i32
  }
  func.func @transform_4(%arg0: i32) -> (i32, i32) {
    %c0_i32 = arith.constant 0 : i32
    %c0_i32_0 = arith.constant 0 : i32
    %c0_i32_1 = arith.constant 0 : i32
    return %c0_i32, %c0_i32_0 : i32, i32
  }
  func.func @transform_5(%arg0: i32) -> (i32, i32) {
    %c0_i32 = arith.constant 0 : i32
    %c0_i32_0 = arith.constant 0 : i32
    %c0_i32_1 = arith.constant 0 : i32
    return %c0_i32, %c0_i32_0 : i32, i32
  }
  func.func @transform_6(%arg0: i32) -> (i32, i32) {
    %c0_i32 = arith.constant 0 : i32
    %c0_i32_0 = arith.constant 0 : i32
    %c0_i32_1 = arith.constant 0 : i32
    return %c0_i32, %c0_i32_0 : i32, i32
  }
  func.func @transform_7(%arg0: i32) -> (i32, i32) {
    %c0_i32 = arith.constant 0 : i32
    %c0_i32_0 = arith.constant 0 : i32
    %c0_i32_1 = arith.constant 0 : i32
    return %c0_i32, %c0_i32_0 : i32, i32
  }
  func.func @transform_8(%arg0: i32) -> (i32, i32) {
    %c0_i32 = arith.constant 0 : i32
    %c0_i32_0 = arith.constant 0 : i32
    %c0_i32_1 = arith.constant 0 : i32
    return %c0_i32, %c0_i32_0 : i32, i32
  }
  func.func @transform_9(%arg0: i32) -> (i32, i32) {
    %c0_i32 = arith.constant 0 : i32
    %c0_i32_0 = arith.constant 0 : i32
    return %arg0, %c0_i32 : i32, i32
  }
}

</mosaic_0001>

<bundles_post_ra>
// kernel: tpu_custom_call.1
= control target key start
LH: loop header
LB: loop body
LE: loop exit
PB: predicated region body
PF: predicated region fallthrough
CT: control target
= control target key end

     0   :  { %v79_v3 = vlaneseq  ;;  %s4856_s17 = smov 32   ;;  %s7960_s0 = inlined_call_operand.vmem [shape: f32[256,32], index: 0, kind: input, shape index: {}]   ;;  %s7961_s1 = inlined_call_operand.vmem [shape: bf16[96,16], index: 1, kind: input, shape index: {}]   ;;  %s7962_s2 = inlined_call_operand.vmem [shape: f32[1,16], index: 2, kind: input, shape index: {}]   ;;  %s7963_s3 = inlined_call_operand.vmem [shape: bf16[48,32], index: 3, kind: input, shape index: {}]   ;;  %s7964_s4 = inlined_call_operand.vmem [shape: f32[1,32], index: 4, kind: input, shape index: {}]   ;;  %s7965_s5 = inlined_call_operand.vmem [shape: bf16[96,64], index: 5, kind: input, shape index: {}]   ;;  %s7966_s6 = inlined_call_operand.vmem [shape: f32[1,64], index: 6, kind: input, shape index: {}]   ;;  %s7967_s7 = inlined_call_operand.vmem [shape: bf16[64,128], index: 7, kind: input, shape index: {}]   ;;  %s7968_s8 = inlined_call_operand.vmem [shape: f32[1,128], index: 8, kind: input, shape index: {}]   ;;  %s7969_s9 = inlined_call_operand.hbm [shape: f32[32,128], index: 9, kind: output, shape index: {}]  }
   0x1   :  { %v4915_v0 = vld [vmem:[%s7960_s0 + $0x10] sm:$0xff]  ;;  %v4920_v1 = vld [vmem:[%s7960_s0 + $0x18] sm:$0xff]  ;;  %v4925_v2 = vld [vmem:[%s7960_s0] sm:$0xff] }
   0x2   :  { %v4553_v4 = vpack.i.bf16 %v4920_v1, %v4915_v0  ;;  %v4932_v5 = vld [vmem:[%s7960_s0 + $0x8] sm:$0xff]  ;;  %v371_v7 = vrot.slane %v4915_v0, 1  ;;  %v7991_v9 = vrot.slane %v4925_v2, 1  ;;  %v4944_v10 = vld [vmem:[%s7960_s0 + $0xa0] sm:$0xff]  ;;  %v4951_v12 = vshrl.u32 %v79_v3, 7  ;;  %v4956_v13 = vld [vmem:[%s7960_s0 + $0xb0] sm:$0xff] }
   0x3   :  { %v4543_v6 = vpack.i.bf16 %v4932_v5, %v4925_v2  ;;  %v370_v8 = vrot.slane %v4932_v5, 1  ;;  %v4949_v11 = vld [vmem:[%s7960_s0 + $0xa8] sm:$0xff]  ;;  %v4961_v14 = vld [vmem:[%s7960_s0 + $0xb8] sm:$0xff]  ;;  %v372_v15 = vrot.slane %v4920_v1, 1  ;;  %v4972_v18 = vld [vmem:[%s7960_s0 + $0x20] sm:$0xff]  ;;  %v391_v26 = vrot.slane %v4956_v13, 1 }
   0x4   :  { %4554 = vrot.lane.b32.xlu1 %v4553_v4, %s4856_s17  ;;  %v4965_v16 = vadd.s32 8, %v4951_v12  ;;  %v7981_v17 = vand.u32 7, %v4951_v12  ;;  %vm8066_vm0 = vcmp.lt.s32.totalorder %v4951_v12, 7  ;;  %v4558_v19 = vpack.i.bf16 %v4949_v11, %v4944_v10  ;;  %v4985_v22 = vld [vmem:[%s7960_s0 + $0xc0] sm:$0xff] }
   0x5   :  { %4544 = vrot.lane.b32.xlu0 %v4543_v6, %s4856_s17  ;;  %v431_v20 = vsel %vm8066_vm0, %v370_v8, %v371_v7  ;;  %v432_v21 = vsel %vm8066_vm0, %v7991_v9, %v370_v8  ;;  %v392_v25 = vrot.slane %v4961_v14, 1  ;;  %v4999_v28 = vadd.s32 16, %v4951_v12 }
   0x6   :  { %v7980_v23 = vand.u32 7, %v4965_v16  ;;  %vm4990_vm1 = vcmp.eq.s32.totalorder %v7981_v17, 7  ;;  %v5002_v29 = vadd.s32 24, %v4951_v12  ;;  %v373_v30 = vrot.slane %v4972_v18, 1 }
   0x7   :  { %v498_v27 = vsel %vm4990_vm1, 0.0, %v432_v21  ;;  %8071 = vst [vmem:[#allocation5_spill] sm:$0xff] %v4999_v28 }
   0x8   :  { %8072 = vst [vmem:[#allocation6_spill] sm:$0xff] %v5002_v29 }
   0x9   :  { %14 = vsyncpa [#allocation3], 0  ;;  %vm338_vm2 = vcmp.eq.s32.totalorder %v7980_v23, 7  ;;  %v430_v31 = vsel %vm8066_vm0, %v371_v7, %v372_v15  ;;  %v5010_v32 = vadd.s32 176, %v4951_v12  ;;  %v5013_v33 = vadd.s32 184, %v4951_v12  ;;  %s4857_s30 = smov 64  }
   0xa   :  { %v499_v34 = vsel %vm338_vm2, 0.0, %v431_v20  ;;  %v7986_v35 = vand.u32 7, %v4999_v28  ;;  %v7985_v36 = vand.u32 7, %v5002_v29  ;;  %v429_v37 = vsel %vm8066_vm0, %v372_v15, %v373_v30  ;;  %v5035_v44 = vld [vmem:[%s7960_s0 + $0x28] sm:$0xff]  ;;  %v5058_v53 = vld [vmem:[%s7960_s0 + $0x38] sm:$0xff]  ;;  %v5063_v54 = vld [vmem:[%s7960_s0 + $0x30] sm:$0xff] }
   0xb   :  { %v4548_v38 = vpack.i.bf16 %v499_v34, %v498_v27  ;;  %v7975_v39 = vand.u32 7, %v5010_v32  ;;  %v7974_v40 = vand.u32 7, %v5013_v33  ;;  %v393_v41 = vrot.slane %v4985_v22, 1  ;;  %v5082_v61 = vld [vmem:[%s7960_s0 + $0x40] sm:$0xff]  ;;  %v5090_v63 = vld [vmem:[%s7960_s0 + $0xc8] sm:$0xff]  ;;  %v5351_v9 = vld [vmem:[%s7960_s0 + $0x70] sm:$0xff] }
   0xc   :  { %4559 = vrot.lane.b32.xlu1 %v4558_v19, %s4856_s17  ;;  %v390_v42 = vrot.slane %v4949_v11, 1  ;;  %v7987_v43 = vrot.slane %v4944_v10, 1  ;;  %vm339_vm3 = vcmp.eq.s32.totalorder %v7986_v35, 7  ;;  %vm340_vm4 = vcmp.eq.s32.totalorder %v7985_v36, 7  ;;  %8077 = vst [vmem:[#allocation7_spill] sm:$0xff] %v5082_v61  ;;  %v5314_v35 = vld [vmem:[%s7960_s0 + $0xf8] sm:$0xff] }
   0xd   :  { %4549 = vrot.lane.b32.xlu0 %v4548_v38, %s4857_s30  ;;  %v4578_v45 = vpack.i.bf16 %v4961_v14, %v4956_v13  ;;  %v500_v46 = vsel %vm339_vm3, 0.0, %v430_v31  ;;  %v501_v47 = vsel %vm340_vm4, 0.0, %v429_v37  ;;  %vm5041_vm5 = vcmp.eq.s32.totalorder %v7975_v39, 7  ;;  %s4858_s29 = smov 16   ;;  %s4859_s19 = smov [#allocation2]  }
   0xe   :  { %v4563_v49 = vpack.i.bf16 %v501_v47, %v500_v46  ;;  %vm5047_vm6 = vcmp.eq.s32.totalorder %v7974_v40, 7  ;;  %v409_v51 = vsel %vm8066_vm0, %v392_v25, %v393_v41  ;;  %v410_v52 = vsel %vm8066_vm0, %v391_v26, %v392_v25  ;;  %v5118_v25 = vld [vmem:[%s7960_s0 + $0xd0] sm:$0xff]  ;;  %s4388_s22 = sshll.u32 %s7969_s9, 4  ;;  %s4389_s22 = int_to_ptr.hbm [resolvable:$true] %s4388_s22 }
   0xf   :  { %v4573_v55 = vpack.i.bf16 %v5035_v44, %v4972_v18  ;;  %v520_v56 = vsel %vm5041_vm5, 0.0, %v410_v52  ;;  %v5071_v57 = vadd.s32 160, %v4951_v12  ;;  %v521_v58 = vsel %vm5047_vm6, 0.0, %v409_v51  ;;  %8080 = vst [vmem:[#allocation10_spill] sm:$0xff] %v5118_v25 }
  0x10   :  { %4564 = vrot.lane.b32.xlu2 %v4563_v49, %s4857_s30  ;;  %v376_v59 = vrot.slane %v5058_v53, 1  ;;  %v5077_v60 = vadd.s32 168, %v4951_v12  ;;  %v5085_v62 = vadd.s32 48, %v4951_v12  ;;  %v375_v3 = vrot.slane %v5063_v54, 1 }
  0x11   :  { %v7983_v4 = vand.u32 7, %v5071_v57  ;;  %v412_v6 = vsel %vm8066_vm0, %v7987_v43, %v390_v42  ;;  %v5100_v7 = vadd.s32 56, %v4951_v12  ;;  %v411_v15 = vsel %vm8066_vm0, %v390_v42, %v391_v26 }
  0x12   :  { %8078 = vst [vmem:[#allocation8_spill] sm:$0xff] %v5085_v62  ;;  %v7982_v8 = vand.u32 7, %v5077_v60  ;;  %v5106_v19 = vadd.s32 192, %v4951_v12  ;;  %v5109_v20 = vadd.s32 200, %v4951_v12  ;;  %v7973_v21 = vand.u32 7, %v5085_v62 }
  0x13   :  { %8079 = vst [vmem:[#allocation9_spill] sm:$0xff] %v5100_v7  ;;  %vm357_vm7 = vcmp.eq.s32.totalorder %v7983_v4, 7  ;;  %v377_v24 = vrot.slane %v5082_v61, 1  ;;  %v394_v26 = vrot.slane %v5090_v63, 1  ;;  %v7972_v31 = vand.u32 7, %v5100_v7 }
  0x14   :  { %4579 = vrot.lane.b32.xlu1 %v4578_v45, %s4856_s17  ;;  %vm358_vm8 = vcmp.eq.s32.totalorder %v7982_v8, 7  ;;  %v518_v27 = vsel %vm357_vm7, 0.0, %v412_v6  ;;  %v7971_v34 = vand.u32 7, %v5106_v19  ;;  %v4593_v37 = vpack.i.bf16 %v5058_v53, %v5063_v54  ;;  %v5169_v6 = vld [vmem:[%s7960_s0 + $0x48] sm:$0xff] }
  0x15   :  { %4574 = vrot.lane.b32.xlu0 %v4573_v55, %s4856_s17  ;;  %v519_v38 = vsel %vm358_vm8, 0.0, %v411_v15  ;;  %v7970_v42 = vand.u32 7, %v5109_v20  ;;  %v374_v45 = vrot.slane %v5035_v44, 1  ;;  %v395_v48 = vrot.slane %v5118_v25, 1  ;;  %8089 = vst [vmem:[#allocation11_spill] sm:$0xff] %v5169_v6  ;;  %v5174_v15 = vld [vmem:[%s7960_s0 + $0x50] sm:$0xff] }
  0x16   :  { %v4568_v46 = vpack.i.bf16 %v519_v38, %v518_v27  ;;  %vm5132_vm9 = vcmp.eq.s32.totalorder %v7971_v34, 7  ;;  %v4588_v49 = vpack.i.bf16 %v521_v58, %v520_v56  ;;  %v426_v50 = vsel %vm8066_vm0, %v375_v3, %v376_v59  ;;  %8090 = vst [vmem:[#allocation12_spill] sm:$0xff] %v5174_v15 }
  0x17   :  { %vm5141_vm10 = vcmp.eq.s32.totalorder %v7970_v42, 7  ;;  %v408_v52 = vsel %vm8066_vm0, %v393_v41, %v394_v26  ;;  %vm5150_vm11 = vcmp.eq.s32.totalorder %v7973_v21, 7  ;;  %vm5156_vm12 = vcmp.eq.s32.totalorder %v7972_v31, 7 }
  0x18   :  { %4569 = vrot.lane.b32.xlu2 %v4568_v46, %s4857_s30  ;;  %v425_v58 = vsel %vm8066_vm0, %v376_v59, %v377_v24  ;;  %v407_v41 = vsel %vm8066_vm0, %v394_v26, %v395_v48  ;;  %v522_v59 = vsel %vm5132_vm9, 0.0, %v408_v52  ;;  %v5182_v26 = vadd.s32 32, %v4951_v12 }
  0x19   :  { %v523_v27 = vsel %vm5141_vm10, 0.0, %v407_v41  ;;  %v5185_v38 = vadd.s32 40, %v4951_v12  ;;  %v427_v46 = vsel %vm8066_vm0, %v374_v45, %v375_v3  ;;  %v5194_v47 = vadd.s32 64, %v4951_v12 }
  0x1a   :  { %v5197_v51 = vadd.s32 72, %v4951_v12  ;;  %v7979_v52 = vand.u32 7, %v5182_v26  ;;  %v378_v42 = vrot.slane %v5169_v6, 1  ;;  %v7989_v34 = vrot.slane %v5174_v15, 1 }
  0x1b   :  { %8091 = vst [vmem:[#allocation13_spill] sm:$0xff] %v5194_v47  ;;  %v7978_v41 = vand.u32 7, %v5185_v38  ;;  %v504_v3 = vsel %vm5150_vm11, 0.0, %v426_v50  ;;  %v505_v31 = vsel %vm5156_vm12, 0.0, %v425_v58  ;;  %v4608_v21 = vpack.i.bf16 %v523_v27, %v522_v59 }
  0x1c   :  { %4594 = vrot.lane.b32.xlu1 %v4593_v37, %s4856_s17  ;;  %v428_v37 = vsel %vm8066_vm0, %v373_v30, %v374_v45  ;;  %8092 = vst [vmem:[#allocation14_spill] sm:$0xff] %v5197_v51  ;;  %v7977_v30 = vand.u32 7, %v5194_v47  ;;  %v7976_v45 = vand.u32 7, %v5197_v51  ;;  %vm341_vm13 = vcmp.eq.s32.totalorder %v7979_v52, 7  ;;  %v4511_v47 = vld [vmem:[%s7961_s1 + $0x28] sm:$0xff] }
  0x1d   :  { %4589 = vrot.lane.b32.xlu0 %v4588_v49, %s4857_s30  ;;  %vm342_vm14 = vcmp.eq.s32.totalorder %v7978_v41, 7  ;;  %v502_v40 = vsel %vm341_vm13, 0.0, %v428_v37  ;;  %v423_v49 = vsel %vm8066_vm0, %v378_v42, %v7989_v34  ;;  %v424_v55 = vsel %vm8066_vm0, %v377_v24, %v378_v42  ;;  %v5247_v42 = vld [vmem:[%s7960_s0 + $0xe8] sm:$0xff]  ;;  %958 = vmatpush.bf16.msra.mxu0 %v4511_v47 }
  0x1e   :  { %v503_v39 = vsel %vm342_vm14, 0.0, %v427_v46  ;;  %vm345_vm15 = vcmp.eq.s32.totalorder %v7977_v30, 7  ;;  %vm346_vm1 = vcmp.eq.s32.totalorder %v7976_v45, 7  ;;  %v4603_v56 = vpack.i.bf16 %v505_v31, %v504_v3  ;;  %v5242_v31 = vld [vmem:[%s7960_s0 + $0xe0] sm:$0xff]  ;;  %v5260_v3 = vld [vmem:[%s7960_s0 + $0xf0] sm:$0xff]  ;;  %v5327_v34 = vld [vmem:[%s7960_s0 + $0x68] sm:$0xff]  ;;  %4526 = vmatpush.bf16.msra.mxu3 %v4511_v47  ;;  %4525 = vmatpush.bf16.msra.mxu2 %v4511_v47 }
  0x1f   :  { %v4583_v50 = vpack.i.bf16 %v503_v39, %v502_v40  ;;  %v506_v58 = vsel %vm345_vm15, 0.0, %v424_v55  ;;  %v507_v59 = vsel %vm346_vm1, 0.0, %v423_v49  ;;  %v5230_v39 = vld [vmem:[%s7960_s0 + $0xd8] sm:$0xff]  ;;  %v4598_v27 = vpack.i.bf16 %v5090_v63, %v4985_v22 }
  0x20   :  { %v4623_v40 = vpack.i.bf16 %v507_v59, %v506_v58  ;;  %v5235_v24 = vadd.s32 208, %v4951_v12  ;;  %v5250_v46 = vadd.s32 224, %v4951_v12  ;;  %v5253_v37 = vadd.s32 216, %v4951_v12 }
  0x21   :  { %4584 = vrot.lane.b32.xlu2 %v4583_v50, %s4857_s30  ;;  %v5263_v49 = vadd.s32 232, %v4951_v12  ;;  %v396_v50 = vrot.slane %v5230_v39, 1  ;;  %v397_v58 = vrot.slane %v5242_v31, 1  ;;  %v399_v45 = vrot.slane %v5260_v3, 1 }
  0x22   :  { %8093 = vst [vmem:[#allocation15_spill] sm:$0xff] %v5235_v24  ;;  %v7984_v55 = vand.u32 7, %v5235_v24  ;;  %v7988_v59 = vand.u32 7, %v5253_v37  ;;  %v4638_v30 = vpack.i.bf16 %v5247_v42, %v5242_v31  ;;  %v4613_v52 = vpack.i.bf16 %v5169_v6, %v5082_v61  ;;  %v4509_v24 = vld [vmem:[%s7961_s1 + $0x18] sm:$0xff] }
  0x23   :  { %8094 = vst [vmem:[#allocation16_spill] sm:$0xff] %v5250_v46  ;;  %v7992_v41 = vand.u32 7, %v5263_v49  ;;  %v406_v23 = vsel %vm8066_vm0, %v395_v48, %v396_v50  ;;  %v5294_v17 = vadd.s32 240, %v4951_v12  ;;  %v5297_v8 = vadd.s32 248, %v4951_v12 }
  0x24   :  { %4609 = vrot.lane.b32.xlu1 %v4608_v21, %s4857_s30  ;;  %v4618_v21 = vpack.i.bf16 %v5230_v39, %v5118_v25  ;;  %8095 = vst [vmem:[#allocation17_spill] sm:$0xff] %v5253_v37  ;;  %vm5285_vm2 = vcmp.eq.s32.totalorder %v7984_v55, 7  ;;  %vm5305_vm3 = vcmp.eq.s32.totalorder %v7988_v59, 7  ;;  %v405_v48 = vsel %vm8066_vm0, %v396_v50, %v397_v58  ;;  %v5468_v25 = vld [vmem:[%s7960_s0 + $0x88] sm:$0xff] }
  0x25   :  { %4604 = vrot.lane.b32.xlu0 %v4603_v56, %s4857_s30  ;;  %8096 = vst [vmem:[#allocation18_spill] sm:$0xff] %v5263_v49  ;;  %v398_v56 = vrot.slane %v5247_v42, 1  ;;  %v5330_v50 = vadd.s32 96, %v4951_v12  ;;  %vm5338_vm5 = vcmp.eq.s32.totalorder %v7992_v41, 7  ;;  %v524_v41 = vsel %vm5285_vm2, 0.0, %v406_v23 }
  0x26   :  { %8099 = vst [vmem:[#allocation19_spill] sm:$0xff] %v5294_v17  ;;  %v5359_v51 = vadd.s32 88, %v4951_v12  ;;  %v400_v49 = vrot.slane %v5314_v35, 1  ;;  %v382_v61 = vrot.slane %v5327_v34, 1  ;;  %v8114_v6 = vand.u32 7, %v5297_v8 }
  0x27   :  { %8100 = vst [vmem:[#allocation20_spill] sm:$0xff] %v5297_v8  ;;  %v404_v55 = vsel %vm8066_vm0, %v397_v58, %v398_v56  ;;  %v403_v59 = vsel %vm8066_vm0, %v398_v56, %v399_v45  ;;  %v5333_v58 = vadd.s32 80, %v4951_v12  ;;  %v5346_v56 = vld [vmem:[%s7960_s0 + $0x60] sm:$0xff] }
  0x28   :  { %8105 = vst [vmem:[#allocation21_spill] sm:$0xff] %v5330_v50  ;;  %v527_v37 = vsel %vm5338_vm5, 0.0, %v403_v59  ;;  %vm5392_vm7 = vcmp.eq.s32.totalorder %v8114_v6, 7  ;;  %v402_v59 = vsel %vm8066_vm0, %v399_v45, %v400_v49 }
  0x29   :  { %4599 = vrot.lane.b32.xlu2 %v4598_v27, %s4856_s17  ;;  %v7990_v27 = vand.u32 7, %v5250_v46  ;;  %8106 = vst [vmem:[#allocation22_spill] sm:$0xff] %v5333_v58 }
  0x2a   :  { %8110 = vst [vmem:[#allocation24_spill] sm:$0xff] %v5359_v51 }
  0x2b   :  { %vm5318_vm4 = vcmp.eq.s32.totalorder %v7990_v27, 7  ;;  %v8117_v27 = vrot.slane %v4925_v2, 1 }
  0x2c   :  { %4624 = vrot.lane.b32.xlu1 %v4623_v40, %s4857_s30  ;;  %v5274_v40 = vld [vmem:[%s7960_s0 + $0x58] sm:$0xff]  ;;  %v526_v36 = vsel %vm5318_vm4, 0.0, %v404_v55  ;;  %v8111_v55 = vand.u32 7, %v5294_v17  ;;  %v5486_v17 = vadd.s32 144, %v4951_v12 }
  0x2d   :  { %4619 = vrot.lane.b32.xlu0 %v4618_v21, %s4856_s17  ;;  %v4633_v4 = vpack.i.bf16 %v5274_v40, %v5174_v15  ;;  %v380_v46 = vrot.slane %v5274_v40, 1  ;;  %v4653_v21 = vpack.i.bf16 %v5327_v34, %v5346_v56 }
  0x2e   :  { %vm5386_vm6 = vcmp.eq.s32.totalorder %v8111_v55, 7  ;;  %v8118_v55 = vand.u32 7, %v5333_v58  ;;  %v4648_v58 = vpack.i.bf16 %v527_v37, %v526_v36  ;;  %v5444_v37 = vadd.s32 128, %v4951_v12  ;;  %8134 = vst [vmem:[#allocation27_spill] sm:$0xff] %v5486_v17 }
  0x30   :  { %vm5407_vm8 = vcmp.eq.s32.totalorder %v8118_v55, 7  ;;  %v8125_v55 = vrot.slane %v5351_v9, 1 }
  0x31   :  { %4614 = vrot.lane.b32.xlu2 %v4613_v52, %s4856_s17  ;;  %v525_v52 = vsel %vm5305_vm3, 0.0, %v405_v48  ;;  %v381_v48 = vrot.slane %v5346_v56, 1  ;;  %vm8064_vm3 = vcmp.lt.s32.totalorder %v4951_v12, 1 }
  0x32   :  { %v4628_v43 = vpack.i.bf16 %v525_v52, %v524_v41  ;;  %v433_v41 = vsel %vm8066_vm0, %v400_v49, %v8117_v27  ;;  %v4510_v52 = vld [vmem:[%s7961_s1 + $0x20] sm:$0xff]  ;;  %v8124_v27 = vrot.slane %v5174_v15, 1  ;;  %v419_v8 = vsel %vm8066_vm0, %v382_v61, %v8125_v55 }
  0x33   :  { %v421_v49 = vsel %vm8066_vm0, %v380_v46, %v381_v48  ;;  %v529_v36 = vsel %vm5392_vm7, 0.0, %v433_v41  ;;  %959 = vmatpush.bf16.msra.mxu0 %v4510_v52  ;;  %4528 = vmatpush.bf16.msra.mxu3 %v4510_v52  ;;  %vm8062_vm7 = vcmask 523264  }
  0x34   :  { %4639 = vrot.lane.b32.xlu1 %v4638_v30, %s4856_s17  ;;  %v5354_v30 = vadd.s32 104, %v4951_v12  ;;  %v422_v23 = vsel %vm8066_vm0, %v8124_v27, %v380_v46  ;;  %4527 = vmatpush.bf16.msra.mxu2 %v4510_v52  ;;  %v8012_v27 = vand.u32 7, %v5444_v37 }
  0x35   :  { %4634 = vrot.lane.b32.xlu0 %v4633_v4, %s4856_s17  ;;  %v8121_v4 = vand.u32 7, %v5359_v51  ;;  %v8126_v51 = vand.u32 7, %v5330_v50 }
  0x36   :  { %8109 = vst [vmem:[#allocation23_spill] sm:$0xff] %v5354_v30  ;;  %v8129_v46 = vand.u32 7, %v5354_v30  ;;  %vm5500_vm12 = vcmp.eq.s32.totalorder %v8012_v27, 7 }
  0x37   :  { %vm5413_vm9 = vcmp.eq.s32.totalorder %v8121_v4, 7  ;;  %v420_v4 = vsel %vm8066_vm0, %v381_v48, %v382_v61  ;;  %vm5432_vm10 = vcmp.eq.s32.totalorder %v8126_v51, 7  ;;  %v5447_v61 = vadd.s32 136, %v4951_v12  ;;  %960 = vmatpush.bf16.msra.mxu0 %v4509_v24  ;;  %4530 = vmatpush.bf16.msra.mxu3 %v4509_v24 }
  0x38   :  { %vm5438_vm11 = vcmp.eq.s32.totalorder %v8129_v46, 7  ;;  %v528_v51 = vsel %vm5386_vm6, 0.0, %v402_v59  ;;  %v508_v48 = vsel %vm5407_vm8, 0.0, %v422_v23  ;;  %v5473_v59 = vld [vmem:[%s7960_s0 + $0x90] sm:$0xff]  ;;  %v510_v23 = vsel %vm5432_vm10, 0.0, %v420_v4  ;;  %4529 = vmatpush.bf16.msra.mxu2 %v4509_v24  ;;  %v5494_v4 = vld [vmem:[%s7960_s0 + $0x98] sm:$0xff] }
  0x39   :  { %4629 = vrot.lane.b32.xlu2 %v4628_v43, %s4857_s30  ;;  %8132 = vst [vmem:[#allocation25_spill] sm:$0xff] %v5447_v61  ;;  %v509_v43 = vsel %vm5413_vm9, 0.0, %v421_v49  ;;  %v511_v41 = vsel %vm5438_vm11, 0.0, %v419_v8  ;;  %v4668_v6 = vpack.i.bf16 %v529_v36, %v528_v51  ;;  %v8011_v55 = vand.u32 7, %v5447_v61 }
  0x3a   :  { %8133 = vst [vmem:[#allocation26_spill] sm:$0xff] %v5473_v59  ;;  %v4643_v49 = vpack.i.bf16 %v509_v43, %v508_v48  ;;  %v386_v46 = vrot.slane %v5468_v25, 1  ;;  %v387_v52 = vrot.slane %v5473_v59, 1  ;;  %v4663_v8 = vpack.i.bf16 %v511_v41, %v510_v23  ;;  %v5519_v43 = vld [vmem:[%s7960_s0 + $0x78] sm:$0xff] }
  0x3b   :  { %vm5506_vm13 = vcmp.eq.s32.totalorder %v8011_v55, 7  ;;  %v388_v24 = vrot.slane %v5494_v4, 1  ;;  %v8013_v23 = vand.u32 7, %v5486_v17  ;;  %v4658_v55 = vpack.i.bf16 %v5314_v35, %v5260_v3 }
  0x3c   :  { %4654 = vrot.lane.b32.xlu1 %v4653_v21, %s4856_s17  ;;  %v5456_v21 = vld [vmem:[%s7960_s0 + $0x80] sm:$0xff]  ;;  %v415_v36 = vsel %vm8066_vm0, %v386_v46, %v387_v52  ;;  %v8028_v15 = vrot.slane %v5494_v4, 7  ;;  %vm8065_vm6 = vcmask 261120   ;;  %s4861_s0 = smov 8  }
  0x3d   :  { %4649 = vrot.lane.b32.xlu0 %v4648_v58, %s4857_s30  ;;  %v8015_v45 = vrot.slane %v5456_v21, 1  ;;  %v5489_v58 = vadd.s32 152, %v4951_v12  ;;  %vm355_vm14 = vcmp.eq.s32.totalorder %v8013_v23, 7  ;;  %v414_v51 = vsel %vm8066_vm0, %v387_v52, %v388_v24 }
  0x3e   :  { %v4693_v52 = vpack.i.bf16 %v5494_v4, %v5473_v59  ;;  %v182_v59 = vrot.slane %v5063_v54, 7 }
  0x3f   :  { %8135 = vst [vmem:[#allocation28_spill] sm:$0xff] %v5489_v58  ;;  %v416_v48 = vsel %vm8066_vm0, %v8015_v45, %v386_v46  ;;  %v8014_v41 = vand.u32 7, %v5489_v58  ;;  %v4683_v46 = vpack.i.bf16 %v5519_v43, %v5351_v9  ;;  %v179_v45 = vrot.slane %v4920_v1, 7 }
  0x40   :  { %v8144_v1 = vand.u32 7, %v5002_v29  ;;  %v8029_v29 = vrot.slane %v5058_v53, 7 }
  0x41   :  { %4644 = vrot.lane.b32.xlu2 %v4643_v49, %s4857_s30  ;;  %v515_v49 = vsel %vm5506_vm13, 0.0, %v415_v36  ;;  %vm356_vm15 = vcmp.eq.s32.totalorder %v8014_v41, 7  ;;  %v4673_v41 = vpack.i.bf16 %v5468_v25, %v5456_v21 }
  0x42   :  { %vm5564_vm2 = vcmp.eq.s32.totalorder %v8144_v1, 0  ;;  %v8017_v1 = vrot.slane %v4961_v14, 7 }
  0x44   :  { %4669 = vrot.lane.b32.xlu1 %v4668_v6, %s4857_s30  ;;  %v514_v6 = vsel %vm5500_vm12, 0.0, %v416_v48  ;;  %v516_v48 = vsel %vm355_vm14, 0.0, %v414_v51  ;;  %vm8061_vm12 = vcmask 785408  }
  0x45   :  { %4664 = vrot.lane.b32.xlu0 %v4663_v8, %s4857_s30  ;;  %v8140_v8 = vrot.slane %v4944_v10, 1  ;;  %v4678_v36 = vpack.i.bf16 %v515_v49, %v514_v6 }
  0x47   :  { %v413_v47 = vsel %vm8066_vm0, %v388_v24, %v8140_v8  ;;  %v178_v8 = vrot.slane %v4915_v0, 7  ;;  %v176_v24 = vrot.slane %v4925_v2, 7  ;;  %v198_v0 = vrot.slane %v4956_v13, 7 }
  0x48   :  { %v517_v27 = vsel %vm356_vm15, 0.0, %v413_v47  ;;  %v8016_v47 = vrot.slane %v5314_v35, 7 }
  0x49   :  { %4659 = vrot.lane.b32.xlu2 %v4658_v55, %s4856_s17  ;;  %v4698_v23 = vpack.i.bf16 %v517_v27, %v516_v48  ;;  %v177_v55 = vrot.slane %v4932_v5, 7  ;;  %v8141_v27 = vand.u32 7, %v4999_v28  ;;  %v8018_v5 = vrot.slane %v4944_v10, 7 }
  0x4a   :  { %v237_v2 = vsel %vm8064_vm3, %v178_v8, %v179_v45  ;;  %v5589_v51 = vsel %vm8064_vm3, %v8016_v47, %v176_v24 }
  0x4b   :  { %vm5558_vm1 = vcmp.eq.s32.totalorder %v8141_v27, 0 }
  0x4c   :  { %4684 = vrot.lane.b32.xlu1 %v4683_v46, %s4856_s17  ;;  %v308_v46 = vsel %vm5564_vm2, 0.0, %v237_v2 }
  0x4d   :  { %4679 = vrot.lane.b32.xlu0 %v4678_v36, %s4857_s30  ;;  %v4508_v36 = vld [vmem:[%s7961_s1 + $0x10] sm:$0xff] }
  0x4e   :  { %961 = vmatpush.bf16.msra.mxu0 %v4508_v36  ;;  %4532 = vmatpush.bf16.msra.mxu3 %v4508_v36 }
  0x4f   :  { %4531 = vmatpush.bf16.msra.mxu2 %v4508_v36  ;;  %v5633_v36 = vadd.s32 120, %v4951_v12 }
  0x51   :  { %4674 = vrot.lane.b32.xlu2 %v4673_v41, %s4856_s17  ;;  %v238_v41 = vsel %vm8064_vm3, %v177_v55, %v178_v8  ;;  %v4507_v8 = vld [vmem:[%s7961_s1 + $0x8] sm:$0xff]  ;;  %8148 = vst [vmem:[#allocation30_spill] sm:$0xff] %v5633_v36 }
  0x52   :  { %v307_v49 = vsel %vm5558_vm1, 0.0, %v238_v41  ;;  %962 = vmatpush.bf16.msra.mxu0 %v4507_v8  ;;  %4534 = vmatpush.bf16.msra.mxu3 %v4507_v8  ;;  %v384_v41 = vrot.slane %v5519_v43, 1 }
  0x53   :  { %4533 = vmatpush.bf16.msra.mxu2 %v4507_v8  ;;  %v8030_v8 = vand.u32 7, %v5633_v36 }
  0x54   :  { %4699 = vrot.lane.b32.xlu1 %v4698_v23, %s4857_s30  ;;  %v197_v23 = vrot.slane %v4949_v11, 7  ;;  %v5583_v11 = vsel %vm8064_vm3, %v176_v24, %v177_v55  ;;  %v181_v55 = vrot.slane %v5035_v44, 7  ;;  %v180_v24 = vrot.slane %v4972_v18, 7 }
  0x55   :  { %4694 = vrot.lane.b32.xlu0 %v4693_v52, %s4856_s17  ;;  %v4506_v52 = vld [vmem:[%s7961_s1] sm:$0xff]  ;;  %v5622_v18 = vsel %vm8064_vm3, %v198_v0, %v8017_v1  ;;  %vm352_vm5 = vcmp.eq.s32.totalorder %v8030_v8, 7 }
  0x56   :  { %v5598_v48 = vsel %vm8064_vm3, %v8018_v5, %v197_v23  ;;  %963 = vmatpush.bf16.msra.mxu0 %v4506_v52  ;;  %4536 = vmatpush.bf16.msra.mxu3 %v4506_v52  ;;  %v5610_v27 = vsel %vm8064_vm3, %v180_v24, %v181_v55  ;;  %v5614_v6 = vsel %vm8064_vm3, %v179_v45, %v180_v24  ;;  %v5630_v45 = vadd.s32 112, %v4951_v12 }
  0x57   :  { %4535 = vmatpush.bf16.msra.mxu2 %v4506_v52  ;;  %v5626_v44 = vsel %vm8064_vm3, %v197_v23, %v198_v0  ;;  %v8149_v52 = vrot.slane %v5456_v21, 1  ;;  %v8150_v23 = vrot.slane %v5351_v9, 1 }
  0x58   :  { %8147 = vst [vmem:[#allocation29_spill] sm:$0xff] %v5630_v45  ;;  %v8031_v13 = vand.u32 7, %v5630_v45 }
  0x59   :  { %v417_v24 = vsel %vm8066_vm0, %v384_v41, %v8149_v52  ;;  %v418_v0 = vsel %vm8066_vm0, %v8150_v23, %v384_v41 }
  0x5a   :  { %vm351_vm4 = vcmp.eq.s32.totalorder %v8031_v13, 7  ;;  %v513_v1 = vsel %vm352_vm5, 0.0, %v417_v24 }
  0x5b   :  { %v512_v47 = vsel %vm351_vm4, 0.0, %v418_v0 }
  0x5c   :  { %v4688_v5 = vpack.i.bf16 %v513_v1, %v512_v47  ;;  %v8151_v1 = vand.u32 7, %v5071_v57 }
  0x5e   :  { %4689 = vrot.lane.b32.xlu2 %v4688_v5, %s4857_s30  ;;  %vm5657_vm8 = vcmp.eq.s32.totalorder %v8151_v1, 0  ;;  %v8154_v5 = vand.u32 7, %v5077_v60  ;;  %v5689_v60 = vsel %vm8064_vm3, %v181_v55, %v182_v59 }
  0x60   :  { %vm5669_vm9 = vcmp.eq.s32.totalorder %v8154_v5, 0 }
  0x6a   :  { %v4565_v2 = vpop.permute.xlu2 %4564 }
  0x6b   :  { %v4567_v58 = vunpack.i.h.bf16 %v4565_v2  ;;  %v4566_v17 = vunpack.i.l.bf16 %v4565_v2 }
  0x72   :  { %v4570_v52 = vpop.permute.xlu2 %4569 }
  0x73   :  { %v4571_v1 = vunpack.i.l.bf16 %v4570_v52 }
  0x76   :  { %v4555_v28 = vpop.permute.xlu1 %4554 }
  0x77   :  { %v4557_v41 = vunpack.i.h.bf16 %v4555_v28  ;;  %v4556_v23 = vunpack.i.l.bf16 %v4555_v28  ;;  %v4545_v61 = vpop.permute.xlu0 %4544 }
  0x79   :  { %v789_v0 = vsel %vm8065_vm6, %v307_v49, %v4556_v23  ;;  %v790_v47 = vsel %vm8065_vm6, %v308_v46, %v4557_v41  ;;  %v8157_v49 = vrot.slane %v4944_v10, 7  ;;  %v8158_v10 = vand.u32 7, %v4951_v12 }
  0x7a   :  { %v5662_v54 = vsel %vm8062_vm7, %v789_v0, %v4566_v17  ;;  %v5665_v28 = vsel %vm8062_vm7, %v790_v47, %v4567_v58  ;;  %v5685_v58 = vsel %vm8064_vm3, %v182_v59, %v8029_v29  ;;  %v8161_v41 = vand.u32 7, %v4965_v16 }
  0x7b   :  { %v220_v57 = vsel %vm8064_vm3, %v8028_v15, %v8157_v49  ;;  %v853_v17 = vpack.c.bf16 %v5665_v28, %v5662_v54  ;;  %vm5693_vm10 = vcmp.eq.s32.totalorder %v8158_v10, 0  ;;  %v326_v59 = vsel %vm5669_vm9, 0.0, %v5598_v48  ;;  %v4585_v5 = vpop.permute.xlu2 %4584 }
  0x7c   :  { %vm5699_vm11 = vcmp.eq.s32.totalorder %v8161_v41, 0  ;;  %v325_v0 = vsel %vm5657_vm8, 0.0, %v220_v57  ;;  %v4572_v47 = vunpack.i.h.bf16 %v4570_v52  ;;  %v4547_v49 = vunpack.i.h.bf16 %v4545_v61 }
  0x7d   :  { %v4546_v10 = vunpack.i.l.bf16 %v4545_v61  ;;  %v305_v41 = vsel %vm5693_vm10, 0.0, %v5589_v51  ;;  %v306_v2 = vsel %vm5699_vm11, 0.0, %v5583_v11  ;;  %v8186_v54 = vrot.slane %v4961_v14, 7 }
  0x7e   :  { %v4560_v55 = vpop.permute.xlu1 %4559  ;;  %v788_v51 = vsel %vm8065_vm6, %v306_v2, %v4547_v49 }
  0x7f   :  { %v4562_v15 = vunpack.i.h.bf16 %v4560_v55  ;;  %v4561_v29 = vunpack.i.l.bf16 %v4560_v55  ;;  %v4550_v24 = vpop.permute.xlu0 %4549  ;;  %v787_v13 = vsel %vm8065_vm6, %v305_v41, %v4546_v10 }
  0x80   :  { %v4552_v52 = vunpack.i.h.bf16 %v4550_v24  ;;  %v4551_v8 = vunpack.i.l.bf16 %v4550_v24 }
  0x81   :  { %v808_v57 = vsel %vm8065_vm6, %v326_v59, %v4562_v15  ;;  %v807_v48 = vsel %vm8065_vm6, %v325_v0, %v4561_v29  ;;  %v8164_v29 = vand.u32 7, %v5182_v26  ;;  %v8167_v59 = vand.u32 7, %v5185_v38 }
  0x82   :  { %v840_v61 = vsel %vm8062_vm7, %v807_v48, %v4571_v1  ;;  %v841_v55 = vsel %vm8062_vm7, %v808_v57, %v4572_v47  ;;  %v820_v23 = vsel %vm8062_vm7, %v787_v13, %v4551_v8  ;;  %v821_v11 = vsel %vm8062_vm7, %v788_v51, %v4552_v52 }
  0x83   :  { %v862_v46 = vpack.c.bf16 %v841_v55, %v840_v61  ;;  %v852_v15 = vpack.c.bf16 %v821_v11, %v820_v23  ;;  %vm5725_vm13 = vcmp.eq.s32.totalorder %v8164_v29, 0  ;;  %vm5731_vm14 = vcmp.eq.s32.totalorder %v8167_v59, 0  ;;  %v5738_v49 = vpop.permute.xlu2 %4599 }
  0x84   :  { %v205_v13 = vrot.slane %v5247_v42, 7  ;;  %v204_v8 = vrot.slane %v5242_v31, 7  ;;  %v309_v10 = vsel %vm5725_vm13, 0.0, %v5614_v6  ;;  %v310_v41 = vsel %vm5731_vm14, 0.0, %v5610_v27 }
  0x85   :  { %4434 = vmatmul.msk.bf16.vlgmr.msra.gmra.mxu3 %vm8061_vm12, %v862_v46  ;;  %4424 = vmatmul.msk.bf16.vlgmr.msra.gmra.mxu0 %vm8061_vm12, %v852_v15  ;;  %v4587_v57 = vunpack.i.h.bf16 %v4585_v5  ;;  %v4586_v48 = vunpack.i.l.bf16 %v4585_v5  ;;  %v203_v61 = vrot.slane %v5230_v39, 7  ;;  %v8170_v55 = vand.u32 7, %v5010_v32 }
  0x86   :  { %v4580_v1 = vpop.permute.xlu1 %4579  ;;  %v8173_v51 = vand.u32 7, %v5013_v33  ;;  %v5767_v32 = vsel %vm8064_vm3, %v204_v8, %v205_v13  ;;  %v8199_v39 = vand.u32 7, %v5633_v36 }
  0x87   :  { %v4575_v2 = vpop.permute.xlu0 %4574  ;;  %vm5749_vm15 = vcmp.eq.s32.totalorder %v8170_v55, 0  ;;  %v4582_v46 = vunpack.i.h.bf16 %v4580_v1  ;;  %v4581_v23 = vunpack.i.l.bf16 %v4580_v1  ;;  %v5773_v33 = vsel %vm8064_vm3, %v203_v61, %v204_v8 }
  0x88   :  { %v4577_v24 = vunpack.i.h.bf16 %v4575_v2  ;;  %v4576_v52 = vunpack.i.l.bf16 %v4575_v2  ;;  %vm167_vm1 = vcmp.eq.s32.totalorder %v8173_v51, 0  ;;  %v327_v15 = vsel %vm5749_vm15, 0.0, %v5626_v44 }
  0x89   :  { %v328_v29 = vsel %vm167_vm1, 0.0, %v5622_v18  ;;  %v809_v1 = vsel %vm8065_vm6, %v327_v15, %v4581_v23  ;;  %v200_v8 = vrot.slane %v4985_v22, 7  ;;  %v8174_v44 = vand.u32 7, %v5085_v62 }
  0x8a   :  { %v792_v6 = vsel %vm8065_vm6, %v310_v41, %v4577_v24  ;;  %v791_v27 = vsel %vm8065_vm6, %v309_v10, %v4576_v52  ;;  %v810_v47 = vsel %vm8065_vm6, %v328_v29, %v4582_v46  ;;  %v8177_v24 = vand.u32 7, %v5100_v7 }
  0x8b   :  { %v5758_v5 = vsel %vm8062_vm7, %v791_v27, %v4586_v48  ;;  %v5761_v11 = vsel %vm8062_vm7, %v792_v6, %v4587_v57  ;;  %v5783_v57 = vpop.permute.xlu2 %4614  ;;  %v201_v48 = vrot.slane %v5090_v63, 7  ;;  %vm5789_vm2 = vcmp.eq.s32.totalorder %v8174_v44, 0 }
  0x8c   :  { %v854_v59 = vpack.c.bf16 %v5761_v11, %v5758_v5  ;;  %vm5795_vm4 = vcmp.eq.s32.totalorder %v8177_v24, 0  ;;  %v189_v55 = vrot.slane %v5327_v34, 7  ;;  %v188_v63 = vrot.slane %v5346_v56, 7 }
  0x8d   :  { %v311_v46 = vsel %vm5789_vm2, 0.0, %v5689_v60  ;;  %v312_v23 = vsel %vm5795_vm4, 0.0, %v5685_v58  ;;  %v8180_v34 = vand.u32 7, %v5106_v19  ;;  %v8183_v60 = vand.u32 7, %v5109_v20 }
  0x8e   :  { %v4595_v0 = vpop.permute.xlu1 %4594  ;;  %v215_v58 = vsel %vm8064_vm3, %v200_v8, %v201_v48  ;;  %v216_v28 = vsel %vm8064_vm3, %v8186_v54, %v200_v8  ;;  %v187_v19 = vrot.slane %v5274_v40, 7  ;;  %v4601_v15 = vunpack.i.l.bf16 %v5738_v49  ;;  %v8192_v54 = vld [vmem:[#allocation17_spill] sm:$0xff] }
  0x8f   :  { %v4590_v10 = vpop.permute.xlu0 %4589  ;;  %v4597_v6 = vunpack.i.h.bf16 %v4595_v0  ;;  %v4596_v27 = vunpack.i.l.bf16 %v4595_v0  ;;  %vm5816_vm5 = vcmp.eq.s32.totalorder %v8180_v34, 0  ;;  %vm5822_vm8 = vcmp.eq.s32.totalorder %v8183_v60, 0  ;;  %v8188_v60 = vld [vmem:[#allocation15_spill] sm:$0xff] }
  0x90   :  { %v4592_v41 = vunpack.i.h.bf16 %v4590_v10  ;;  %v4591_v2 = vunpack.i.l.bf16 %v4590_v10  ;;  %v329_v14 = vsel %vm5816_vm5, 0.0, %v216_v28  ;;  %v8189_v11 = vand.u32 7, %v8188_v60 }
  0x91   :  { %v794_v20 = vsel %vm8065_vm6, %v312_v23, %v4597_v6  ;;  %v793_v29 = vsel %vm8065_vm6, %v311_v46, %v4596_v27  ;;  %v8187_v46 = vld [vmem:[#allocation10_spill] sm:$0xff]  ;;  %v8193_v28 = vand.u32 7, %v8192_v54  ;;  %vm5897_vm13 = vcmp.eq.s32.totalorder %v8199_v39, 0 }
  0x92   :  { %v842_v31 = vsel %vm8062_vm7, %v809_v1, %v4591_v2  ;;  %v843_v22 = vsel %vm8062_vm7, %v810_v47, %v4592_v41  ;;  %v5839_v47 = vsel %vm8064_vm3, %v188_v63, %v189_v55  ;;  %v330_v1 = vsel %vm5822_vm8, 0.0, %v215_v58 }
  0x93   :  { %v863_v51 = vpack.c.bf16 %v843_v22, %v842_v31  ;;  %v4630_v44 = vpop.permute.xlu2 %4629  ;;  %v811_v31 = vsel %vm8065_vm6, %v329_v14, %v4601_v15  ;;  %v202_v23 = vrot.slane %v8187_v46, 7  ;;  %vm5870_vm9 = vcmp.eq.s32.totalorder %v8189_v11, 0  ;;  %v8207_v46 = vld [vmem:[#allocation18_spill] sm:$0xff]  ;;  %v8211_v11 = vld [vmem:[#allocation11_spill] sm:$0xff]  ;;  %v6178_v14 = vld [vmem:[%s7962_s2] ss:$0 sm:$0xff] }
  0x94   :  { %vm5876_vm10 = vcmp.eq.s32.totalorder %v8193_v28, 0  ;;  %v185_v58 = vrot.slane %v8211_v11, 7  ;;  %v4632_v54 = vunpack.i.h.bf16 %v4630_v44  ;;  %v4631_v28 = vunpack.i.l.bf16 %v4630_v44 }
  0x95   :  { %4425 = vmatmul.msk.bf16.gmra.mxu0 %vm8061_vm12, %v853_v17  ;;  %4435 = vmatmul.msk.bf16.gmra.mxu3 %vm8061_vm12, %v863_v51  ;;  %v4602_v17 = vunpack.i.h.bf16 %v5738_v49  ;;  %v5849_v49 = vsel %vm8064_vm3, %v187_v19, %v188_v63  ;;  %v213_v15 = vsel %vm8064_vm3, %v202_v23, %v203_v61  ;;  %v190_v61 = vrot.slane %v5351_v9, 7 }
  0x96   :  { %v4610_v5 = vpop.permute.xlu1 %4609 }
  0x97   :  { %v4605_v0 = vpop.permute.xlu0 %4604  ;;  %v4612_v2 = vunpack.i.h.bf16 %v4610_v5  ;;  %v4611_v8 = vunpack.i.l.bf16 %v4610_v5  ;;  %v812_v52 = vsel %vm8065_vm6, %v330_v1, %v4602_v17  ;;  %v5917_v9 = vsel %vm8064_vm3, %v189_v55, %v190_v61 }
  0x98   :  { %v4607_v10 = vunpack.i.h.bf16 %v4605_v0  ;;  %v4606_v41 = vunpack.i.l.bf16 %v4605_v0  ;;  %v8196_v0 = vand.u32 7, %v5630_v45  ;;  %v206_v17 = vrot.slane %v5260_v3, 7  ;;  %v8216_v3 = vld [vmem:[#allocation14_spill] sm:$0xff] }
  0x99   :  { %v844_v63 = vsel %vm8062_vm7, %v811_v31, %v4611_v8  ;;  %v845_v6 = vsel %vm8062_vm7, %v812_v52, %v4612_v2  ;;  %v332_v52 = vsel %vm5876_vm10, 0.0, %v213_v15 }
  0x9a   :  { %v5852_v18 = vsel %vm8062_vm7, %v793_v29, %v4606_v41  ;;  %v5855_v24 = vsel %vm8062_vm7, %v794_v20, %v4607_v10  ;;  %v864_v5 = vpack.c.bf16 %v845_v6, %v844_v63  ;;  %v214_v20 = vsel %vm8064_vm3, %v201_v48, %v202_v23  ;;  %v8202_v48 = vld [vmem:[#allocation7_spill] sm:$0xff]  ;;  %v8203_v63 = vld [vmem:[#allocation16_spill] sm:$0xff] }
  0x9b   :  { %v855_v22 = vpack.c.bf16 %v5855_v24, %v5852_v18  ;;  %v5866_v34 = vpop.permute.xlu2 %4644  ;;  %v191_v29 = vrot.slane %v5519_v43, 7  ;;  %vm5891_vm11 = vcmp.eq.s32.totalorder %v8196_v0, 0  ;;  %v331_v8 = vsel %vm5870_vm9, 0.0, %v214_v20 }
  0x9c   :  { %v8204_v6 = vand.u32 7, %v8203_v63  ;;  %v8208_v23 = vand.u32 7, %v8207_v46 }
  0x9d   :  { %v5913_v31 = vsel %vm8064_vm3, %v190_v61, %v191_v29 }
  0x9e   :  { %v5861_v51 = vpop.permute.xlu1 %4624  ;;  %vm5921_vm14 = vcmp.eq.s32.totalorder %v8204_v6, 0  ;;  %vm5927_vm15 = vcmp.eq.s32.totalorder %v8208_v23, 0  ;;  %v320_v55 = vsel %vm5897_vm13, 0.0, %v5913_v31  ;;  %v8212_v6 = vld [vmem:[#allocation13_spill] sm:$0xff]  ;;  %vm8063_vm13 = vcmask 1041409  }
  0x9f   :  { %v4620_v27 = vpop.permute.xlu0 %4619  ;;  %v333_v61 = vsel %vm5921_vm14, 0.0, %v5773_v33  ;;  %v8213_v46 = vand.u32 7, %v8212_v6 }
  0xa0   :  { %v4622_v10 = vunpack.i.h.bf16 %v4620_v27  ;;  %v4621_v41 = vunpack.i.l.bf16 %v4620_v27 }
  0xa1   :  { %vm5949_vm1 = vcmp.eq.s32.totalorder %v8213_v46, 0  ;;  %v8228_v46 = vrot.slane %v5314_v35, 7  ;;  %v8229_v35 = vand.u32 7, %v5330_v50 }
  0xa2   :  { %v814_v15 = vsel %vm8065_vm6, %v332_v52, %v4622_v10  ;;  %v813_v20 = vsel %vm8065_vm6, %v331_v8, %v4621_v41  ;;  %v8217_v10 = vand.u32 7, %v8216_v3 }
  0xa3   :  { %v846_v23 = vsel %vm8062_vm7, %v813_v20, %v4631_v28  ;;  %vm5989_vm8 = vcmp.eq.s32.totalorder %v8229_v35, 0  ;;  %v4616_v20 = vunpack.i.l.bf16 %v5783_v57 }
  0xa4   :  { %vm5955_vm2 = vcmp.eq.s32.totalorder %v8217_v10, 0  ;;  %v209_v10 = vsel %vm8064_vm3, %v206_v17, %v8228_v46  ;;  %v317_v41 = vsel %vm5989_vm8, 0.0, %v5849_v49  ;;  %vm2369_vm8 = vcmask 1043459  }
  0xa5   :  { %4426 = vmatmul.msk.bf16.gmra.mxu0 %vm8061_vm12, %v854_v59  ;;  %4436 = vmatmul.msk.bf16.gmra.mxu3 %vm8061_vm12, %v864_v5  ;;  %v184_v59 = vrot.slane %v8202_v48, 7  ;;  %v334_v48 = vsel %vm5927_vm15, 0.0, %v5767_v32  ;;  %v8224_v32 = vld [vmem:[#allocation20_spill] sm:$0xff]  ;;  %v847_v5 = vsel %vm8062_vm7, %v814_v15, %v4632_v54 }
  0xa6   :  { %v4640_v56 = vpop.permute.xlu1 %4639  ;;  %v8225_v52 = vand.u32 7, %v8224_v32  ;;  %v865_v46 = vpack.c.bf16 %v847_v5, %v846_v23  ;;  %v4617_v5 = vunpack.i.h.bf16 %v5783_v57  ;;  %v8236_v57 = vand.u32 7, %v5444_v37 }
  0xa7   :  { %v5903_v2 = vpop.permute.xlu0 %4634  ;;  %v4642_v0 = vunpack.i.h.bf16 %v4640_v56  ;;  %v4641_v39 = vunpack.i.l.bf16 %v4640_v56  ;;  %v8220_v56 = vld [vmem:[#allocation19_spill] sm:$0xff]  ;;  %v231_v32 = vsel %vm8064_vm3, %v184_v59, %v185_v58  ;;  %v4627_v37 = vunpack.i.h.bf16 %v5861_v51 }
  0xa8   :  { %v8221_v8 = vand.u32 7, %v8220_v56  ;;  %vm5967_vm5 = vcmp.eq.s32.totalorder %v8225_v52, 0  ;;  %v210_v56 = vsel %vm8064_vm3, %v205_v13, %v206_v17  ;;  %v314_v23 = vsel %vm5955_vm2, 0.0, %v231_v32 }
  0xa9   :  { %v816_v28 = vsel %vm8065_vm6, %v334_v48, %v4642_v0  ;;  %v815_v54 = vsel %vm8065_vm6, %v333_v61, %v4641_v39  ;;  %v336_v0 = vsel %vm5967_vm5, 0.0, %v209_v10  ;;  %v8232_v39 = vand.u32 7, %v5354_v30 }
  0xaa   :  { %vm5961_vm4 = vcmp.eq.s32.totalorder %v8221_v8, 0  ;;  %v4660_v8 = vpop.permute.xlu2 %4659  ;;  %v8235_v48 = vrot.slane %v5058_v53, 7  ;;  %vm6049_vm10 = vcmp.eq.s32.totalorder %v8236_v57, 0  ;;  %vm2367_vm5 = vcmask 1042434  }
  0xab   :  { %v4662_v13 = vunpack.i.h.bf16 %v4660_v8  ;;  %v4661_v17 = vunpack.i.l.bf16 %v4660_v8  ;;  %v335_v60 = vsel %vm5961_vm4, 0.0, %v210_v56  ;;  %vm5999_vm9 = vcmp.eq.s32.totalorder %v8232_v39, 0 }
  0xac   :  { %v318_v32 = vsel %vm5999_vm9, 0.0, %v5839_v47  ;;  %vm2371_vm9 = vcmask 1044484  }
  0xad   :  { %v818_v53 = vsel %vm8065_vm6, %v336_v0, %v4662_v13 }
  0xae   :  { %v4655_v63 = vpop.permute.xlu1 %4654 }
  0xaf   :  { %v4650_v15 = vpop.permute.xlu0 %4649  ;;  %v4657_v10 = vunpack.i.h.bf16 %v4655_v63  ;;  %v4656_v56 = vunpack.i.l.bf16 %v4655_v63  ;;  %v192_v63 = vrot.slane %v5456_v21, 7  ;;  %v796_v21 = vsel %vm8065_vm6, %v314_v23, %v4617_v5 }
  0xb0   :  { %v4652_v42 = vunpack.i.h.bf16 %v4650_v15  ;;  %v4651_v52 = vunpack.i.l.bf16 %v4650_v15  ;;  %v232_v15 = vsel %vm8064_vm3, %v8235_v48, %v184_v59  ;;  %v817_v59 = vsel %vm8065_vm6, %v335_v60, %v4661_v17  ;;  %v8245_v17 = vld [vmem:[#allocation22_spill] sm:$0xff] }
  0xb1   :  { %v193_v60 = vrot.slane %v5468_v25, 7  ;;  %v313_v49 = vsel %vm5949_vm1, 0.0, %v232_v15  ;;  %v800_v47 = vsel %vm8065_vm6, %v318_v32, %v4657_v10  ;;  %v224_v48 = vsel %vm8064_vm3, %v191_v29, %v192_v63 }
  0xb2   :  { %v6010_v33 = vsel %vm8062_vm7, %v815_v54, %v4651_v52  ;;  %v6013_v27 = vsel %vm8062_vm7, %v816_v28, %v4652_v42  ;;  %v799_v42 = vsel %vm8065_vm6, %v317_v41, %v4656_v56  ;;  %v4675_v13 = vpop.permute.xlu2 %4674  ;;  %v4626_v15 = vunpack.i.l.bf16 %v5861_v51 }
  0xb3   :  { %v866_v8 = vpack.c.bf16 %v6013_v27, %v6010_v33  ;;  %v223_v61 = vsel %vm8064_vm3, %v192_v63, %v193_v60  ;;  %v795_v10 = vsel %vm8065_vm6, %v313_v49, %v4616_v20  ;;  %v4677_v56 = vunpack.i.h.bf16 %v4675_v13 }
  0xb4   :  { %v321_v29 = vsel %vm6049_vm10, 0.0, %v224_v48  ;;  %v828_v41 = vsel %vm8062_vm7, %v795_v10, %v4626_v15  ;;  %v829_v32 = vsel %vm8062_vm7, %v796_v21, %v4627_v37  ;;  %v8253_v15 = vld [vmem:[#allocation27_spill] sm:$0xff]  ;;  %v4647_v33 = vunpack.i.h.bf16 %v5866_v34 }
  0xb5   :  { %4427 = vmatmul.msk.bf16.gmra.mxu0 %vm8061_vm12, %v855_v22  ;;  %4437 = vmatmul.msk.bf16.gmra.mxu3 %vm8061_vm12, %v865_v46  ;;  %v8239_v46 = vld [vmem:[#allocation25_spill] sm:$0xff]  ;;  %v8254_v10 = vand.u32 7, %v8253_v15  ;;  %v4646_v27 = vunpack.i.l.bf16 %v5866_v34  ;;  %vm2373_vm10 = vcmask 1045509  }
  0xb6   :  { %v4670_v28 = vpop.permute.xlu1 %4669  ;;  %v8240_v0 = vand.u32 7, %v8239_v46  ;;  %v8246_v46 = vand.u32 7, %v8245_v17 }
  0xb7   :  { %v4672_v54 = vunpack.i.h.bf16 %v4670_v28  ;;  %v4671_v35 = vunpack.i.l.bf16 %v4670_v28  ;;  %v4665_v18 = vpop.permute.xlu0 %4664  ;;  %vm6112_vm2 = vcmp.eq.s32.totalorder %v8254_v10, 0 }
  0xb8   :  { %v4667_v25 = vunpack.i.h.bf16 %v4665_v18  ;;  %v4666_v52 = vunpack.i.l.bf16 %v4665_v18  ;;  %vm6055_vm14 = vcmp.eq.s32.totalorder %v8240_v0, 0  ;;  %v8244_v18 = vld [vmem:[#allocation26_spill] sm:$0xff]  ;;  %vm6090_vm15 = vcmp.eq.s32.totalorder %v8246_v46, 0  ;;  %v8249_v0 = vld [vmem:[#allocation24_spill] sm:$0xff] }
  0xb9   :  { %v6039_v24 = vsel %vm8062_vm7, %v817_v59, %v4671_v35  ;;  %v6042_v22 = vsel %vm8062_vm7, %v818_v53, %v4672_v54  ;;  %v4676_v53 = vunpack.i.l.bf16 %v4675_v13  ;;  %v322_v59 = vsel %vm6055_vm14, 0.0, %v223_v61  ;;  %v8243_v35 = vld [vmem:[#allocation12_spill] sm:$0xff] }
  0xba   :  { %v867_v44 = vpack.c.bf16 %v6042_v22, %v6039_v24  ;;  %v6068_v23 = vsel %vm8062_vm7, %v799_v42, %v4666_v52  ;;  %v6071_v5 = vsel %vm8062_vm7, %v800_v47, %v4667_v25  ;;  %v804_v28 = vsel %vm8065_vm6, %v322_v59, %v4677_v56  ;;  %v4690_v61 = vpop.permute.xlu2 %4689 }
  0xbb   :  { %v858_v43 = vpack.c.bf16 %v6071_v5, %v6068_v23  ;;  %v803_v63 = vsel %vm8065_vm6, %v321_v29, %v4676_v53  ;;  %v186_v49 = vrot.slane %v8243_v35, 7  ;;  %v856_v42 = vpack.c.bf16 %v829_v32, %v828_v41  ;;  %v8257_v53 = vld [vmem:[#allocation28_spill] sm:$0xff] }
  0xbc   :  { %v194_v25 = vrot.slane %v8244_v18, 7  ;;  %v8250_v39 = vand.u32 7, %v8249_v0  ;;  %v8258_v40 = vand.u32 7, %v8257_v53  ;;  %v4637_v59 = vunpack.i.h.bf16 %v5903_v2 }
  0xbd   :  { %v229_v48 = vsel %vm8064_vm3, %v186_v49, %v187_v19  ;;  %v230_v37 = vsel %vm8064_vm3, %v185_v58, %v186_v49  ;;  %v8261_v19 = vrot.slane %v5494_v4, 7  ;;  %v4636_v41 = vunpack.i.l.bf16 %v5903_v2 }
  0xbe   :  { %v4685_v51 = vpop.permute.xlu1 %4684  ;;  %vm6096_vm1 = vcmp.eq.s32.totalorder %v8250_v39, 0  ;;  %vm6118_vm4 = vcmp.eq.s32.totalorder %v8258_v40, 0  ;;  %v222_v58 = vsel %vm8064_vm3, %v193_v60, %v194_v25  ;;  %v315_v32 = vsel %vm6090_vm15, 0.0, %v230_v37 }
  0xbf   :  { %v4680_v54 = vpop.permute.xlu0 %4679  ;;  %v221_v11 = vsel %vm8064_vm3, %v194_v25, %v8261_v19  ;;  %v316_v4 = vsel %vm6096_vm1, 0.0, %v229_v48  ;;  %v323_v60 = vsel %vm6112_vm2, 0.0, %v222_v58  ;;  %v797_v49 = vsel %vm8065_vm6, %v315_v32, %v4636_v41 }
  0xc0   :  { %v4682_v20 = vunpack.i.h.bf16 %v4680_v54  ;;  %v4681_v47 = vunpack.i.l.bf16 %v4680_v54  ;;  %v324_v54 = vsel %vm6118_vm4, 0.0, %v221_v11  ;;  %v4686_v18 = vunpack.i.l.bf16 %v4685_v51 }
  0xc1   :  { %v4692_v48 = vunpack.i.h.bf16 %v4690_v61  ;;  %v4691_v37 = vunpack.i.l.bf16 %v4690_v61  ;;  %vm8068_vm14 = vcmask 1046534   ;;  %vm8067_vm15 = vcmask 1047559  }
  0xc2   :  { %v836_v52 = vsel %vm8062_vm7, %v803_v63, %v4681_v47  ;;  %v837_v13 = vsel %vm8062_vm7, %v804_v28, %v4682_v20 }
  0xc3   :  { %v860_v57 = vpack.c.bf16 %v837_v13, %v836_v52  ;;  %v830_v13 = vsel %vm8062_vm7, %v797_v49, %v4646_v27 }
  0xc5   :  { %4428 = vmatmul.msk.bf16.gmra.mxu0 %vm8061_vm12, %v856_v42  ;;  %4432 = vmatmul.msk.bf16.vlgmr.msra.gmra.mxu2 %vm8061_vm12, %v860_v57  ;;  %v4687_v42 = vunpack.i.h.bf16 %v4685_v51  ;;  %v8262_v51 = vsel %vm5891_vm11, 0.0, %v5917_v9  ;;  %vm1301_vm11 = vcmask 123904  }
  0xc6   :  { %4438 = vmatmul.msk.bf16.gmra.mxu3 %vm8061_vm12, %v866_v8  ;;  %v4700_v63 = vpop.permute.xlu1 %4699  ;;  %v798_v8 = vsel %vm8065_vm6, %v316_v4, %v4637_v59  ;;  %v801_v39 = vsel %vm8065_vm6, %v8262_v51, %v4686_v18 }
  0xc7   :  { %v4695_v28 = vpop.permute.xlu0 %4694  ;;  %v4702_v20 = vunpack.i.h.bf16 %v4700_v63  ;;  %v4701_v47 = vunpack.i.l.bf16 %v4700_v63  ;;  %v831_v57 = vsel %vm8062_vm7, %v798_v8, %v4647_v33  ;;  %v802_v21 = vsel %vm8065_vm6, %v320_v55, %v4687_v42 }
  0xc8   :  { %v4697_v2 = vunpack.i.h.bf16 %v4695_v28  ;;  %v4696_v35 = vunpack.i.l.bf16 %v4695_v28  ;;  %v857_v15 = vpack.c.bf16 %v831_v57, %v830_v13  ;;  %v834_v56 = vsel %vm8062_vm7, %v801_v39, %v4691_v37 }
  0xc9   :  { %v835_v53 = vsel %vm8062_vm7, %v802_v21, %v4692_v48 }
  0xca   :  { %v806_v25 = vsel %vm8065_vm6, %v324_v54, %v4697_v2  ;;  %v805_v52 = vsel %vm8065_vm6, %v323_v60, %v4696_v35  ;;  %v859_v1 = vpack.c.bf16 %v835_v53, %v834_v56 }
  0xcb   :  { %v838_v46 = vsel %vm8062_vm7, %v805_v52, %v4701_v47  ;;  %v839_v34 = vsel %vm8062_vm7, %v806_v25, %v4702_v20 }
  0xcc   :  { %v861_v10 = vpack.c.bf16 %v839_v34, %v838_v46 }
  0xd5   :  { %4429 = vmatmul.msk.bf16.gmra.mxu0 %vm8061_vm12, %v857_v15  ;;  %4433 = vmatmul.msk.bf16.gmra.mxu2 %vm8061_vm12, %v861_v10 }
  0xd6   :  { %4439 = vmatmul.msk.bf16.gmra.mxu3 %vm8061_vm12, %v867_v44 }
  0xe5   :  { %4430 = vmatmul.msk.bf16.gmra.mxu0 %vm8061_vm12, %v858_v43 }
  0xf5   :  { %4431 = vmatmul.msk.bf16.gmra.mxu0 %vm8061_vm12, %v859_v1 }
 0x102   :  { %v965_v31 = vpop.f32.mrf.mxu0 }
 0x103   :  { %v966_v9 = vadd.f32 %v6178_v14, %v965_v31 }
 0x105   :  { %v1045_v55 = vmax.f32 %v966_v9, 0.0 }
 0x107   :  { %v1109_v24 = vrot.slane %v1045_v55, 2  ;;  %v1110_v22 = vrot.slane %v1045_v55, 4  ;;  %v1111_v44 = vrot.slane %v1045_v55, 6  ;;  %v1302_v40 = vsel %vm1301_vm11, %v1045_v55, -inf }
 0x108   :  { %v1015_v23 = vpop.f32.mrf.mxu3  ;;  %v1303_v5 = vrot.slane %v1302_v40, 4 }
 0x109   :  { %v1016_v43 = vadd.f32 %v6178_v14, %v1015_v23  ;;  %v1309_v29 = vsel %vm1301_vm11, %v1109_v24, -inf  ;;  %v1316_v19 = vsel %vm1301_vm11, %v1110_v22, -inf  ;;  %v1323_v11 = vsel %vm1301_vm11, %v1111_v44, -inf }
 0x10a   :  { %v1304_v58 = vmax.f32 %v1302_v40, %v1303_v5  ;;  %v1310_v59 = vrot.slane %v1309_v29, 4  ;;  %v1317_v41 = vrot.slane %v1316_v19, 4  ;;  %v1324_v63 = vrot.slane %v1323_v11, 4  ;;  %v967_v33 = vpop.f32.mrf.mxu0 }
 0x10b   :  { %v1065_v32 = vmax.f32 %v1016_v43, 0.0  ;;  %v968_v52 = vadd.f32 %v6178_v14, %v967_v33 }
 0x10c   :  { %v1311_v4 = vmax.f32 %v1309_v29, %v1310_v59  ;;  %v1318_v28 = vmax.f32 %v1316_v19, %v1317_v41  ;;  %v1305_v27 = vrot.slane %v1304_v58, 2  ;;  %v1325_v25 = vmax.f32 %v1323_v11, %v1324_v63 }
 0x10d   :  { %v1169_v60 = vrot.slane %v1065_v32, 2  ;;  %v1170_v54 = vrot.slane %v1065_v32, 4  ;;  %v1171_v2 = vrot.slane %v1065_v32, 6  ;;  %v1862_v35 = vsel %vm1301_vm11, %v1065_v32, -inf }
 0x10e   :  { %v1863_v8 = vrot.slane %v1862_v35, 4  ;;  %v1312_v42 = vrot.slane %v1311_v4, 2  ;;  %v1319_v18 = vrot.slane %v1318_v28, 2  ;;  %v1306_v21 = vmax.f32 %v1304_v58, %v1305_v27 }
 0x10f   :  { %v1869_v49 = vsel %vm1301_vm11, %v1169_v60, -inf  ;;  %v1876_v20 = vsel %vm1301_vm11, %v1170_v54, -inf  ;;  %v1883_v47 = vsel %vm1301_vm11, %v1171_v2, -inf  ;;  %v1326_v10 = vrot.slane %v1325_v25, 2 }
 0x110   :  { %v1864_v13 = vmax.f32 %v1862_v35, %v1863_v8  ;;  %v1870_v57 = vrot.slane %v1869_v49, 4  ;;  %v1877_v46 = vrot.slane %v1876_v20, 4  ;;  %v1884_v34 = vrot.slane %v1883_v47, 4  ;;  %v1017_v55 = vpop.f32.mrf.mxu3 }
 0x111   :  { %v1313_v37 = vmax.f32 %v1311_v4, %v1312_v42  ;;  %v1320_v15 = vmax.f32 %v1318_v28, %v1319_v18  ;;  %v1046_v56 = vmax.f32 %v968_v52, 0.0  ;;  %v1307_v24 = vrot.slane %v1306_v21, 1 }
 0x112   :  { %v1865_v51 = vrot.slane %v1864_v13, 2  ;;  %v1871_v39 = vmax.f32 %v1869_v49, %v1870_v57  ;;  %v1878_v61 = vmax.f32 %v1876_v20, %v1877_v46  ;;  %v1885_v48 = vmax.f32 %v1883_v47, %v1884_v34  ;;  %v970_v35 = vpop.f32.mrf.mxu0 }
 0x113   :  { %v1112_v22 = vrot.slane %v1046_v56, 2  ;;  %v1113_v44 = vrot.slane %v1046_v56, 4  ;;  %v1114_v40 = vrot.slane %v1046_v56, 6  ;;  %v6191_v19 = vmax.f32 %v1325_v25, %v1326_v10 }
 0x114   :  { %v1866_v53 = vmax.f32 %v1864_v13, %v1865_v51  ;;  %v1872_v1 = vrot.slane %v1871_v39, 2  ;;  %v1879_v31 = vrot.slane %v1878_v61, 2  ;;  %v1886_v9 = vrot.slane %v1885_v48, 2 }
 0x115   :  { %v1330_v11 = vsel %vm1301_vm11, %v1046_v56, -inf  ;;  %v1337_v58 = vsel %vm1301_vm11, %v1112_v22, -inf  ;;  %v1344_v59 = vsel %vm1301_vm11, %v1113_v44, -inf  ;;  %v1314_v41 = vrot.slane %v1313_v37, 1 }
 0x116   :  { %v1867_v23 = vrot.slane %v1866_v53, 1  ;;  %v1873_v5 = vmax.f32 %v1871_v39, %v1872_v1  ;;  %v1880_v43 = vmax.f32 %v1878_v61, %v1879_v31  ;;  %v1887_v29 = vmax.f32 %v1885_v48, %v1886_v9 }
 0x117   :  { %v1321_v32 = vrot.slane %v1320_v15, 1  ;;  %v1351_v28 = vsel %vm1301_vm11, %v1114_v40, -inf  ;;  %v1331_v54 = vrot.slane %v1330_v11, 4  ;;  %v1338_v2 = vrot.slane %v1337_v58, 4 }
 0x118   :  { %v1874_v4 = vrot.slane %v1873_v5, 1  ;;  %v1881_v63 = vrot.slane %v1880_v43, 1  ;;  %v1888_v60 = vrot.slane %v1887_v29, 1  ;;  %v1868_v33 = vmax.f32 %v1866_v53, %v1867_v23  ;;  %v1020_v10 = vpop.f32.mrf.mxu3 }
 0x119   :  { %v1345_v8 = vrot.slane %v1344_v59, 4  ;;  %v1018_v49 = vadd.f32 %v6178_v14, %v1017_v55  ;;  %v6198_v20 = vmax.f32 %v1306_v21, %v1307_v24  ;;  %v1332_v47 = vmax.f32 %v1330_v11, %v1331_v54 }
 0x11a   :  { %v1875_v27 = vmax.f32 %v1873_v5, %v1874_v4  ;;  %v1352_v42 = vrot.slane %v1351_v28, 4  ;;  %v6200_v18 = vmax.f32 %v1313_v37, %v1314_v41  ;;  %v1328_v25 = vrot.slane %v6191_v19, 1 }
 0x11b   :  { %v1066_v52 = vmax.f32 %v1018_v49, 0.0  ;;  %v971_v13 = vadd.f32 %v6178_v14, %v970_v35  ;;  %v6204_v57 = vmax.f32 %v1320_v15, %v1321_v32  ;;  %v1882_v46 = vmax.f32 %v1880_v43, %v1881_v63 }
 0x11c   :  { %v1889_v34 = vmax.f32 %v1887_v29, %v1888_v60  ;;  %v1339_v51 = vmax.f32 %v1337_v58, %v1338_v2  ;;  %v2442_v39 = vsel %vm8063_vm13, %v1875_v27, %v1868_v33  ;;  %v1346_v21 = vmax.f32 %v1344_v59, %v1345_v8 }
 0x11d   :  { %v1172_v61 = vrot.slane %v1066_v52, 2  ;;  %v1173_v48 = vrot.slane %v1066_v52, 4  ;;  %v1333_v56 = vrot.slane %v1332_v47, 2  ;;  %v6207_v37 = vmax.f32 %v1351_v28, %v1352_v42 }
 0x11e   :  { %v1174_v53 = vrot.slane %v1066_v52, 6  ;;  %v1021_v1 = vadd.f32 %v6178_v14, %v1020_v10  ;;  %v1890_v31 = vsel %vm1301_vm11, %v1066_v52, -inf  ;;  %v1047_v55 = vmax.f32 %v971_v13, 0.0 }
 0x11f   :  { %v1897_v15 = vsel %vm1301_vm11, %v1172_v61, -inf  ;;  %v1904_v9 = vsel %vm1301_vm11, %v1173_v48, -inf  ;;  %v2443_v24 = vsel %vm2367_vm5, %v1882_v46, %v2442_v39  ;;  %v1340_v22 = vrot.slane %v1339_v51, 2 }
 0x120   :  { %v1891_v44 = vrot.slane %v1890_v31, 4  ;;  %v1898_v40 = vrot.slane %v1897_v15, 4  ;;  %v1905_v23 = vrot.slane %v1904_v9, 4  ;;  %v1911_v5 = vsel %vm1301_vm11, %v1174_v53, -inf }
 0x121   :  { %v1115_v43 = vrot.slane %v1047_v55, 2  ;;  %v1116_v29 = vrot.slane %v1047_v55, 4  ;;  %v1334_v11 = vmax.f32 %v1332_v47, %v1333_v56  ;;  %v1912_v41 = vrot.slane %v1911_v5, 4 }
 0x122   :  { %v1892_v58 = vmax.f32 %v1890_v31, %v1891_v44  ;;  %v1899_v59 = vmax.f32 %v1897_v15, %v1898_v40  ;;  %v1906_v32 = vmax.f32 %v1904_v9, %v1905_v23  ;;  %v1117_v4 = vrot.slane %v1047_v55, 6 }
 0x123   :  { %v1358_v28 = vsel %vm1301_vm11, %v1047_v55, -inf  ;;  %v1365_v63 = vsel %vm1301_vm11, %v1115_v43, -inf  ;;  %v1913_v2 = vmax.f32 %v1911_v5, %v1912_v41  ;;  %v1347_v33 = vrot.slane %v1346_v21, 2 }
 0x124   :  { %v1893_v60 = vrot.slane %v1892_v58, 2  ;;  %v1900_v54 = vrot.slane %v1899_v59, 2  ;;  %v1359_v35 = vrot.slane %v1358_v28, 4  ;;  %v1366_v27 = vrot.slane %v1365_v63, 4 }
 0x125   :  { %v1372_v8 = vsel %vm1301_vm11, %v1116_v29, -inf  ;;  %v1379_v49 = vsel %vm1301_vm11, %v1117_v4, -inf  ;;  %v2444_v47 = vsel %vm2369_vm8, %v1889_v34, %v2443_v24  ;;  %v6220_v42 = vmax.f32 %v1339_v51, %v1340_v22  ;;  %v972_v29 = vpop.f32.mrf.mxu0 }
 0x126   :  { %v1894_v52 = vmax.f32 %v1892_v58, %v1893_v60  ;;  %v1360_v13 = vmax.f32 %v1358_v28, %v1359_v35  ;;  %v1335_v46 = vrot.slane %v1334_v11, 1  ;;  %v1367_v39 = vmax.f32 %v1365_v63, %v1366_v27 }
 0x127   :  { %v1373_v61 = vrot.slane %v1372_v8, 4  ;;  %v1380_v48 = vrot.slane %v1379_v49, 4  ;;  %v6222_v56 = vmax.f32 %v1899_v59, %v1900_v54  ;;  %v1907_v53 = vrot.slane %v1906_v32, 2 }
 0x128   :  { %v1895_v10 = vrot.slane %v1894_v52, 1  ;;  %v1914_v31 = vrot.slane %v1913_v2, 2  ;;  %v1361_v15 = vrot.slane %v1360_v13, 2  ;;  %v1368_v9 = vrot.slane %v1367_v39, 2 }
 0x129   :  { %v1374_v55 = vmax.f32 %v1372_v8, %v1373_v61  ;;  %v1381_v44 = vmax.f32 %v1379_v49, %v1380_v48  ;;  %v6225_v40 = vmax.f32 %v6191_v19, %v1328_v25  ;;  %v6230_v34 = vsel %vm8063_vm13, %v6200_v18, %v6198_v20  ;;  %v1022_v48 = vpop.f32.mrf.mxu3 }
 0x12a   :  { %v1896_v24 = vmax.f32 %v1894_v52, %v1895_v10  ;;  %v6233_v22 = vmax.f32 %v1346_v21, %v1347_v33  ;;  %v1369_v23 = vmax.f32 %v1367_v39, %v1368_v9  ;;  %v6235_v58 = vmax.f32 %v1334_v11, %v1335_v46 }
 0x12b   :  { %v1375_v5 = vrot.slane %v1374_v55, 2  ;;  %v1382_v43 = vrot.slane %v1381_v44, 2  ;;  %v1067_v25 = vmax.f32 %v1021_v1, 0.0  ;;  %v1902_v20 = vrot.slane %v6222_v56, 1 }
 0x12c   :  { %v6239_v19 = vsel %vm2371_vm9, %v1896_v24, %v2444_v47  ;;  %v1908_v18 = vmax.f32 %v1906_v32, %v1907_v53  ;;  %v1915_v41 = vmax.f32 %v1913_v2, %v1914_v31  ;;  %v1362_v4 = vmax.f32 %v1360_v13, %v1361_v15 }
 0x12d   :  { %8263 = vst [vmem:[#allocation10_spill] sm:$0xff] %v6239_v19  ;;  %v1175_v28 = vrot.slane %v1067_v25, 2  ;;  %v1176_v21 = vrot.slane %v1067_v25, 4  ;;  %v1177_v63 = vrot.slane %v1067_v25, 6  ;;  %v973_v60 = vadd.f32 %v6178_v14, %v972_v29 }
 0x12e   :  { %v1370_v54 = vrot.slane %v1369_v23, 1  ;;  %v1376_v35 = vmax.f32 %v1374_v55, %v1375_v5  ;;  %v1383_v11 = vmax.f32 %v1381_v44, %v1382_v43  ;;  %v1918_v33 = vsel %vm1301_vm11, %v1067_v25, -inf }
 0x12f   :  { %v1919_v27 = vrot.slane %v1918_v33, 4  ;;  %v1925_v8 = vsel %vm1301_vm11, %v1175_v28, -inf  ;;  %v1932_v1 = vsel %vm1301_vm11, %v1176_v21, -inf  ;;  %v1939_v49 = vsel %vm1301_vm11, %v1177_v63, -inf }
 0x130   :  { %v1909_v32 = vrot.slane %v1908_v18, 1  ;;  %v1916_v2 = vrot.slane %v1915_v41, 1  ;;  %v1363_v47 = vrot.slane %v1362_v4, 1  ;;  %v1926_v52 = vrot.slane %v1925_v8, 4 }
 0x131   :  { %v1920_v13 = vmax.f32 %v1918_v33, %v1919_v27  ;;  %v1933_v46 = vrot.slane %v1932_v1, 4  ;;  %v1940_v39 = vrot.slane %v1939_v49, 4  ;;  %v1048_v61 = vmax.f32 %v973_v60, 0.0 }
 0x132   :  { %v1371_v10 = vmax.f32 %v1369_v23, %v1370_v54  ;;  %v1377_v53 = vrot.slane %v1376_v35, 1  ;;  %v1384_v31 = vrot.slane %v1383_v11, 1  ;;  %v1927_v15 = vmax.f32 %v1925_v8, %v1926_v52 }
 0x133   :  { %v1921_v9 = vrot.slane %v1920_v13, 2  ;;  %v1934_v55 = vmax.f32 %v1932_v1, %v1933_v46  ;;  %v1941_v44 = vmax.f32 %v1939_v49, %v1940_v39  ;;  %v1118_v24 = vrot.slane %v1048_v61, 2 }
 0x134   :  { %v1928_v5 = vrot.slane %v1927_v15, 2  ;;  %v1119_v43 = vrot.slane %v1048_v61, 4  ;;  %v1120_v29 = vrot.slane %v1048_v61, 6  ;;  %v1386_v25 = vsel %vm1301_vm11, %v1048_v61, -inf }
 0x135   :  { %v1922_v28 = vmax.f32 %v1920_v13, %v1921_v9  ;;  %v1935_v21 = vrot.slane %v1934_v55, 2  ;;  %v1942_v63 = vrot.slane %v1941_v44, 2  ;;  %v1387_v33 = vrot.slane %v1386_v25, 4 }
 0x136   :  { %v1929_v27 = vmax.f32 %v1927_v15, %v1928_v5  ;;  %v1393_v60 = vsel %vm1301_vm11, %v1118_v24, -inf  ;;  %v1400_v23 = vsel %vm1301_vm11, %v1119_v43, -inf  ;;  %v1023_v54 = vadd.f32 %v6178_v14, %v1022_v48  ;;  %v975_v43 = vpop.f32.mrf.mxu0 }
 0x137   :  { %v1936_v8 = vmax.f32 %v1934_v55, %v1935_v21  ;;  %v1943_v1 = vmax.f32 %v1941_v44, %v1942_v63  ;;  %v1388_v49 = vmax.f32 %v1386_v25, %v1387_v33  ;;  %v1407_v52 = vsel %vm1301_vm11, %v1120_v29, -inf }
 0x138   :  { %v6253_v46 = vmax.f32 %v6222_v56, %v1902_v20  ;;  %v6255_v39 = vmax.f32 %v1908_v18, %v1909_v32  ;;  %v1923_v13 = vrot.slane %v1922_v28, 1  ;;  %v1930_v61 = vrot.slane %v1929_v27, 1  ;;  %v1025_v32 = vpop.f32.mrf.mxu3 }
 0x139   :  { %v6257_v9 = vmax.f32 %v1915_v41, %v1916_v2  ;;  %v1364_v15 = vmax.f32 %v1362_v4, %v1363_v47  ;;  %v1394_v24 = vrot.slane %v1393_v60, 4  ;;  %v1401_v5 = vrot.slane %v1400_v23, 4 }
 0x13a   :  { %8264 = vst [vmem:[#allocation15_spill] sm:$0xff] %v6253_v46  ;;  %v6259_v59 = vmax.f32 %v1376_v35, %v1377_v53  ;;  %v1937_v48 = vrot.slane %v1936_v8, 1  ;;  %v1944_v55 = vrot.slane %v1943_v1, 1  ;;  %v1408_v44 = vrot.slane %v1407_v52, 4 }
 0x13b   :  { %8265 = vst [vmem:[#allocation17_spill] sm:$0xff] %v6255_v39  ;;  %v6261_v25 = vmax.f32 %v1383_v11, %v1384_v31  ;;  %v6264_v56 = vsel %vm8063_vm13, %v1371_v10, %v1364_v15  ;;  %v1389_v20 = vrot.slane %v1388_v49, 2  ;;  %v1068_v18 = vmax.f32 %v1023_v54, 0.0 }
 0x13c   :  { %8266 = vst [vmem:[#allocation7_spill] sm:$0xff] %v6257_v9  ;;  %v1924_v29 = vmax.f32 %v1922_v28, %v1923_v13  ;;  %v1931_v41 = vmax.f32 %v1929_v27, %v1930_v61  ;;  %v976_v4 = vadd.f32 %v6178_v14, %v975_v43  ;;  %v1026_v2 = vadd.f32 %v6178_v14, %v1025_v32 }
 0x13d   :  { %v1395_v47 = vmax.f32 %v1393_v60, %v1394_v24  ;;  %v1402_v35 = vmax.f32 %v1400_v23, %v1401_v5  ;;  %v1178_v53 = vrot.slane %v1068_v18, 2  ;;  %v1179_v21 = vrot.slane %v1068_v18, 4 }
 0x13e   :  { %v1938_v63 = vmax.f32 %v1936_v8, %v1937_v48  ;;  %v1945_v33 = vmax.f32 %v1943_v1, %v1944_v55  ;;  %v6268_v11 = vmax.f32 %v1407_v52, %v1408_v44  ;;  %v1180_v31 = vrot.slane %v1068_v18, 6  ;;  %v977_v3 = vpop.f32.mrf.mxu0 }
 0x13f   :  { %v1390_v10 = vmax.f32 %v1388_v49, %v1389_v20  ;;  %v1946_v15 = vsel %vm1301_vm11, %v1068_v18, -inf  ;;  %v1953_v54 = vsel %vm1301_vm11, %v1178_v53, -inf  ;;  %v1960_v28 = vsel %vm1301_vm11, %v1179_v21, -inf }
 0x140   :  { %v2449_v27 = vsel %vm8063_vm13, %v1931_v41, %v1924_v29  ;;  %v1947_v13 = vrot.slane %v1946_v15, 4  ;;  %v1954_v61 = vrot.slane %v1953_v54, 4  ;;  %v1961_v60 = vrot.slane %v1960_v28, 4 }
 0x141   :  { %v1396_v23 = vrot.slane %v1395_v47, 2  ;;  %v1403_v24 = vrot.slane %v1402_v35, 2  ;;  %v1967_v8 = vsel %vm1301_vm11, %v1180_v31, -inf  ;;  %v1049_v1 = vmax.f32 %v976_v4, 0.0 }
 0x142   :  { %v1948_v52 = vmax.f32 %v1946_v15, %v1947_v13  ;;  %v1955_v5 = vmax.f32 %v1953_v54, %v1954_v61  ;;  %v1962_v43 = vmax.f32 %v1960_v28, %v1961_v60  ;;  %v1968_v49 = vrot.slane %v1967_v8, 4 }
 0x143   :  { %v1121_v48 = vrot.slane %v1049_v1, 2  ;;  %v1122_v55 = vrot.slane %v1049_v1, 4  ;;  %v1123_v44 = vrot.slane %v1049_v1, 6  ;;  %v1414_v20 = vsel %vm1301_vm11, %v1049_v1, -inf }
 0x144   :  { %v1949_v18 = vrot.slane %v1948_v52, 2  ;;  %v1956_v32 = vrot.slane %v1955_v5, 2  ;;  %v1963_v29 = vrot.slane %v1962_v43, 2  ;;  %v1969_v41 = vmax.f32 %v1967_v8, %v1968_v49 }
 0x145   :  { %v1415_v53 = vrot.slane %v1414_v20, 4  ;;  %v1421_v21 = vsel %vm1301_vm11, %v1121_v48, -inf  ;;  %v1428_v51 = vsel %vm1301_vm11, %v1122_v55, -inf  ;;  %v1435_v4 = vsel %vm1301_vm11, %v1123_v44, -inf }
 0x146   :  { %v2450_v31 = vsel %vm2367_vm5, %v1938_v63, %v2449_v27  ;;  %v1391_v15 = vrot.slane %v1390_v10, 1  ;;  %v1950_v54 = vmax.f32 %v1948_v52, %v1949_v18  ;;  %v1970_v28 = vrot.slane %v1969_v41, 2 }
 0x147   :  { %v1416_v13 = vmax.f32 %v1414_v20, %v1415_v53  ;;  %v1422_v61 = vrot.slane %v1421_v21, 4  ;;  %v1429_v60 = vrot.slane %v1428_v51, 4  ;;  %v1436_v1 = vrot.slane %v1435_v4, 4 }
 0x148   :  { %v6280_v45 = vmax.f32 %v1395_v47, %v1396_v23  ;;  %v1957_v36 = vmax.f32 %v1955_v5, %v1956_v32  ;;  %v1964_v8 = vmax.f32 %v1962_v43, %v1963_v29  ;;  %v1069_v49 = vmax.f32 %v1026_v2, 0.0 }
 0x149   :  { %v1951_v30 = vrot.slane %v1950_v54, 1  ;;  %v1417_v48 = vrot.slane %v1416_v13, 2  ;;  %v1423_v50 = vmax.f32 %v1421_v21, %v1422_v61  ;;  %v1430_v55 = vmax.f32 %v1428_v51, %v1429_v60 }
 0x14a   :  { %v6283_v44 = vsel %vm2369_vm8, %v1945_v33, %v2450_v31  ;;  %v6285_v63 = vmax.f32 %v1390_v10, %v1391_v15  ;;  %v6287_v27 = vmax.f32 %v1402_v35, %v1403_v24  ;;  %v1971_v20 = vmax.f32 %v1969_v41, %v1970_v28 }
 0x14b   :  { %v1418_v47 = vmax.f32 %v1416_v13, %v1417_v48  ;;  %v1424_v23 = vrot.slane %v1423_v50, 2  ;;  %v1437_v5 = vmax.f32 %v1435_v4, %v1436_v1  ;;  %v1181_v43 = vrot.slane %v1069_v49, 2 }
 0x14c   :  { %v1182_v18 = vrot.slane %v1069_v49, 4  ;;  %v978_v51 = vadd.f32 %v6178_v14, %v977_v3  ;;  %v6292_v32 = vmax.f32 %v1950_v54, %v1951_v30  ;;  %v1958_v33 = vrot.slane %v1957_v36, 1 }
 0x14d   :  { %v1965_v29 = vrot.slane %v1964_v8, 1  ;;  %v1431_v10 = vrot.slane %v1430_v55, 2  ;;  %v1183_v53 = vrot.slane %v1069_v49, 6  ;;  %v1974_v35 = vsel %vm1301_vm11, %v1069_v49, -inf }
 0x14e   :  { %v1981_v24 = vsel %vm1301_vm11, %v1181_v43, -inf  ;;  %v1988_v41 = vsel %vm1301_vm11, %v1182_v18, -inf  ;;  %v1972_v21 = vrot.slane %v1971_v20, 1  ;;  %v1419_v4 = vrot.slane %v1418_v47, 1 }
 0x14f   :  { %v1425_v31 = vmax.f32 %v1423_v50, %v1424_v23  ;;  %v1438_v15 = vrot.slane %v1437_v5, 2  ;;  %v1975_v28 = vrot.slane %v1974_v35, 4  ;;  %v1982_v13 = vrot.slane %v1981_v24, 4 }
 0x150   :  { %v1989_v61 = vrot.slane %v1988_v41, 4  ;;  %v1995_v30 = vsel %vm1301_vm11, %v1183_v53, -inf  ;;  %v6298_v3 = vmax.f32 %v1957_v36, %v1958_v33  ;;  %v6300_v54 = vmax.f32 %v1964_v8, %v1965_v29  ;;  %v1027_v29 = vpop.f32.mrf.mxu3 }
 0x151   :  { %v1432_v60 = vmax.f32 %v1430_v55, %v1431_v10  ;;  %v1996_v1 = vrot.slane %v1995_v30, 4  ;;  %v1976_v49 = vmax.f32 %v1974_v35, %v1975_v28  ;;  %v1983_v48 = vmax.f32 %v1981_v24, %v1982_v13 }
 0x152   :  { %8267 = vst [vmem:[#allocation16_spill] sm:$0xff] %v6298_v3  ;;  %v1990_v43 = vmax.f32 %v1988_v41, %v1989_v61  ;;  %v1050_v2 = vmax.f32 %v978_v51, 0.0  ;;  %v6302_v18 = vmax.f32 %v1971_v20, %v1972_v21  ;;  %v1420_v52 = vmax.f32 %v1418_v47, %v1419_v4 }
 0x153   :  { %8268 = vst [vmem:[#allocation18_spill] sm:$0xff] %v6300_v54  ;;  %v1439_v50 = vmax.f32 %v1437_v5, %v1438_v15  ;;  %v1997_v23 = vmax.f32 %v1995_v30, %v1996_v1  ;;  %v1426_v6 = vrot.slane %v1425_v31, 1  ;;  %v1977_v7 = vrot.slane %v1976_v49, 2 }
 0x154   :  { %8269 = vst [vmem:[#allocation11_spill] sm:$0xff] %v6302_v18  ;;  %v1984_v62 = vrot.slane %v1983_v48, 2  ;;  %v1991_v9 = vrot.slane %v1990_v43, 2  ;;  %v1433_v53 = vrot.slane %v1432_v60, 1  ;;  %v1124_v33 = vrot.slane %v1050_v2, 2 }
 0x155   :  { %v1998_v36 = vrot.slane %v1997_v23, 2  ;;  %v1125_v8 = vrot.slane %v1050_v2, 4  ;;  %v1978_v55 = vmax.f32 %v1976_v49, %v1977_v7  ;;  %v1126_v24 = vrot.slane %v1050_v2, 6  ;;  %v980_v49 = vpop.f32.mrf.mxu0 }
 0x156   :  { %v1985_v10 = vmax.f32 %v1983_v48, %v1984_v62  ;;  %v1992_v35 = vmax.f32 %v1990_v43, %v1991_v9  ;;  %v1440_v41 = vrot.slane %v1439_v50, 1  ;;  %v1442_v20 = vsel %vm1301_vm11, %v1050_v2, -inf }
 0x157   :  { %v1449_v47 = vsel %vm1301_vm11, %v1124_v33, -inf  ;;  %v1456_v5 = vsel %vm1301_vm11, %v1125_v8, -inf  ;;  %v1979_v51 = vrot.slane %v1978_v55, 1  ;;  %v1443_v4 = vrot.slane %v1442_v20, 4 }
 0x158   :  { %v1986_v21 = vrot.slane %v1985_v10, 1  ;;  %v1028_v15 = vadd.f32 %v6178_v14, %v1027_v29  ;;  %v1427_v28 = vmax.f32 %v1425_v31, %v1426_v6  ;;  %v1450_v13 = vrot.slane %v1449_v47, 4 }
 0x159   :  { %v1457_v61 = vrot.slane %v1456_v5, 4  ;;  %v1463_v7 = vsel %vm1301_vm11, %v1126_v24, -inf  ;;  %v1980_v62 = vmax.f32 %v1978_v55, %v1979_v51  ;;  %v1993_v9 = vrot.slane %v1992_v35, 1 }
 0x15a   :  { %v1999_v30 = vmax.f32 %v1997_v23, %v1998_v36  ;;  %v1444_v1 = vmax.f32 %v1442_v20, %v1443_v4  ;;  %v1987_v2 = vmax.f32 %v1985_v10, %v1986_v21  ;;  %v1451_v48 = vmax.f32 %v1449_v47, %v1450_v13 }
 0x15b   :  { %v1458_v43 = vmax.f32 %v1456_v5, %v1457_v61  ;;  %v1464_v33 = vrot.slane %v1463_v7, 4  ;;  %v6312_v8 = vsel %vm2371_vm9, %v6292_v32, %v6283_v44  ;;  %v1434_v29 = vmax.f32 %v1432_v60, %v1433_v53 }
 0x15c   :  { %8270 = vst [vmem:[#allocation19_spill] sm:$0xff] %v6312_v8  ;;  %v1445_v6 = vrot.slane %v1444_v1, 2  ;;  %v1070_v31 = vmax.f32 %v1028_v15, 0.0  ;;  %v6314_v18 = vmax.f32 %v1439_v50, %v1440_v41  ;;  %v2386_v55 = vsel %vm8063_vm13, %v1427_v28, %v1420_v52 }
 0x15d   :  { %v1465_v24 = vmax.f32 %v1463_v7, %v1464_v33  ;;  %v981_v23 = vadd.f32 %v6178_v14, %v980_v49  ;;  %v1994_v36 = vmax.f32 %v1992_v35, %v1993_v9  ;;  %v2000_v10 = vrot.slane %v1999_v30, 1 }
 0x15e   :  { %v1184_v20 = vrot.slane %v1070_v31, 2  ;;  %v1185_v47 = vrot.slane %v1070_v31, 4  ;;  %v2456_v5 = vsel %vm8063_vm13, %v1987_v2, %v1980_v62  ;;  %v1452_v51 = vrot.slane %v1451_v48, 2 }
 0x15f   :  { %v1459_v21 = vrot.slane %v1458_v43, 2  ;;  %v1186_v44 = vrot.slane %v1070_v31, 6  ;;  %v1446_v32 = vmax.f32 %v1444_v1, %v1445_v6  ;;  %v2002_v60 = vsel %vm1301_vm11, %v1070_v31, -inf }
 0x160   :  { %v2009_v50 = vsel %vm1301_vm11, %v1184_v20, -inf  ;;  %v2016_v53 = vsel %vm1301_vm11, %v1185_v47, -inf  ;;  %v2387_v52 = vsel %vm2367_vm5, %v1434_v29, %v2386_v55  ;;  %v1466_v41 = vrot.slane %v1465_v24, 2 }
 0x161   :  { %v2003_v4 = vrot.slane %v2002_v60, 4  ;;  %v1051_v35 = vmax.f32 %v981_v23, 0.0  ;;  %v2001_v15 = vmax.f32 %v1999_v30, %v2000_v10  ;;  %v2010_v28 = vrot.slane %v2009_v50, 4 }
 0x162   :  { %v2017_v13 = vrot.slane %v2016_v53, 4  ;;  %v2023_v61 = vsel %vm1301_vm11, %v1186_v44, -inf  ;;  %v2457_v7 = vsel %vm2367_vm5, %v1994_v36, %v2456_v5  ;;  %v1453_v62 = vmax.f32 %v1451_v48, %v1452_v51 }
 0x163   :  { %v1460_v9 = vmax.f32 %v1458_v43, %v1459_v21  ;;  %v2004_v1 = vmax.f32 %v2002_v60, %v2003_v4  ;;  %v1447_v49 = vrot.slane %v1446_v32, 1  ;;  %v2011_v2 = vmax.f32 %v2009_v50, %v2010_v28 }
 0x164   :  { %v2018_v33 = vmax.f32 %v2016_v53, %v2017_v13  ;;  %v2024_v6 = vrot.slane %v2023_v61, 4  ;;  %v1467_v31 = vmax.f32 %v1465_v24, %v1466_v41  ;;  %v1127_v29 = vrot.slane %v1051_v35, 2 }
 0x165   :  { %v2005_v20 = vrot.slane %v2004_v1, 2  ;;  %v1128_v55 = vrot.slane %v1051_v35, 4  ;;  %v2012_v47 = vrot.slane %v2011_v2, 2  ;;  %v1129_v10 = vrot.slane %v1051_v35, 6 }
 0x166   :  { %v2019_v23 = vrot.slane %v2018_v33, 2  ;;  %v2025_v30 = vmax.f32 %v2023_v61, %v2024_v6  ;;  %v1470_v44 = vsel %vm1301_vm11, %v1051_v35, -inf  ;;  %v1477_v36 = vsel %vm1301_vm11, %v1127_v29, -inf }
 0x167   :  { %v2006_v54 = vmax.f32 %v2004_v1, %v2005_v20  ;;  %v1484_v48 = vsel %vm1301_vm11, %v1128_v55, -inf  ;;  %v2013_v43 = vmax.f32 %v2011_v2, %v2012_v47  ;;  %v1471_v21 = vrot.slane %v1470_v44, 4 }
 0x168   :  { %v2020_v5 = vmax.f32 %v2018_v33, %v2019_v23  ;;  %v2026_v51 = vrot.slane %v2025_v30, 2  ;;  %v1478_v24 = vrot.slane %v1477_v36, 4  ;;  %v1485_v50 = vrot.slane %v1484_v48, 4 }
 0x169   :  { %v2007_v60 = vrot.slane %v2006_v54, 1  ;;  %v1491_v53 = vsel %vm1301_vm11, %v1129_v10, -inf  ;;  %v1454_v41 = vrot.slane %v1453_v62, 1  ;;  %v1461_v4 = vrot.slane %v1460_v9, 1 }
 0x16a   :  { %v2027_v28 = vmax.f32 %v2025_v30, %v2026_v51  ;;  %v1472_v13 = vmax.f32 %v1470_v44, %v1471_v21  ;;  %v1448_v61 = vmax.f32 %v1446_v32, %v1447_v49  ;;  %v1479_v1 = vmax.f32 %v1477_v36, %v1478_v24 }
 0x16b   :  { %v1486_v35 = vmax.f32 %v1484_v48, %v1485_v50  ;;  %v1492_v6 = vrot.slane %v1491_v53, 4  ;;  %v1468_v20 = vrot.slane %v1467_v31, 1  ;;  %v2014_v29 = vrot.slane %v2013_v43, 1 }
 0x16c   :  { %v2021_v55 = vrot.slane %v2020_v5, 1  ;;  %v1473_v2 = vrot.slane %v1472_v13, 2  ;;  %v2388_v33 = vsel %vm2369_vm8, %v6314_v18, %v2387_v52  ;;  %v2008_v47 = vmax.f32 %v2006_v54, %v2007_v60 }
 0x16d   :  { %v2028_v23 = vrot.slane %v2027_v28, 1  ;;  %v1480_v3 = vrot.slane %v1479_v1, 2  ;;  %v2458_v10 = vsel %vm2369_vm8, %v2001_v15, %v2457_v7  ;;  %v6332_v8 = vmax.f32 %v1453_v62, %v1454_v41 }
 0x16e   :  { %v6334_v30 = vmax.f32 %v1460_v9, %v1461_v4  ;;  %v1487_v32 = vrot.slane %v1486_v35, 2  ;;  %v6336_v49 = vmax.f32 %v1472_v13, %v1473_v2  ;;  %v1493_v44 = vmax.f32 %v1491_v53, %v1492_v6 }
 0x16f   :  { %v1349_v36 = vrot.slane %v6233_v22, 1  ;;  %v8271_v48 = vrot.slane %v6207_v37, 2  ;;  %v6342_v18 = vmax.f32 %v1467_v31, %v1468_v20  ;;  %v6345_v54 = vsel %vm2371_vm9, %v1448_v61, %v2388_v33 }
 0x170   :  { %v6347_v52 = vmax.f32 %v2013_v43, %v2014_v29  ;;  %v6349_v15 = vmax.f32 %v2020_v5, %v2021_v55  ;;  %v6351_v7 = vmax.f32 %v2027_v28, %v2028_v23  ;;  %v6354_v62 = vsel %vm2371_vm9, %v2008_v47, %v2458_v10 }
 0x171   :  { %v1355_v51 = vmax.f32 %v6207_v37, %v8271_v48  ;;  %8275 = vst [vmem:[#allocation26_spill] sm:$0xff] %v6354_v62  ;;  %v1481_v9 = vmax.f32 %v1479_v1, %v1480_v3  ;;  %v1405_v21 = vrot.slane %v6287_v27, 1  ;;  %v6357_v60 = vmax.f32 %v1486_v35, %v1487_v32  ;;  %v1030_v1 = vpop.f32.mrf.mxu3 }
 0x172   :  { %8272 = vst [vmem:[#allocation20_spill] sm:$0xff] %v6347_v52  ;;  %v8276_v37 = vrot.slane %v6220_v42, 1  ;;  %v8277_v24 = vrot.slane %v6268_v11, 2  ;;  %v2368_v5 = vsel %vm2367_vm5, %v6204_v57, %v6230_v34  ;;  %v1475_v50 = vrot.slane %v6336_v49, 1 }
 0x173   :  { %8273 = vst [vmem:[#allocation25_spill] sm:$0xff] %v6349_v15  ;;  %v1494_v53 = vrot.slane %v1493_v44, 2  ;;  %v1350_v3 = vmax.f32 %v6233_v22, %v1349_v36  ;;  %v1356_v41 = vrot.slane %v1355_v51, 1  ;;  %v8278_v4 = vrot.slane %v6280_v45, 1 }
 0x174   :  { %8274 = vst [vmem:[#allocation12_spill] sm:$0xff] %v6351_v7  ;;  %v1343_v31 = vmax.f32 %v6220_v42, %v8276_v37  ;;  %v1411_v43 = vmax.f32 %v6268_v11, %v8277_v24  ;;  %v2370_v42 = vsel %vm2369_vm8, %v6225_v40, %v2368_v5  ;;  %v982_v11 = vpop.f32.mrf.mxu0  ;;  %v1482_v13 = vrot.slane %v1481_v9, 1 }
 0x175   :  { %v1399_v28 = vmax.f32 %v6280_v45, %v8278_v4  ;;  %v1406_v61 = vmax.f32 %v6287_v27, %v1405_v21  ;;  %v2372_v34 = vsel %vm2371_vm9, %v6235_v58, %v2370_v42  ;;  %v2380_v45 = vsel %vm2367_vm5, %v6259_v59, %v6264_v56 }
 0x176   :  { %v1412_v57 = vrot.slane %v1411_v43, 1  ;;  %v2374_v22 = vsel %vm2373_vm10, %v1343_v31, %v2372_v34  ;;  %v1031_v40 = vadd.f32 %v6178_v14, %v1030_v1  ;;  %v1357_v35 = vmax.f32 %v1355_v51, %v1356_v41 }
 0x177   :  { %v2376_v6 = vsel %vm8068_vm14, %v1350_v3, %v2374_v22  ;;  %v2381_v27 = vsel %vm2369_vm8, %v6261_v25, %v2380_v45  ;;  %v983_v20 = vadd.f32 %v6178_v14, %v982_v11  ;;  %v1489_v58 = vrot.slane %v6357_v60, 1 }
 0x178   :  { %v1495_v29 = vmax.f32 %v1493_v44, %v1494_v53  ;;  %v2382_v55 = vsel %vm2371_vm9, %v6285_v63, %v2381_v27  ;;  %v1071_v2 = vmax.f32 %v1031_v40, 0.0  ;;  %v1413_v33 = vmax.f32 %v1411_v43, %v1412_v57 }
 0x179   :  { %v6391_v59 = vsel %vm8067_vm15, %v1357_v35, %v2376_v6  ;;  %v2383_v56 = vsel %vm2373_vm10, %v1399_v28, %v2382_v55  ;;  %v1052_v47 = vmax.f32 %v983_v20, 0.0  ;;  %v1483_v48 = vmax.f32 %v1481_v9, %v1482_v13  ;;  %v1032_v1 = vpop.f32.mrf.mxu3 }
 0x17a   :  { %v2384_v23 = vsel %vm8068_vm14, %v1406_v61, %v2383_v56  ;;  %v1187_v10 = vrot.slane %v1071_v2, 2  ;;  %v1188_v25 = vrot.slane %v1071_v2, 4  ;;  %v1189_v32 = vrot.slane %v1071_v2, 6 }
 0x17b   :  { %v6396_v14 = vsel %vm8067_vm15, %v1413_v33, %v2384_v23  ;;  %v2030_v44 = vsel %vm1301_vm11, %v1071_v2, -inf  ;;  %v1130_v36 = vrot.slane %v1052_v47, 2  ;;  %v1131_v63 = vrot.slane %v1052_v47, 4  ;;  %v6415_v23 = vld [vmem:[%s7962_s2] ss:$0 sm:$0xff] }
 0x17c   :  { %v1496_v51 = vrot.slane %v1495_v29, 1  ;;  %v4703_v21 = vpack.i.bf16 %v6396_v14, %v6391_v59  ;;  %v2031_v37 = vrot.slane %v2030_v44, 4  ;;  %v2037_v31 = vsel %vm1301_vm11, %v1187_v10, -inf  ;;  %v985_v6 = vpop.f32.mrf.mxu0 }
 0x17d   :  { %v2044_v24 = vsel %vm1301_vm11, %v1188_v25, -inf  ;;  %v2051_v43 = vsel %vm1301_vm11, %v1189_v32, -inf  ;;  %v1132_v5 = vrot.slane %v1052_v47, 6  ;;  %v2038_v3 = vrot.slane %v2037_v31, 4 }
 0x17e   :  { %4704 = vrot.lane.b32.xlu2 %v4703_v21, %s4858_s29  ;;  %v2032_v53 = vmax.f32 %v2030_v44, %v2031_v37  ;;  %v2045_v41 = vrot.slane %v2044_v24, 4  ;;  %v2052_v4 = vrot.slane %v2051_v43, 4  ;;  %v1498_v9 = vsel %vm1301_vm11, %v1052_v47, -inf }
 0x17f   :  { %v1505_v28 = vsel %vm1301_vm11, %v1130_v36, -inf  ;;  %v1512_v42 = vsel %vm1301_vm11, %v1131_v63, -inf  ;;  %v1519_v11 = vsel %vm1301_vm11, %v1132_v5, -inf  ;;  %v2039_v61 = vmax.f32 %v2037_v31, %v2038_v3 }
 0x180   :  { %v2033_v13 = vrot.slane %v2032_v53, 2  ;;  %v2046_v57 = vmax.f32 %v2044_v24, %v2045_v41  ;;  %v2053_v34 = vmax.f32 %v2051_v43, %v2052_v4  ;;  %v1499_v22 = vrot.slane %v1498_v9, 4 }
 0x181   :  { %v1506_v45 = vrot.slane %v1505_v28, 4  ;;  %v1513_v40 = vrot.slane %v1512_v42, 4  ;;  %v1520_v35 = vrot.slane %v1519_v11, 4  ;;  %v2040_v20 = vrot.slane %v2039_v61, 2 }
 0x182   :  { %v2034_v27 = vmax.f32 %v2032_v53, %v2033_v13  ;;  %v2047_v55 = vrot.slane %v2046_v57, 2  ;;  %v2054_v2 = vrot.slane %v2053_v34, 2  ;;  %v1476_v33 = vmax.f32 %v6336_v49, %v1475_v50 }
 0x183   :  { %v1500_v56 = vmax.f32 %v1498_v9, %v1499_v22  ;;  %v1507_v47 = vmax.f32 %v1505_v28, %v1506_v45  ;;  %v1033_v10 = vadd.f32 %v6415_v23, %v1032_v1  ;;  %v6419_v25 = vmax.f32 %v6357_v60, %v1489_v58 }
 0x184   :  { %v1514_v32 = vmax.f32 %v1512_v42, %v1513_v40  ;;  %v6421_v44 = vmax.f32 %v1519_v11, %v1520_v35  ;;  %v986_v36 = vadd.f32 %v6415_v23, %v985_v6  ;;  %v6424_v63 = vmax.f32 %v1495_v29, %v1496_v51 }
 0x185   :  { %v6427_v49 = vsel %vm8063_vm13, %v1483_v48, %v1476_v33  ;;  %v2035_v50 = vrot.slane %v2034_v27, 1  ;;  %v2041_v21 = vmax.f32 %v2039_v61, %v2040_v20  ;;  %v8041_v31 = vrot.slane %v6391_v59, 1 }
 0x186   :  { %v2048_v24 = vmax.f32 %v2046_v57, %v2047_v55  ;;  %v2055_v43 = vmax.f32 %v2053_v34, %v2054_v2  ;;  %v1501_v58 = vrot.slane %v1500_v56, 2  ;;  %v1508_v5 = vrot.slane %v1507_v47, 2 }
 0x187   :  { %v1072_v53 = vmax.f32 %v1033_v10, 0.0  ;;  %v2597_v3 = vrot.slane %v6396_v14, 1  ;;  %v1515_v29 = vrot.slane %v1514_v32, 2  ;;  %v1053_v48 = vmax.f32 %v986_v36, 0.0 }
 0x188   :  { %v2036_v41 = vmax.f32 %v2034_v27, %v2035_v50  ;;  %v2042_v4 = vrot.slane %v2041_v21, 1  ;;  %v2049_v42 = vrot.slane %v2048_v24, 1  ;;  %v2056_v11 = vrot.slane %v2055_v43, 1 }
 0x189   :  { %v1190_v9 = vrot.slane %v1072_v53, 2  ;;  %v1191_v28 = vrot.slane %v1072_v53, 4  ;;  %v2058_v13 = vsel %vm1301_vm11, %v1072_v53, -inf  ;;  %v1133_v61 = vrot.slane %v1053_v48, 2 }
 0x18a   :  { %v6435_v57 = vmax.f32 %v1500_v56, %v1501_v58  ;;  %v6437_v34 = vmax.f32 %v1507_v47, %v1508_v5  ;;  %v2059_v1 = vrot.slane %v2058_v13, 4  ;;  %v1192_v45 = vrot.slane %v1072_v53, 6 }
 0x18b   :  { %v2065_v22 = vsel %vm1301_vm11, %v1190_v9, -inf  ;;  %v2072_v35 = vsel %vm1301_vm11, %v1191_v28, -inf  ;;  %v1134_v6 = vrot.slane %v1053_v48, 4  ;;  %v6441_v27 = vmax.f32 %v1514_v32, %v1515_v29 }
 0x18c   :  { %v2066_v40 = vrot.slane %v2065_v22, 4  ;;  %v2060_v20 = vmax.f32 %v2058_v13, %v2059_v1  ;;  %v1135_v55 = vrot.slane %v1053_v48, 6  ;;  %v1526_v2 = vsel %vm1301_vm11, %v1053_v48, -inf }
 0x18d   :  { %v2043_v33 = vmax.f32 %v2041_v21, %v2042_v4  ;;  %v6444_v10 = vmax.f32 %v2048_v24, %v2049_v42  ;;  %v1527_v56 = vrot.slane %v1526_v2, 4  ;;  %v1533_v47 = vsel %vm1301_vm11, %v1133_v61, -inf }
 0x18e   :  { %v6447_v36 = vmax.f32 %v2055_v43, %v2056_v11  ;;  %v2073_v50 = vrot.slane %v2072_v35, 4  ;;  %v1534_v58 = vrot.slane %v1533_v47, 4  ;;  %v1540_v5 = vsel %vm1301_vm11, %v1134_v6, -inf }
 0x18f   :  { %8279 = vst [vmem:[#allocation27_spill] sm:$0xff] %v6444_v10  ;;  %v2067_v53 = vmax.f32 %v2065_v22, %v2066_v40  ;;  %v2079_v32 = vsel %vm1301_vm11, %v1192_v45, -inf  ;;  %v1528_v29 = vmax.f32 %v1526_v2, %v1527_v56  ;;  %v1541_v9 = vrot.slane %v1540_v5, 4 }
 0x190   :  { %8280 = vst [vmem:[#allocation28_spill] sm:$0xff] %v6447_v36  ;;  %v2061_v48 = vrot.slane %v2060_v20, 2  ;;  %v1535_v21 = vmax.f32 %v1533_v47, %v1534_v58  ;;  %v1547_v24 = vsel %vm1301_vm11, %v1135_v55, -inf  ;;  %v6454_v4 = vsel %vm8063_vm13, %v2043_v33, %v2036_v41 }
 0x191   :  { %8281 = vst [vmem:[#allocation31_spill] sm:$0xff] %v6454_v4  ;;  %v1529_v42 = vrot.slane %v1528_v29, 2  ;;  %v1542_v11 = vmax.f32 %v1540_v5, %v1541_v9  ;;  %v2080_v13 = vrot.slane %v2079_v32, 4  ;;  %v1548_v1 = vrot.slane %v1547_v24, 4 }
 0x192   :  { %v1536_v61 = vrot.slane %v1535_v21, 2  ;;  %v8042_v22 = vand.u32 3, %v4951_v12  ;;  %v2068_v45 = vrot.slane %v2067_v53, 2  ;;  %v6458_v40 = vmax.f32 %v2072_v35, %v2073_v50 }
 0x193   :  { %v1530_v6 = vmax.f32 %v1528_v29, %v1529_v42  ;;  %v1543_v2 = vrot.slane %v1542_v11, 2  ;;  %v6460_v56 = vmax.f32 %v2060_v20, %v2061_v48  ;;  %v1549_v47 = vmax.f32 %v1547_v24, %v1548_v1  ;;  %v1005_v29 = vpop.f32.mrf.mxu2 }
 0x194   :  { %v1537_v55 = vmax.f32 %v1535_v21, %v1536_v61  ;;  %v2390_v41 = vsel %vm2373_vm10, %v6332_v8, %v6345_v54  ;;  %v8043_v5 = vand.u32 3, %v4965_v16  ;;  %vm6474_vm1 = vcmp.eq.s32.totalorder %v8042_v22, 3 }
 0x195   :  { %v1531_v33 = vrot.slane %v1530_v6, 1  ;;  %v1544_v58 = vmax.f32 %v1542_v11, %v1543_v2  ;;  %v2391_v9 = vsel %vm8068_vm14, %v6334_v30, %v2390_v41  ;;  %v1550_v35 = vrot.slane %v1549_v47, 2  ;;  %v1035_v11 = vpop.f32.mrf.mxu3 }
 0x196   :  { %v1538_v37 = vrot.slane %v1537_v55, 1  ;;  %v6470_v50 = vsel %vm8067_vm15, %v6342_v18, %v2391_v9  ;;  %vm6480_vm2 = vcmp.eq.s32.totalorder %v8043_v5, 3  ;;  %v2626_v18 = vsel %vm8066_vm0, %v8041_v31, %v2597_v3 }
 0x197   :  { %8282 = vst [vmem:[#allocation32_spill] sm:$0xff] %v6470_v50  ;;  %v1545_v8 = vrot.slane %v1544_v58, 1  ;;  %v8044_v30 = vrot.slane %v6470_v50, 1  ;;  %v6491_v48 = vmax.f32 %v2067_v53, %v2068_v45  ;;  %v6494_v24 = vmax.f32 %v2079_v32, %v2080_v13  ;;  %v987_v45 = vpop.f32.mrf.mxu0 }
 0x198   :  { %v1006_v42 = vadd.f32 %v6415_v23, %v1005_v29  ;;  %v1539_v1 = vmax.f32 %v1537_v55, %v1538_v37  ;;  %v1036_v53 = vadd.f32 %v6415_v23, %v1035_v11  ;;  %v1532_v41 = vmax.f32 %v1530_v6, %v1531_v33 }
 0x199   :  { %8287 = vst [vmem:[#allocation33_spill] sm:$0xff] %v6491_v48  ;;  %v2625_v2 = vsel %vm8066_vm0, %v2597_v3, %v8044_v30  ;;  %v2660_v32 = vsel %vm6474_vm1, 0.0, %v2626_v18  ;;  %v1546_v29 = vmax.f32 %v1544_v58, %v1545_v8  ;;  %v1551_v37 = vmax.f32 %v1549_v47, %v1550_v35 }
 0x19a   :  { %8288 = vst [vmem:[#allocation34_spill] sm:$0xff] %v6494_v24  ;;  %v2661_v13 = vsel %vm6480_vm2, 0.0, %v2625_v2  ;;  %v1061_v9 = vmax.f32 %v1006_v42, 0.0  ;;  %v1073_v31 = vmax.f32 %v1036_v53, 0.0  ;;  %v988_v3 = vadd.f32 %v6415_v23, %v987_v45 }
 0x19b   :  { %v4708_v55 = vpack.i.bf16 %v2661_v13, %v2660_v32  ;;  %v2400_v11 = vsel %vm8063_vm13, %v1539_v1, %v1532_v41 }
 0x19c   :  { %v1157_v22 = vrot.slane %v1061_v9, 2  ;;  %v1158_v60 = vrot.slane %v1061_v9, 4  ;;  %v1159_v5 = vrot.slane %v1061_v9, 6  ;;  %v1750_v6 = vsel %vm1301_vm11, %v1061_v9, -inf }
 0x19d   :  { %4709 = vrot.lane.b32.xlu0 %v4708_v55, %s4856_s17  ;;  %v1193_v33 = vrot.slane %v1073_v31, 2  ;;  %v1194_v20 = vrot.slane %v1073_v31, 4  ;;  %v1751_v54 = vrot.slane %v1750_v6, 4  ;;  %v1195_v58 = vrot.slane %v1073_v31, 6 }
 0x19e   :  { %v1757_v18 = vsel %vm1301_vm11, %v1157_v22, -inf  ;;  %v1764_v47 = vsel %vm1301_vm11, %v1158_v60, -inf  ;;  %v1771_v42 = vsel %vm1301_vm11, %v1159_v5, -inf  ;;  %v2086_v2 = vsel %vm1301_vm11, %v1073_v31, -inf }
 0x19f   :  { %v1758_v35 = vrot.slane %v1757_v18, 4  ;;  %v1765_v8 = vrot.slane %v1764_v47, 4  ;;  %v1752_v53 = vmax.f32 %v1750_v6, %v1751_v54  ;;  %v1772_v1 = vrot.slane %v1771_v42, 4 }
 0x1a0   :  { %v2087_v45 = vrot.slane %v2086_v2, 4  ;;  %v2093_v41 = vsel %vm1301_vm11, %v1193_v33, -inf  ;;  %v2100_v55 = vsel %vm1301_vm11, %v1194_v20, -inf  ;;  %v2107_v5 = vsel %vm1301_vm11, %v1195_v58, -inf }
 0x1a1   :  { %v1759_v32 = vmax.f32 %v1757_v18, %v1758_v35  ;;  %v1766_v13 = vmax.f32 %v1764_v47, %v1765_v8  ;;  %v2094_v9 = vrot.slane %v2093_v41, 4  ;;  %v1753_v22 = vrot.slane %v1752_v53, 2 }
 0x1a2   :  { %v1773_v30 = vmax.f32 %v1771_v42, %v1772_v1  ;;  %v2088_v60 = vmax.f32 %v2086_v2, %v2087_v45  ;;  %v2101_v51 = vrot.slane %v2100_v55, 4  ;;  %v1552_v31 = vrot.slane %v1551_v37, 1 }
 0x1a3   :  { %v1760_v43 = vrot.slane %v1759_v32, 2  ;;  %v1767_v61 = vrot.slane %v1766_v13, 2  ;;  %v2095_v21 = vmax.f32 %v2093_v41, %v2094_v9  ;;  %v1754_v6 = vmax.f32 %v1752_v53, %v1753_v22 }
 0x1a4   :  { %v2089_v54 = vrot.slane %v2088_v60, 2  ;;  %v2102_v28 = vmax.f32 %v2100_v55, %v2101_v51  ;;  %v1774_v33 = vrot.slane %v1773_v30, 2  ;;  %v2108_v47 = vrot.slane %v2107_v5, 4 }
 0x1a5   :  { %v1761_v36 = vmax.f32 %v1759_v32, %v1760_v43  ;;  %v2096_v18 = vrot.slane %v2095_v21, 2  ;;  %v8289_v35 = vrot.slane %v6435_v57, 1  ;;  %v2401_v8 = vsel %vm2367_vm5, %v1546_v29, %v2400_v11 }
 0x1a6   :  { %v6526_v42 = vmax.f32 %v1766_v13, %v1767_v61  ;;  %v1054_v2 = vmax.f32 %v988_v3, 0.0  ;;  %v1755_v1 = vrot.slane %v1754_v6, 1  ;;  %v2090_v58 = vmax.f32 %v2088_v60, %v2089_v54 }
 0x1a7   :  { %v6523_v20 = vmax.f32 %v6435_v57, %v8289_v35  ;;  %v2103_v45 = vrot.slane %v2102_v28, 2  ;;  %v2109_v53 = vmax.f32 %v2107_v5, %v2108_v47  ;;  %v8290_v51 = vrot.slane %v6458_v40, 2 }
 0x1a8   :  { %v1553_v32 = vmax.f32 %v1551_v37, %v1552_v31  ;;  %v2097_v9 = vmax.f32 %v2095_v21, %v2096_v18  ;;  %v8292_v57 = vrot.slane %v6460_v56, 1  ;;  %v1762_v3 = vrot.slane %v1761_v36, 1 }
 0x1a9   :  { %v6531_v43 = vmax.f32 %v6458_v40, %v8290_v51  ;;  %v1775_v11 = vmax.f32 %v1773_v30, %v1774_v33  ;;  %v1769_v55 = vrot.slane %v6526_v42, 1  ;;  %v2110_v40 = vrot.slane %v2109_v53, 2 }
 0x1aa   :  { %v6537_v29 = vmax.f32 %v6460_v56, %v8292_v57  ;;  %v6541_v13 = vsel %vm2369_vm8, %v1553_v32, %v2401_v8  ;;  %v1136_v22 = vrot.slane %v1054_v2, 2  ;;  %v1756_v60 = vmax.f32 %v1754_v6, %v1755_v1  ;;  %v1007_v8 = vpop.f32.mrf.mxu2 }
 0x1ab   :  { %8291 = vst [vmem:[#allocation35_spill] sm:$0xff] %v6531_v43  ;;  %v2091_v5 = vrot.slane %v2090_v58, 1  ;;  %v2104_v37 = vmax.f32 %v2102_v28, %v2103_v45  ;;  %v1137_v21 = vrot.slane %v1054_v2, 4  ;;  %v2098_v31 = vrot.slane %v2097_v9, 1  ;;  %v1037_v28 = vpop.f32.mrf.mxu3 }
 0x1ac   :  { %8293 = vst [vmem:[#allocation36_spill] sm:$0xff] %v6537_v29  ;;  %v1138_v54 = vrot.slane %v1054_v2, 6  ;;  %v1554_v56 = vsel %vm1301_vm11, %v1054_v2, -inf  ;;  %v1561_v18 = vsel %vm1301_vm11, %v1136_v22, -inf  ;;  %v1763_v47 = vmax.f32 %v1761_v36, %v1762_v3 }
 0x1ad   :  { %v1776_v35 = vrot.slane %v1775_v11, 1  ;;  %v1555_v30 = vrot.slane %v1554_v56, 4  ;;  %v1562_v33 = vrot.slane %v1561_v18, 4  ;;  %v2111_v51 = vmax.f32 %v2109_v53, %v2110_v40 }
 0x1ae   :  { %v1568_v32 = vsel %vm1301_vm11, %v1137_v21, -inf  ;;  %v1575_v57 = vsel %vm1301_vm11, %v1138_v54, -inf  ;;  %v1008_v6 = vadd.f32 %v6415_v23, %v1007_v8  ;;  %v2092_v1 = vmax.f32 %v2090_v58, %v2091_v5 }
 0x1af   :  { %v1556_v45 = vmax.f32 %v1554_v56, %v1555_v30  ;;  %v1563_v41 = vmax.f32 %v1561_v18, %v1562_v33  ;;  %v1569_v61 = vrot.slane %v1568_v32, 4  ;;  %v2099_v2 = vmax.f32 %v2097_v9, %v2098_v31 }
 0x1b0   :  { %v2105_v29 = vrot.slane %v2104_v37, 1  ;;  %v1576_v22 = vrot.slane %v1575_v57, 4  ;;  %v1062_v36 = vmax.f32 %v1008_v6, 0.0  ;;  %v1038_v53 = vadd.f32 %v6415_v23, %v1037_v28 }
 0x1b1   :  { %v1557_v3 = vrot.slane %v1556_v45, 2  ;;  %v1564_v10 = vrot.slane %v1563_v41, 2  ;;  %v1570_v4 = vmax.f32 %v1568_v32, %v1569_v61  ;;  %v2112_v40 = vrot.slane %v2111_v51, 1 }
 0x1b2   :  { %v1577_v21 = vmax.f32 %v1575_v57, %v1576_v22  ;;  %v1160_v24 = vrot.slane %v1062_v36, 2  ;;  %v1161_v54 = vrot.slane %v1062_v36, 4  ;;  %v1162_v48 = vrot.slane %v1062_v36, 6 }
 0x1b3   :  { %v1558_v43 = vmax.f32 %v1556_v45, %v1557_v3  ;;  %v1571_v8 = vrot.slane %v1570_v4, 2  ;;  %v1778_v58 = vsel %vm1301_vm11, %v1062_v36, -inf  ;;  %v1565_v30 = vmax.f32 %v1563_v41, %v1564_v10 }
 0x1b4   :  { %v1578_v5 = vrot.slane %v1577_v21, 2  ;;  %v1779_v56 = vrot.slane %v1778_v58, 4  ;;  %v1785_v9 = vsel %vm1301_vm11, %v1160_v24, -inf  ;;  %v1792_v31 = vsel %vm1301_vm11, %v1161_v54, -inf  ;;  %v990_v24 = vpop.f32.mrf.mxu0 }
 0x1b5   :  { %v1559_v18 = vrot.slane %v1558_v43, 1  ;;  %v1786_v61 = vrot.slane %v1785_v9, 4  ;;  %v1074_v33 = vmax.f32 %v1038_v53, 0.0  ;;  %v1572_v32 = vmax.f32 %v1570_v4, %v1571_v8 }
 0x1b6   :  { %v1579_v6 = vmax.f32 %v1577_v21, %v1578_v5  ;;  %v1780_v57 = vmax.f32 %v1778_v58, %v1779_v56  ;;  %v1793_v28 = vrot.slane %v1792_v31, 4  ;;  %v6554_v45 = vmax.f32 %v6526_v42, %v1769_v55 }
 0x1b7   :  { %v6556_v22 = vmax.f32 %v1775_v11, %v1776_v35  ;;  %v6559_v36 = vsel %vm8063_vm13, %v1763_v47, %v1756_v60  ;;  %v6561_v3 = vmax.f32 %v2104_v37, %v2105_v29  ;;  %v1787_v7 = vmax.f32 %v1785_v9, %v1786_v61 }
 0x1b8   :  { %v1781_v54 = vrot.slane %v1780_v57, 2  ;;  %v1794_v10 = vmax.f32 %v1792_v31, %v1793_v28  ;;  %v1799_v41 = vsel %vm1301_vm11, %v1162_v48, -inf  ;;  %v6564_v4 = vmax.f32 %v2111_v51, %v2112_v40 }
 0x1b9   :  { %8294 = vst [vmem:[#allocation37_spill] sm:$0xff] %v6556_v22  ;;  %v6567_v53 = vsel %vm8063_vm13, %v2099_v2, %v2092_v1  ;;  %v1566_v42 = vrot.slane %v1565_v30, 1  ;;  %v1196_v55 = vrot.slane %v1074_v33, 2  ;;  %v1560_v11 = vmax.f32 %v1558_v43, %v1559_v18 }
 0x1ba   :  { %8295 = vst [vmem:[#allocation38_spill] sm:$0xff] %v6561_v3  ;;  %v1573_v35 = vrot.slane %v1572_v32, 1  ;;  %v1580_v21 = vrot.slane %v1579_v6, 1  ;;  %v991_v60 = vadd.f32 %v6415_v23, %v990_v24  ;;  %v1800_v29 = vrot.slane %v1799_v41, 4 }
 0x1bb   :  { %8296 = vst [vmem:[#allocation39_spill] sm:$0xff] %v6564_v4  ;;  %v1197_v37 = vrot.slane %v1074_v33, 4  ;;  %v1198_v47 = vrot.slane %v1074_v33, 6  ;;  %v2114_v8 = vsel %vm1301_vm11, %v1074_v33, -inf  ;;  %v6571_v58 = vmax.f32 %v1780_v57, %v1781_v54 }
 0x1bc   :  { %8297 = vst [vmem:[#allocation40_spill] sm:$0xff] %v6567_v53  ;;  %v1788_v48 = vrot.slane %v1787_v7, 2  ;;  %v1795_v51 = vrot.slane %v1794_v10, 2  ;;  %v2115_v40 = vrot.slane %v2114_v8, 4  ;;  %v6573_v5 = vmax.f32 %v1565_v30, %v1566_v42 }
 0x1bd   :  { %v2121_v1 = vsel %vm1301_vm11, %v1196_v55, -inf  ;;  %v2128_v43 = vsel %vm1301_vm11, %v1197_v37, -inf  ;;  %v8298_v2 = vrot.slane %v6437_v34, 1  ;;  %v6580_v9 = vmax.f32 %v1572_v32, %v1573_v35 }
 0x1be   :  { %v6584_v31 = vsel %vm2371_vm9, %v1560_v11, %v6541_v13  ;;  %v2116_v18 = vmax.f32 %v2114_v8, %v2115_v40  ;;  %v2122_v61 = vrot.slane %v2121_v1, 4  ;;  %v6586_v33 = vmax.f32 %v1579_v6, %v1580_v21 }
 0x1bf   :  { %v1511_v56 = vmax.f32 %v6437_v34, %v8298_v2  ;;  %v6588_v30 = vmax.f32 %v1799_v41, %v1800_v29  ;;  %v2135_v57 = vsel %vm1301_vm11, %v1198_v47, -inf  ;;  %v1055_v28 = vmax.f32 %v991_v60, 0.0 }
 0x1c0   :  { %v1783_v24 = vrot.slane %v6571_v58, 1  ;;  %v6592_v54 = vmax.f32 %v1787_v7, %v1788_v48  ;;  %v6594_v34 = vmax.f32 %v1794_v10, %v1795_v51  ;;  %v2129_v32 = vrot.slane %v2128_v43, 4 }
 0x1c1   :  { %v2117_v42 = vrot.slane %v2116_v18, 2  ;;  %v1139_v55 = vrot.slane %v1055_v28, 2  ;;  %v1140_v13 = vrot.slane %v1055_v28, 4  ;;  %v1141_v11 = vrot.slane %v1055_v28, 6 }
 0x1c2   :  { %v2123_v35 = vmax.f32 %v2121_v1, %v2122_v61  ;;  %v2136_v37 = vrot.slane %v2135_v57, 4  ;;  %v1582_v6 = vsel %vm1301_vm11, %v1055_v28, -inf  ;;  %v1517_v41 = vrot.slane %v6441_v27, 1 }
 0x1c3   :  { %v1583_v21 = vrot.slane %v1582_v6, 4  ;;  %v1589_v60 = vsel %vm1301_vm11, %v1139_v55, -inf  ;;  %v1596_v29 = vsel %vm1301_vm11, %v1140_v13, -inf  ;;  %v8299_v7 = vrot.slane %v6421_v44, 2 }
 0x1c4   :  { %v2130_v8 = vmax.f32 %v2128_v43, %v2129_v32  ;;  %v1590_v48 = vrot.slane %v1589_v60, 4  ;;  %v2394_v51 = vsel %vm2367_vm5, %v6419_v25, %v6427_v49  ;;  %v2118_v40 = vmax.f32 %v2116_v18, %v2117_v42  ;;  %v1010_v32 = vpop.f32.mrf.mxu2 }
 0x1c5   :  { %v1523_v10 = vmax.f32 %v6421_v44, %v8299_v7  ;;  %v1584_v1 = vmax.f32 %v1582_v6, %v1583_v21  ;;  %v1597_v2 = vrot.slane %v1596_v29, 4  ;;  %v1603_v61 = vsel %vm1301_vm11, %v1141_v11, -inf }
 0x1c6   :  { %v2124_v28 = vrot.slane %v2123_v35, 2  ;;  %v1591_v55 = vmax.f32 %v1589_v60, %v1590_v48  ;;  %v1604_v13 = vrot.slane %v1603_v61, 4  ;;  %v1518_v4 = vmax.f32 %v6441_v27, %v1517_v41 }
 0x1c7   :  { %v6609_v3 = vmax.f32 %v2135_v57, %v2136_v37  ;;  %v1585_v44 = vrot.slane %v1584_v1, 2  ;;  %v1524_v7 = vrot.slane %v1523_v10, 1  ;;  %v2395_v43 = vsel %vm2369_vm8, %v6424_v63, %v2394_v51  ;;  %v1040_v63 = vpop.f32.mrf.mxu3 }
 0x1c8   :  { %v1598_v47 = vmax.f32 %v1596_v29, %v1597_v2  ;;  %v1605_v25 = vmax.f32 %v1603_v61, %v1604_v13  ;;  %v2396_v49 = vsel %vm2371_vm9, %v6523_v20, %v2395_v43  ;;  %v1011_v18 = vadd.f32 %v6415_v23, %v1010_v32 }
 0x1c9   :  { %8300 = vst [vmem:[#allocation41_spill] sm:$0xff] %v6609_v3  ;;  %v2119_v42 = vrot.slane %v2118_v40, 1  ;;  %v2131_v11 = vrot.slane %v2130_v8, 2  ;;  %v1525_v6 = vmax.f32 %v1523_v10, %v1524_v7  ;;  %v2397_v27 = vsel %vm2373_vm10, %v1511_v56, %v2396_v49 }
 0x1ca   :  { %v6617_v57 = vmax.f32 %v2123_v35, %v2124_v28  ;;  %v1592_v37 = vrot.slane %v1591_v55, 2  ;;  %v2398_v41 = vsel %vm8068_vm14, %v1518_v4, %v2397_v27  ;;  %v1063_v21 = vmax.f32 %v1011_v18, 0.0 }
 0x1cb   :  { %v1586_v29 = vmax.f32 %v1584_v1, %v1585_v44  ;;  %v6622_v48 = vsel %vm8067_vm15, %v1525_v6, %v2398_v41  ;;  %v1041_v20 = vadd.f32 %v6415_v23, %v1040_v63  ;;  %v6626_v51 = vmax.f32 %v6571_v58, %v1783_v24 }
 0x1cc   :  { %8301 = vst [vmem:[#allocation42_spill] sm:$0xff] %v6617_v57  ;;  %v1599_v35 = vrot.slane %v1598_v47, 2  ;;  %v1606_v10 = vrot.slane %v1605_v25, 2  ;;  %v6629_v2 = vmax.f32 %v2118_v40, %v2119_v42  ;;  %v6631_v4 = vmax.f32 %v2130_v8, %v2131_v11 }
 0x1cd   :  { %8302 = vst [vmem:[#allocation43_spill] sm:$0xff] %v6626_v51  ;;  %v4713_v61 = vpack.i.bf16 %v6622_v48, %v6470_v50  ;;  %v1163_v1 = vrot.slane %v1063_v21, 2  ;;  %v1593_v13 = vmax.f32 %v1591_v55, %v1592_v37  ;;  %v1164_v44 = vrot.slane %v1063_v21, 4 }
 0x1ce   :  { %8303 = vst [vmem:[#allocation44_spill] sm:$0xff] %v6629_v2  ;;  %v1165_v7 = vrot.slane %v1063_v21, 6  ;;  %v1587_v43 = vrot.slane %v1586_v29, 1  ;;  %v1806_v58 = vsel %vm1301_vm11, %v1063_v21, -inf  ;;  %v1075_v40 = vmax.f32 %v1041_v20, 0.0 }
 0x1cf   :  { %8304 = vst [vmem:[#allocation45_spill] sm:$0xff] %v6631_v4  ;;  %4714 = vrot.lane.b32.xlu1 %v4713_v61, %s4858_s29  ;;  %v1813_v24 = vsel %vm1301_vm11, %v1163_v1, -inf  ;;  %v1600_v32 = vmax.f32 %v1598_v47, %v1599_v35  ;;  %v1607_v8 = vmax.f32 %v1605_v25, %v1606_v10  ;;  %v1807_v49 = vrot.slane %v1806_v58, 4 }
 0x1d0   :  { %v1814_v18 = vrot.slane %v1813_v24, 4  ;;  %v1820_v42 = vsel %vm1301_vm11, %v1164_v44, -inf  ;;  %v1827_v11 = vsel %vm1301_vm11, %v1165_v7, -inf  ;;  %v1199_v6 = vrot.slane %v1075_v40, 2 }
 0x1d1   :  { %v1200_v55 = vrot.slane %v1075_v40, 4  ;;  %v1808_v27 = vmax.f32 %v1806_v58, %v1807_v49  ;;  %v1821_v41 = vrot.slane %v1820_v42, 4  ;;  %v1828_v63 = vrot.slane %v1827_v11, 4 }
 0x1d2   :  { %v1815_v37 = vmax.f32 %v1813_v24, %v1814_v18  ;;  %v1201_v61 = vrot.slane %v1075_v40, 6  ;;  %v2142_v21 = vsel %vm1301_vm11, %v1075_v40, -inf  ;;  %v2149_v1 = vsel %vm1301_vm11, %v1199_v6, -inf }
 0x1d3   :  { %v2156_v47 = vsel %vm1301_vm11, %v1200_v55, -inf  ;;  %v1809_v25 = vrot.slane %v1808_v27, 2  ;;  %v1822_v35 = vmax.f32 %v1820_v42, %v1821_v41  ;;  %v1829_v10 = vmax.f32 %v1827_v11, %v1828_v63  ;;  %v992_v63 = vpop.f32.mrf.mxu0 }
 0x1d4   :  { %v1816_v20 = vrot.slane %v1815_v37, 2  ;;  %v2143_v44 = vrot.slane %v2142_v21, 4  ;;  %v2150_v56 = vrot.slane %v2149_v1, 4  ;;  %v2157_v7 = vrot.slane %v2156_v47, 4 }
 0x1d5   :  { %v2163_v28 = vsel %vm1301_vm11, %v1201_v61, -inf  ;;  %v1594_v58 = vrot.slane %v1593_v13, 1  ;;  %v1810_v24 = vmax.f32 %v1808_v27, %v1809_v25  ;;  %v1823_v18 = vrot.slane %v1822_v35, 2 }
 0x1d6   :  { %v1817_v49 = vmax.f32 %v1815_v37, %v1816_v20  ;;  %v2144_v60 = vmax.f32 %v2142_v21, %v2143_v44  ;;  %v2151_v2 = vmax.f32 %v2149_v1, %v2150_v56  ;;  %v2158_v40 = vmax.f32 %v2156_v47, %v2157_v7  ;;  %v1012_v47 = vpop.f32.mrf.mxu2 }
 0x1d7   :  { %v2164_v53 = vrot.slane %v2163_v28, 4  ;;  %v1601_v6 = vrot.slane %v1600_v32, 1  ;;  %v1608_v3 = vrot.slane %v1607_v8, 1  ;;  %v1811_v55 = vrot.slane %v1810_v24, 1 }
 0x1d8   :  { %v1830_v4 = vrot.slane %v1829_v10, 2  ;;  %v2145_v57 = vrot.slane %v2144_v60, 2  ;;  %v2152_v42 = vrot.slane %v2151_v2, 2  ;;  %v2159_v11 = vrot.slane %v2158_v40, 2 }
 0x1d9   :  { %v2165_v41 = vmax.f32 %v2163_v28, %v2164_v53  ;;  %v6645_v15 = vmax.f32 %v1586_v29, %v1587_v43  ;;  %v1818_v27 = vrot.slane %v1817_v49, 1  ;;  %v1824_v37 = vmax.f32 %v1822_v35, %v1823_v18 }
 0x1da   :  { %v2146_v25 = vmax.f32 %v2144_v60, %v2145_v57  ;;  %v2153_v21 = vmax.f32 %v2151_v2, %v2152_v42  ;;  %v2160_v56 = vmax.f32 %v2158_v40, %v2159_v11  ;;  %v1595_v20 = vmax.f32 %v1593_v13, %v1594_v58  ;;  %v1042_v60 = vpop.f32.mrf.mxu3 }
 0x1db   :  { %v2166_v1 = vrot.slane %v2165_v41, 2  ;;  %v6648_v44 = vmax.f32 %v1600_v32, %v1601_v6  ;;  %v6650_v7 = vmax.f32 %v1607_v8, %v1608_v3  ;;  %v993_v52 = vadd.f32 %v6415_v23, %v992_v63 }
 0x1dc   :  { %v1812_v53 = vmax.f32 %v1810_v24, %v1811_v55  ;;  %v1831_v28 = vmax.f32 %v1829_v10, %v1830_v4  ;;  %v2147_v29 = vrot.slane %v2146_v25, 1  ;;  %v2154_v43 = vrot.slane %v2153_v21, 1 }
 0x1dd   :  { %v1819_v62 = vmax.f32 %v1817_v49, %v1818_v27  ;;  %v2167_v61 = vmax.f32 %v2165_v41, %v2166_v1  ;;  %v1056_v39 = vmax.f32 %v993_v52, 0.0  ;;  %v1013_v57 = vadd.f32 %v6415_v23, %v1012_v47 }
 0x1de   :  { %v1825_v2 = vrot.slane %v1824_v37, 1  ;;  %v2148_v35 = vmax.f32 %v2146_v25, %v2147_v29  ;;  %v2155_v18 = vmax.f32 %v2153_v21, %v2154_v43  ;;  %v2161_v13 = vrot.slane %v2160_v56, 1 }
 0x1df   :  { %v1142_v32 = vrot.slane %v1056_v39, 2  ;;  %v1143_v58 = vrot.slane %v1056_v39, 4  ;;  %v1144_v3 = vrot.slane %v1056_v39, 6  ;;  %v1610_v8 = vsel %vm1301_vm11, %v1056_v39, -inf }
 0x1e0   :  { %v1832_v40 = vrot.slane %v1831_v28, 1  ;;  %v1611_v24 = vrot.slane %v1610_v8, 4  ;;  %v1064_v4 = vmax.f32 %v1013_v57, 0.0  ;;  %v1043_v10 = vadd.f32 %v6415_v23, %v1042_v60 }
 0x1e1   :  { %v2168_v49 = vrot.slane %v2167_v61, 1  ;;  %v1617_v52 = vsel %vm1301_vm11, %v1142_v32, -inf  ;;  %v1624_v6 = vsel %vm1301_vm11, %v1143_v58, -inf  ;;  %v1631_v55 = vsel %vm1301_vm11, %v1144_v3, -inf  ;;  %v995_v3 = vpop.f32.mrf.mxu0 }
 0x1e2   :  { %v2162_v42 = vmax.f32 %v2160_v56, %v2161_v13  ;;  %v1612_v11 = vmax.f32 %v1610_v8, %v1611_v24  ;;  %v1618_v41 = vrot.slane %v1617_v52, 4  ;;  %v1625_v63 = vrot.slane %v1624_v6, 4 }
 0x1e3   :  { %v2477_v27 = vsel %vm8063_vm13, %v2155_v18, %v2148_v35  ;;  %v1632_v25 = vrot.slane %v1631_v55, 4  ;;  %v1166_v39 = vrot.slane %v1064_v4, 2  ;;  %v1167_v21 = vrot.slane %v1064_v4, 4 }
 0x1e4   :  { %v1613_v1 = vrot.slane %v1612_v11, 2  ;;  %v1619_v47 = vmax.f32 %v1617_v52, %v1618_v41  ;;  %v1626_v29 = vmax.f32 %v1624_v6, %v1625_v63  ;;  %v1834_v43 = vsel %vm1301_vm11, %v1064_v4, -inf }
 0x1e5   :  { %v2169_v57 = vmax.f32 %v2167_v61, %v2168_v49  ;;  %v1168_v60 = vrot.slane %v1064_v4, 6  ;;  %v1835_v32 = vrot.slane %v1834_v43, 4  ;;  %v1841_v58 = vsel %vm1301_vm11, %v1166_v39, -inf }
 0x1e6   :  { %v1614_v56 = vmax.f32 %v1612_v11, %v1613_v1  ;;  %v1620_v13 = vrot.slane %v1619_v47, 2  ;;  %v6662_v8 = vmax.f32 %v1631_v55, %v1632_v25  ;;  %v1848_v35 = vsel %vm1301_vm11, %v1167_v21, -inf }
 0x1e7   :  { %v2478_v18 = vsel %vm2367_vm5, %v2162_v42, %v2477_v27  ;;  %v1627_v24 = vrot.slane %v1626_v29, 2  ;;  %v1836_v46 = vmax.f32 %v1834_v43, %v1835_v32  ;;  %v1842_v52 = vrot.slane %v1841_v58, 4 }
 0x1e8   :  { %v6668_v6 = vsel %vm8063_vm13, %v1595_v20, %v6645_v15  ;;  %v6670_v61 = vmax.f32 %v1824_v37, %v1825_v2  ;;  %v6672_v4 = vmax.f32 %v1831_v28, %v1832_v40  ;;  %v996_v49 = vadd.f32 %v6415_v23, %v995_v3 }
 0x1e9   :  { %v6676_v55 = vsel %vm8063_vm13, %v1819_v62, %v1812_v53  ;;  %v1615_v11 = vrot.slane %v1614_v56, 1  ;;  %v1849_v41 = vrot.slane %v1848_v35, 4  ;;  %v1076_v63 = vmax.f32 %v1043_v10, 0.0  ;;  %v997_v15 = vpop.f32.mrf.mxu0 }
 0x1ea   :  { %8305 = vst [vmem:[#allocation46_spill] sm:$0xff] %v6670_v61  ;;  %v6679_v42 = vsel %vm2369_vm8, %v2169_v57, %v2478_v18  ;;  %v6681_v27 = vmax.f32 %v1619_v47, %v1620_v13  ;;  %v1855_v37 = vsel %vm1301_vm11, %v1168_v60, -inf  ;;  %v6685_v20 = vmax.f32 %v1626_v29, %v1627_v24 }
 0x1eb   :  { %8306 = vst [vmem:[#allocation47_spill] sm:$0xff] %v6672_v4  ;;  %v1837_v28 = vrot.slane %v1836_v46, 2  ;;  %v1843_v2 = vmax.f32 %v1841_v58, %v1842_v52  ;;  %v1202_v23 = vrot.slane %v1076_v63, 2  ;;  %v1203_v40 = vrot.slane %v1076_v63, 4 }
 0x1ec   :  { %v1204_v62 = vrot.slane %v1076_v63, 6  ;;  %v2170_v53 = vsel %vm1301_vm11, %v1076_v63, -inf  ;;  %v1057_v25 = vmax.f32 %v996_v49, 0.0  ;;  %v6688_v10 = vmax.f32 %v1614_v56, %v1615_v11 }
 0x1ed   :  { %v1850_v39 = vmax.f32 %v1848_v35, %v1849_v41  ;;  %v1856_v21 = vrot.slane %v1855_v37, 4  ;;  %v2171_v1 = vrot.slane %v2170_v53, 4  ;;  %v2177_v43 = vsel %vm1301_vm11, %v1202_v23, -inf }
 0x1ee   :  { %v2184_v29 = vsel %vm1301_vm11, %v1203_v40, -inf  ;;  %v2191_v57 = vsel %vm1301_vm11, %v1204_v62, -inf  ;;  %v1844_v60 = vrot.slane %v1843_v2, 2  ;;  %v2178_v58 = vrot.slane %v2177_v43, 4 }
 0x1ef   :  { %v2172_v32 = vmax.f32 %v2170_v53, %v2171_v1  ;;  %v2185_v3 = vrot.slane %v2184_v29, 4  ;;  %v2192_v13 = vrot.slane %v2191_v57, 4  ;;  %v1145_v18 = vrot.slane %v1057_v25, 2 }
 0x1f0   :  { %v1146_v24 = vrot.slane %v1057_v25, 4  ;;  %v1147_v56 = vrot.slane %v1057_v25, 6  ;;  %v2179_v35 = vmax.f32 %v2177_v43, %v2178_v58  ;;  %v1638_v11 = vsel %vm1301_vm11, %v1057_v25, -inf }
 0x1f1   :  { %v2173_v52 = vrot.slane %v2172_v32, 2  ;;  %v2186_v49 = vmax.f32 %v2184_v29, %v2185_v3  ;;  %v2193_v41 = vmax.f32 %v2191_v57, %v2192_v13  ;;  %v1639_v63 = vrot.slane %v1638_v11, 4 }
 0x1f2   :  { %v1645_v23 = vsel %vm1301_vm11, %v1145_v18, -inf  ;;  %v1652_v40 = vsel %vm1301_vm11, %v1146_v24, -inf  ;;  %v2180_v47 = vrot.slane %v2179_v35, 2  ;;  %v1659_v51 = vsel %vm1301_vm11, %v1147_v56, -inf }
 0x1f3   :  { %v2174_v62 = vmax.f32 %v2172_v32, %v2173_v52  ;;  %v2187_v53 = vrot.slane %v2186_v49, 2  ;;  %v1646_v1 = vrot.slane %v1645_v23, 4  ;;  %v2194_v19 = vrot.slane %v2193_v41, 2 }
 0x1f4   :  { %v1640_v0 = vmax.f32 %v1638_v11, %v1639_v63  ;;  %v1653_v17 = vrot.slane %v1652_v40, 4  ;;  %v6698_v43 = vmax.f32 %v1836_v46, %v1837_v28  ;;  %v1851_v29 = vrot.slane %v1850_v39, 2 }
 0x1f5   :  { %v6700_v25 = vmax.f32 %v1855_v37, %v1856_v21  ;;  %v1647_v57 = vmax.f32 %v1645_v23, %v1646_v1  ;;  %v2175_v58 = vrot.slane %v2174_v62, 1  ;;  %v1660_v18 = vrot.slane %v1659_v51, 4 }
 0x1f6   :  { %v1641_v3 = vrot.slane %v1640_v0, 2  ;;  %v1654_v13 = vmax.f32 %v1652_v40, %v1653_v17  ;;  %v2181_v32 = vmax.f32 %v2179_v35, %v2180_v47  ;;  %v2188_v24 = vmax.f32 %v2186_v49, %v2187_v53 }
 0x1f7   :  { %v2195_v52 = vmax.f32 %v2193_v41, %v2194_v19  ;;  %v1648_v4 = vrot.slane %v1647_v57, 2  ;;  %v6702_v22 = vmax.f32 %v1843_v2, %v1844_v60  ;;  %v1661_v61 = vmax.f32 %v1659_v51, %v1660_v18  ;;  %v8307_v60 = vld [vmem:[#allocation5_spill] sm:$0xff]  ;;  %v8308_v41 = vld [vmem:[#allocation6_spill] sm:$0xff] }
 0x1f8   :  { %v1642_v11 = vmax.f32 %v1640_v0, %v1641_v3  ;;  %v1655_v63 = vrot.slane %v1654_v13, 2  ;;  %v6705_v28 = vmax.f32 %v1850_v39, %v1851_v29  ;;  %v2176_v56 = vmax.f32 %v2174_v62, %v2175_v58  ;;  %v1000_v29 = vpop.f32.mrf.mxu0  ;;  %v6744_v18 = vld [vmem:[%s7962_s2] ss:$0 sm:$0xff] }
 0x1f9   :  { %v1649_v21 = vmax.f32 %v1647_v57, %v1648_v4  ;;  %v1662_v40 = vrot.slane %v1661_v61, 2  ;;  %v2182_v47 = vrot.slane %v2181_v32, 1  ;;  %v2189_v35 = vrot.slane %v2188_v24, 1 }
 0x1fa   :  { %v1643_v23 = vrot.slane %v1642_v11, 1  ;;  %v1656_v17 = vmax.f32 %v1654_v13, %v1655_v63  ;;  %v2196_v19 = vrot.slane %v2195_v52, 1  ;;  %v8056_v0 = vand.u32 3, %v8307_v60 }
 0x1fb   :  { %v1650_v49 = vrot.slane %v1649_v21, 1  ;;  %v8055_v51 = vand.u32 3, %v8308_v41  ;;  %v2404_v39 = vsel %vm2373_vm10, %v6573_v5, %v6584_v31  ;;  %v6713_v4 = vmax.f32 %v1661_v61, %v1662_v40 }
 0x1fc   :  { %v1657_v2 = vrot.slane %v1656_v17, 1  ;;  %v1644_v53 = vmax.f32 %v1642_v11, %v1643_v23  ;;  %v2405_v62 = vsel %vm8068_vm14, %v6580_v9, %v2404_v39  ;;  %vm6723_vm4 = vcmp.eq.s32.totalorder %v8056_v0, 3 }
 0x1fd   :  { %v1651_v1 = vmax.f32 %v1649_v21, %v1650_v49  ;;  %v6719_v58 = vsel %vm8067_vm15, %v6586_v33, %v2405_v62  ;;  %vm6729_vm1 = vcmp.eq.s32.totalorder %v8055_v51, 3  ;;  %v8313_v61 = vrot.slane %v6622_v48, 1 }
 0x1fe   :  { %v1658_v57 = vmax.f32 %v1656_v17, %v1657_v2  ;;  %v8057_v31 = vrot.slane %v6719_v58, 1  ;;  %v8314_v33 = vrot.slane %v6470_v50, 1  ;;  %v998_v11 = vadd.f32 %v6744_v18, %v997_v15 }
 0x1ff   :  { %v2414_v9 = vsel %vm8063_vm13, %v1651_v1, %v1644_v53  ;;  %v6747_v63 = vmax.f32 %v2181_v32, %v2182_v47  ;;  %v6749_v21 = vmax.f32 %v2188_v24, %v2189_v35  ;;  %v6753_v23 = vsel %vm2371_vm9, %v2176_v56, %v6679_v42 }
 0x200   :  { %v2624_v13 = vsel %vm8066_vm0, %v8314_v33, %v8313_v61  ;;  %v1001_v17 = vadd.f32 %v6744_v18, %v1000_v29  ;;  %v6756_v40 = vmax.f32 %v2195_v52, %v2196_v19  ;;  %v1664_v49 = vrot.slane %v6713_v4, 1 }
 0x201   :  { %v8315_v2 = vmov %v8313_v61  ;;  %v1058_v32 = vmax.f32 %v998_v11, 0.0  ;;  %v6766_v24 = vsel %vm2367_vm5, %v1658_v57, %v2414_v9  ;;  %v2662_v42 = vsel %vm6723_vm4, 0.0, %v2624_v13 }
 0x202   :  { %v2623_v15 = vsel %vm8066_vm0, %v8315_v2, %v8057_v31  ;;  %v1059_v56 = vmax.f32 %v1001_v17, 0.0 }
 0x203   :  { %v2663_v52 = vsel %vm6729_vm1, 0.0, %v2623_v15  ;;  %v1148_v35 = vrot.slane %v1058_v32, 2  ;;  %v1149_v19 = vrot.slane %v1058_v32, 4  ;;  %v1150_v39 = vrot.slane %v1058_v32, 6 }
 0x204   :  { %v4718_v47 = vpack.i.bf16 %v2663_v52, %v2662_v42  ;;  %v1666_v53 = vsel %vm1301_vm11, %v1058_v32, -inf  ;;  %v1151_v1 = vrot.slane %v1059_v56, 2  ;;  %v1152_v62 = vrot.slane %v1059_v56, 4 }
 0x205   :  { %v1153_v29 = vrot.slane %v1059_v56, 6  ;;  %v1667_v57 = vrot.slane %v1666_v53, 4  ;;  %v1673_v9 = vsel %vm1301_vm11, %v1148_v35, -inf  ;;  %v1680_v3 = vsel %vm1301_vm11, %v1149_v19, -inf }
 0x206   :  { %4719 = vrot.lane.b32.xlu2 %v4718_v47, %s4856_s17  ;;  %v1687_v5 = vsel %vm1301_vm11, %v1150_v39, -inf  ;;  %v1674_v61 = vrot.slane %v1673_v9, 4  ;;  %v1681_v33 = vrot.slane %v1680_v3, 4  ;;  %v1694_v11 = vsel %vm1301_vm11, %v1059_v56, -inf }
 0x207   :  { %v1688_v13 = vrot.slane %v1687_v5, 4  ;;  %v1668_v17 = vmax.f32 %v1666_v53, %v1667_v57  ;;  %v1695_v2 = vrot.slane %v1694_v11, 4  ;;  %v1701_v15 = vsel %vm1301_vm11, %v1151_v1, -inf }
 0x208   :  { %v1708_v32 = vsel %vm1301_vm11, %v1152_v62, -inf  ;;  %v1675_v42 = vmax.f32 %v1673_v9, %v1674_v61  ;;  %v1682_v52 = vmax.f32 %v1680_v3, %v1681_v33  ;;  %v1702_v51 = vrot.slane %v1701_v15, 4 }
 0x209   :  { %v1689_v47 = vmax.f32 %v1687_v5, %v1688_v13  ;;  %v1669_v35 = vrot.slane %v1668_v17, 2  ;;  %v1696_v0 = vmax.f32 %v1694_v11, %v1695_v2  ;;  %v1709_v19 = vrot.slane %v1708_v32, 4 }
 0x20a   :  { %v1715_v39 = vsel %vm1301_vm11, %v1153_v29, -inf  ;;  %v1676_v37 = vrot.slane %v1675_v42, 2  ;;  %v1683_v46 = vrot.slane %v1682_v52, 2  ;;  %v1703_v41 = vmax.f32 %v1701_v15, %v1702_v51 }
 0x20b   :  { %v1690_v31 = vrot.slane %v1689_v47, 2  ;;  %v1670_v56 = vmax.f32 %v1668_v17, %v1669_v35  ;;  %v1697_v53 = vrot.slane %v1696_v0, 2  ;;  %v1710_v57 = vmax.f32 %v1708_v32, %v1709_v19 }
 0x20c   :  { %v1716_v60 = vrot.slane %v1715_v39, 4  ;;  %v1677_v1 = vmax.f32 %v1675_v42, %v1676_v37  ;;  %v1684_v50 = vmax.f32 %v1682_v52, %v1683_v46  ;;  %v1704_v9 = vrot.slane %v1703_v41, 2  ;;  %v1002_v52 = vpop.f32.mrf.mxu0 }
 0x20d   :  { %v1691_v62 = vmax.f32 %v1689_v47, %v1690_v31  ;;  %v1671_v3 = vrot.slane %v1670_v56, 1  ;;  %v1698_v5 = vmax.f32 %v1696_v0, %v1697_v53  ;;  %v1711_v61 = vrot.slane %v1710_v57, 2 }
 0x20e   :  { %v1717_v33 = vmax.f32 %v1715_v39, %v1716_v60  ;;  %v1678_v13 = vrot.slane %v1677_v1, 1  ;;  %v1685_v11 = vrot.slane %v1684_v50, 1  ;;  %v1629_v29 = vrot.slane %v6685_v20, 1 }
 0x20f   :  { %v8316_v2 = vrot.slane %v6662_v8, 2  ;;  %v1665_v17 = vmax.f32 %v6713_v4, %v1664_v49  ;;  %v1672_v15 = vmax.f32 %v1670_v56, %v1671_v3  ;;  %v1692_v32 = vrot.slane %v1691_v62, 1 }
 0x210   :  { %v2408_v46 = vsel %vm2367_vm5, %v6648_v44, %v6668_v6  ;;  %v2481_v37 = vsel %vm2373_vm10, %v6747_v63, %v6753_v23  ;;  %v1699_v60 = vrot.slane %v1698_v5, 1  ;;  %v1705_v0 = vmax.f32 %v1703_v41, %v1704_v9 }
 0x211   :  { %v1635_v51 = vmax.f32 %v6662_v8, %v8316_v2  ;;  %v8317_v31 = vrot.slane %v6681_v27, 1  ;;  %v2416_v8 = vsel %vm2369_vm8, %v1665_v17, %v6766_v24  ;;  %v1679_v4 = vmax.f32 %v1677_v1, %v1678_v13 }
 0x212   :  { %v1712_v49 = vmax.f32 %v1710_v57, %v1711_v61  ;;  %v1718_v47 = vrot.slane %v1717_v33, 2  ;;  %v1686_v35 = vmax.f32 %v1684_v50, %v1685_v11  ;;  %v1630_v44 = vmax.f32 %v6685_v20, %v1629_v29 }
 0x213   :  { %v1623_v42 = vmax.f32 %v6681_v27, %v8317_v31  ;;  %v1636_v6 = vrot.slane %v1635_v51, 1  ;;  %v2409_v63 = vsel %vm2369_vm8, %v6650_v7, %v2408_v46  ;;  %v1693_v23 = vmax.f32 %v1691_v62, %v1692_v32 }
 0x214   :  { %v2417_v41 = vsel %vm2371_vm9, %v1672_v15, %v2416_v8  ;;  %v2410_v27 = vsel %vm2371_vm9, %v6688_v10, %v2409_v63  ;;  %v1003_v19 = vadd.f32 %v6744_v18, %v1002_v52  ;;  %v1700_v39 = vmax.f32 %v1698_v5, %v1699_v60 }
 0x215   :  { %v1706_v24 = vrot.slane %v1705_v0, 1  ;;  %v1637_v56 = vmax.f32 %v1635_v51, %v1636_v6  ;;  %v2411_v53 = vsel %vm2373_vm10, %v1623_v42, %v2410_v27  ;;  %v1713_v50 = vrot.slane %v1712_v49, 1 }
 0x216   :  { %v2412_v20 = vsel %vm8068_vm14, %v1630_v44, %v2411_v53  ;;  %v1060_v57 = vmax.f32 %v1003_v19, 0.0  ;;  %v2209_v1 = vand.u32 3, %v5182_v26  ;;  %v1719_v7 = vmax.f32 %v1717_v33, %v1718_v47 }
 0x217   :  { %v6808_v62 = vsel %vm8067_vm15, %v1637_v56, %v2412_v20  ;;  %v2210_v9 = vand.u32 3, %v5185_v38  ;;  %v2418_v10 = vsel %vm2373_vm10, %v1679_v4, %v2417_v41  ;;  %v8322_v4 = vrot.slane %v6719_v58, 1 }
 0x218   :  { %v2601_v18 = vrot.slane %v6808_v62, 1  ;;  %v4723_v3 = vpack.i.bf16 %v6808_v62, %v6719_v58  ;;  %v1154_v5 = vrot.slane %v1060_v57, 2  ;;  %vm6817_vm2 = vcmp.eq.s32.totalorder %v2209_v1, 3 }
 0x219   :  { %v1155_v33 = vrot.slane %v1060_v57, 4  ;;  %v1156_v13 = vrot.slane %v1060_v57, 6  ;;  %v1722_v11 = vsel %vm1301_vm11, %v1060_v57, -inf  ;;  %v2419_v29 = vsel %vm8068_vm14, %v1686_v35, %v2418_v10 }
 0x21a   :  { %4724 = vrot.lane.b32.xlu0 %v4723_v3, %s4858_s29  ;;  %v1723_v2 = vrot.slane %v1722_v11, 4  ;;  %v1729_v51 = vsel %vm1301_vm11, %v1154_v5, -inf  ;;  %v6826_v17 = vsel %vm8067_vm15, %v1693_v23, %v2419_v29  ;;  %vm6830_vm4 = vcmp.eq.s32.totalorder %v2210_v9, 3 }
 0x21b   :  { %v1730_v32 = vrot.slane %v1729_v51, 4  ;;  %v1736_v46 = vsel %vm1301_vm11, %v1155_v33, -inf  ;;  %v1743_v60 = vsel %vm1301_vm11, %v1156_v13, -inf  ;;  %v2602_v31 = vrot.slane %v6826_v17, 1 }
 0x21c   :  { %v1724_v42 = vmax.f32 %v1722_v11, %v1723_v2  ;;  %v1737_v52 = vrot.slane %v1736_v46, 4  ;;  %v1744_v8 = vrot.slane %v1743_v60, 4  ;;  %v2622_v47 = vsel %vm8066_vm0, %v8322_v4, %v2601_v18  ;;  %v6861_v11 = vpop.permute.xlu2 %4704 }
 0x21d   :  { %v1707_v35 = vmax.f32 %v1705_v0, %v1706_v24  ;;  %v1720_v44 = vrot.slane %v1719_v7, 1  ;;  %v1731_v6 = vmax.f32 %v1729_v51, %v1730_v32  ;;  %v2621_v63 = vsel %vm8066_vm0, %v2601_v18, %v2602_v31 }
 0x21e   :  { %v1725_v23 = vrot.slane %v1724_v42, 2  ;;  %v1738_v41 = vmax.f32 %v1736_v46, %v1737_v52  ;;  %v2664_v27 = vsel %vm6817_vm2, 0.0, %v2622_v47  ;;  %v2665_v19 = vsel %vm6830_vm4, 0.0, %v2621_v63 }
 0x21f   :  { %v1732_v56 = vrot.slane %v1731_v6, 2  ;;  %v1745_v53 = vmax.f32 %v1743_v60, %v1744_v8  ;;  %v4728_v20 = vpack.i.bf16 %v2665_v19, %v2664_v27  ;;  %v2482_v0 = vsel %vm8068_vm14, %v6749_v21, %v2481_v37  ;;  %v8334_v27 = vld [vmem:[#allocation47_spill] sm:$0xff] }
 0x220   :  { %v1846_v24 = vrot.slane %v6702_v22, 1  ;;  %v1726_v57 = vmax.f32 %v1724_v42, %v1725_v23  ;;  %v1739_v10 = vrot.slane %v1738_v41, 2  ;;  %v6854_v18 = vsel %vm8067_vm15, %v6756_v40, %v2482_v0  ;;  %v8332_v23 = vld [vmem:[#allocation46_spill] sm:$0xff] }
 0x221   :  { %v8323_v3 = vrot.slane %v6698_v43, 1  ;;  %v1714_v61 = vmax.f32 %v1712_v49, %v1713_v50  ;;  %v2421_v33 = vsel %vm8063_vm13, %v1707_v35, %v1700_v39  ;;  %v1733_v13 = vmax.f32 %v1731_v6, %v1732_v56  ;;  %4729 = vrot.lane.b32.xlu1 %v4728_v20, %s4856_s17 }
 0x222   :  { %v1721_v21 = vmax.f32 %v1719_v7, %v1720_v44  ;;  %v1727_v37 = vrot.slane %v1726_v57, 1  ;;  %v8324_v29 = vand.u32 3, %v4965_v16  ;;  %v8327_v40 = vrot.slane %v6396_v14, 7 }
 0x223   :  { %v1840_v5 = vmax.f32 %v6698_v43, %v8323_v3  ;;  %v8328_v43 = vrot.slane %v6391_v59, 7  ;;  %v1734_v39 = vrot.slane %v1733_v13, 1  ;;  %v1746_v50 = vrot.slane %v1745_v53, 2 }
 0x224   :  { %vm6865_vm11 = vcmp.eq.s32.totalorder %v8324_v29, 0  ;;  %v2515_v51 = vrot.slane %v6854_v18, 7  ;;  %v1797_v7 = vrot.slane %v6594_v34, 1  ;;  %v1740_v15 = vmax.f32 %v1738_v41, %v1739_v10 }
 0x225   :  { %v6875_v49 = vsel %vm8064_vm3, %v8328_v43, %v8327_v40  ;;  %v4707_v32 = vunpack.i.h.bf16 %v6861_v11  ;;  %v8329_v46 = vrot.slane %v6592_v54, 1  ;;  %v8330_v42 = vrot.slane %v6588_v30, 2 }
 0x226   :  { %v1728_v8 = vmax.f32 %v1726_v57, %v1727_v37  ;;  %v1798_v4 = vmax.f32 %v6594_v34, %v1797_v7  ;;  %v1847_v47 = vmax.f32 %v6702_v22, %v1846_v24  ;;  %v1853_v35 = vrot.slane %v6705_v28, 1  ;;  %v8333_v34 = vld [vmem:[#allocation37_spill] sm:$0xff] }
 0x227   :  { %v1791_v60 = vmax.f32 %v6592_v54, %v8329_v46  ;;  %v1803_v52 = vmax.f32 %v6588_v30, %v8330_v42  ;;  %v8331_v6 = vrot.slane %v6700_v25, 2  ;;  %v2429_v54 = vsel %vm2367_vm5, %v6554_v45, %v6559_v36 }
 0x228   :  { %v2436_v30 = vsel %vm2367_vm5, %v8332_v23, %v6676_v55  ;;  %v1854_v41 = vmax.f32 %v6705_v28, %v1853_v35  ;;  %v2430_v22 = vsel %vm2369_vm8, %v8333_v34, %v2429_v54  ;;  %v1735_v56 = vmax.f32 %v1733_v13, %v1734_v39  ;;  %v8339_v35 = vld [vmem:[#allocation10_spill] sm:$0xff]  ;;  %v8345_v34 = vld [vmem:[#allocation19_spill] sm:$0xff] }
 0x229   :  { %v1804_v44 = vrot.slane %v1803_v52, 1  ;;  %v1859_v63 = vmax.f32 %v6700_v25, %v8331_v6  ;;  %v2437_v19 = vsel %vm2369_vm8, %v8334_v27, %v2436_v30  ;;  %v8335_v25 = vld [vmem:[#allocation43_spill] sm:$0xff]  ;;  %v1741_v57 = vrot.slane %v1740_v15, 1  ;;  %v8344_v30 = vld [vmem:[#allocation17_spill] sm:$0xff] }
 0x22a   :  { %v2431_v24 = vsel %vm2371_vm9, %v8335_v25, %v2430_v22  ;;  %v2438_v45 = vsel %vm2371_vm9, %v1840_v5, %v2437_v19  ;;  %v1747_v28 = vmax.f32 %v1745_v53, %v1746_v50  ;;  %v2422_v13 = vsel %vm2367_vm5, %v1714_v61, %v2421_v33  ;;  %v8346_v22 = vld [vmem:[#allocation16_spill] sm:$0xff]  ;;  %v8347_v19 = vld [vmem:[#allocation26_spill] sm:$0xff]  ;;  %v8349_v25 = vld [vmem:[#allocation7_spill] sm:$0xff] }
 0x22b   :  { %v1805_v20 = vmax.f32 %v1803_v52, %v1804_v44  ;;  %v1860_v0 = vrot.slane %v1859_v63, 1  ;;  %v2432_v36 = vsel %vm2373_vm10, %v1791_v60, %v2431_v24  ;;  %v2439_v55 = vsel %vm2373_vm10, %v1847_v47, %v2438_v45  ;;  %v4514_v60 = vld [vmem:[%s7963_s3 + $0x10] sm:$0xff]  ;;  %v8337_v52 = vld [vmem:[#allocation22_spill] sm:$0xff]  ;;  %v8338_v47 = vld [vmem:[#allocation24_spill] sm:$0xff] }
 0x22c   :  { %v2433_v3 = vsel %vm8068_vm14, %v1798_v4, %v2432_v36  ;;  %v2440_v37 = vsel %vm8068_vm14, %v1854_v41, %v2439_v55  ;;  %v1742_v40 = vmax.f32 %v1740_v15, %v1741_v57  ;;  %v1748_v43 = vrot.slane %v1747_v28, 1  ;;  %v8340_v44 = vld [vmem:[#allocation15_spill] sm:$0xff]  ;;  %v8350_v45 = vld [vmem:[#allocation18_spill] sm:$0xff]  ;;  %v8351_v55 = vld [vmem:[#allocation25_spill] sm:$0xff]  ;;  %2880 = vmatpush.bf16.msra.mxu1 %v4514_v60 }
 0x22d   :  { %v1861_v10 = vmax.f32 %v1859_v63, %v1860_v0  ;;  %v6912_v29 = vsel %vm8067_vm15, %v1805_v20, %v2433_v3  ;;  %v2423_v5 = vsel %vm2369_vm8, %v1721_v21, %v2422_v13  ;;  %v4706_v39 = vunpack.i.l.bf16 %v6861_v11  ;;  %v8352_v13 = vld [vmem:[#allocation11_spill] sm:$0xff]  ;;  %v8387_v11 = vld [vmem:[#allocation29_spill] sm:$0xff] }
 0x22e   :  { %v8336_v7 = vrot.slane %v6391_v59, 7  ;;  %v2424_v61 = vsel %vm2371_vm9, %v1728_v8, %v2423_v5  ;;  %v2565_v33 = vsel %vm6865_vm11, 0.0, %v6875_v49  ;;  %v2604_v15 = vrot.slane %v6912_v29, 1  ;;  %v8378_v49 = vld [vmem:[#allocation28_spill] sm:$0xff] }
 0x22f   :  { %v6925_v50 = vsel %vm8067_vm15, %v1861_v10, %v2440_v37  ;;  %v1749_v46 = vmax.f32 %v1747_v28, %v1748_v43  ;;  %v2425_v42 = vsel %vm2373_vm10, %v1735_v56, %v2424_v61  ;;  %v2215_v4 = vand.u32 3, %v8337_v52  ;;  %v8348_v56 = vld [vmem:[#allocation20_spill] sm:$0xff]  ;;  %v4513_v28 = vld [vmem:[%s7963_s3 + $0x8] sm:$0xff] }
 0x230   :  { %v6922_v53 = vsel %vm8064_vm3, %v2515_v51, %v8336_v7  ;;  %v4743_v21 = vpack.i.bf16 %v6925_v50, %v6912_v29  ;;  %v2216_v8 = vand.u32 3, %v8338_v47  ;;  %v2446_v6 = vsel %vm2373_vm10, %v8340_v44, %v8339_v35  ;;  %v8353_v43 = vld [vmem:[#allocation12_spill] sm:$0xff]  ;;  %v8359_v44 = vld [vmem:[#allocation9_spill] sm:$0xff]  ;;  %2881 = vmatpush.bf16.msra.mxu1 %v4513_v28 }
 0x231   :  { %v8341_v63 = vand.u32 3, %v4951_v12  ;;  %v2426_v23 = vsel %vm8068_vm14, %v1742_v40, %v2425_v42  ;;  %v2447_v41 = vsel %vm8068_vm14, %v8344_v30, %v2446_v6  ;;  %v2453_v27 = vsel %vm2373_vm10, %v8346_v22, %v8345_v34  ;;  %v8358_v42 = vld [vmem:[#allocation8_spill] sm:$0xff]  ;;  %v8360_v30 = vld [vmem:[#allocation13_spill] sm:$0xff]  ;;  %v8361_v34 = vld [vmem:[#allocation14_spill] sm:$0xff] }
 0x232   :  { %4744 = vrot.lane.b32.xlu1 %v4743_v21, %s4858_s29  ;;  %v2460_v20 = vsel %vm2373_vm10, %v8348_v56, %v8347_v19  ;;  %v6960_v0 = vsel %vm8067_vm15, %v1749_v46, %v2426_v23  ;;  %v6964_v24 = vsel %vm8067_vm15, %v8349_v25, %v2447_v41  ;;  %v2454_v36 = vsel %vm8068_vm14, %v8350_v45, %v2453_v27  ;;  %v4512_v27 = vld [vmem:[%s7963_s3] sm:$0xff]  ;;  %s4386_s3 = sshll.u32 %s4859_s19, 4  ;;  %s4387_s3 = int_to_ptr.vmem [resolvable:$true] %s4386_s3 }
 0x233   :  { %vm6945_vm1 = vcmp.eq.s32.totalorder %v8341_v63, 0  ;;  %v2461_v57 = vsel %vm8068_vm14, %v8351_v55, %v2460_v20  ;;  %vm2788_vm2 = vcmask 130048   ;;  %v2605_v10 = vrot.slane %v6925_v50, 1 }
 0x234   :  { %v2603_v3 = vrot.slane %v6960_v0, 1  ;;  %v4733_v37 = vpack.i.bf16 %v6960_v0, %v6826_v17  ;;  %v6979_v40 = vsel %vm8067_vm15, %v8352_v13, %v2454_v36  ;;  %v6983_v5 = vsel %vm8067_vm15, %v8353_v43, %v2461_v57  ;;  %v8364_v43 = vld [vmem:[#allocation45_spill] sm:$0xff]  ;;  %2882 = vmatpush.bf16.msra.mxu1 %v4512_v27 }
 0x235   :  { %vm6987_vm4 = vcmp.eq.s32.totalorder %v2215_v4, 3  ;;  %vm6993_vm12 = vcmp.eq.s32.totalorder %v2216_v8, 3  ;;  %v2606_v21 = vrot.slane %v6964_v24, 1  ;;  %v2607_v46 = vrot.slane %v6979_v40, 1 }
 0x236   :  { %4734 = vrot.lane.b32.xlu2 %v4733_v37, %s4858_s29  ;;  %v2608_v60 = vrot.slane %v6983_v5, 1  ;;  %v2211_v35 = vand.u32 3, %v8358_v42  ;;  %v2212_v6 = vand.u32 3, %v8359_v44  ;;  %v2619_v63 = vsel %vm8066_vm0, %v2603_v3, %v2604_v15 }
 0x237   :  { %v2620_v23 = vsel %vm8066_vm0, %v2602_v31, %v2603_v3  ;;  %v2213_v41 = vand.u32 3, %v8360_v30  ;;  %v2214_v22 = vand.u32 3, %v8361_v34  ;;  %v2616_v56 = vsel %vm8066_vm0, %v2606_v21, %v2607_v46  ;;  %v8362_v3 = vld [vmem:[#allocation42_spill] sm:$0xff] }
 0x238   :  { %v2615_v19 = vsel %vm8066_vm0, %v2607_v46, %v2608_v60  ;;  %vm2586_vm7 = vcmp.eq.s32.totalorder %v2211_v35, 3  ;;  %vm2587_vm13 = vcmp.eq.s32.totalorder %v2212_v6, 3  ;;  %v2670_v31 = vsel %vm6987_vm4, 0.0, %v2616_v56  ;;  %v8368_v56 = vld [vmem:[#allocation38_spill] sm:$0xff] }
 0x239   :  { %v2671_v20 = vsel %vm6993_vm12, 0.0, %v2615_v19  ;;  %v2666_v25 = vsel %vm2586_vm7, 0.0, %v2620_v23  ;;  %v2667_v45 = vsel %vm2587_vm13, 0.0, %v2619_v63  ;;  %vm2588_vm3 = vcmp.eq.s32.totalorder %v2213_v41, 3  ;;  %v8365_v63 = vld [vmem:[#allocation41_spill] sm:$0xff]  ;;  %v8367_v19 = vld [vmem:[#allocation40_spill] sm:$0xff] }
 0x23a   :  { %v4758_v36 = vpack.i.bf16 %v2671_v20, %v2670_v31  ;;  %v4738_v55 = vpack.i.bf16 %v2667_v45, %v2666_v25  ;;  %vm2589_vm6 = vcmp.eq.s32.totalorder %v2214_v22, 3  ;;  %v2617_v57 = vsel %vm8066_vm0, %v2605_v10, %v2606_v21  ;;  %v8369_v20 = vld [vmem:[#allocation39_spill] sm:$0xff] }
 0x23b   :  { %v2618_v28 = vsel %vm8066_vm0, %v2604_v15, %v2605_v10  ;;  %v8363_v37 = vrot.slane %v8362_v3, 1  ;;  %v2133_v7 = vrot.slane %v8364_v43, 1  ;;  %v2669_v46 = vsel %vm2589_vm6, 0.0, %v2617_v57  ;;  %v8371_v57 = vld [vmem:[#allocation33_spill] sm:$0xff] }
 0x23c   :  { %4759 = vrot.lane.b32.xlu1 %v4758_v36, %s4856_s17  ;;  %4739 = vrot.lane.b32.xlu0 %v4738_v55, %s4856_s17  ;;  %v2668_v61 = vsel %vm2588_vm3, 0.0, %v2618_v28  ;;  %v8366_v23 = vrot.slane %v8365_v63, 2  ;;  %v2471_v15 = vsel %vm2367_vm5, %v8368_v56, %v8367_v19  ;;  %v2564_v10 = vsel %vm6945_vm1, 0.0, %v6922_v53  ;;  %v8370_v36 = vld [vmem:[#allocation44_spill] sm:$0xff] }
 0x23d   :  { %v2127_v13 = vmax.f32 %v8362_v3, %v8363_v37  ;;  %v4748_v31 = vpack.i.bf16 %v2669_v46, %v2668_v61  ;;  %v2134_v27 = vmax.f32 %v8364_v43, %v2133_v7  ;;  %v2472_v25 = vsel %vm2369_vm8, %v8369_v20, %v2471_v15  ;;  %v8373_v37 = vld [vmem:[#allocation35_spill] sm:$0xff]  ;;  %v8374_v43 = vld [vmem:[#allocation34_spill] sm:$0xff] }
 0x23e   :  { %v2139_v21 = vmax.f32 %v8365_v63, %v8366_v23  ;;  %v2473_v55 = vsel %vm2371_vm9, %v8370_v36, %v2472_v25  ;;  %v8372_v28 = vrot.slane %v8371_v57, 1  ;;  %v2077_v63 = vrot.slane %v8373_v37, 1  ;;  %v8376_v46 = vld [vmem:[#allocation31_spill] sm:$0xff]  ;;  %v8380_v25 = vld [vmem:[#allocation21_spill] sm:$0xff] }
 0x23f   :  { %v2790_v53 = vsel %vm2788_vm2, %v2565_v33, %v4707_v32  ;;  %4749 = vrot.lane.b32.xlu2 %v4748_v31, %s4856_s17  ;;  %v2474_v54 = vsel %vm2373_vm10, %v2127_v13, %v2473_v55  ;;  %v8375_v7 = vrot.slane %v8374_v43, 2  ;;  %v8377_v23 = vld [vmem:[#allocation27_spill] sm:$0xff]  ;;  %v4753_v33 = vpack.i.bf16 %v6979_v40, %v6964_v24  ;;  %v8379_v31 = vld [vmem:[#allocation36_spill] sm:$0xff] }
 0x240   :  { %v2140_v45 = vrot.slane %v2139_v21, 1  ;;  %v2071_v3 = vmax.f32 %v8371_v57, %v8372_v28  ;;  %v2464_v19 = vsel %vm2367_vm5, %v8377_v23, %v8376_v46  ;;  %v2475_v15 = vsel %vm8068_vm14, %v2134_v27, %v2474_v54  ;;  %v8381_v27 = vld [vmem:[#allocation23_spill] sm:$0xff]  ;;  %v8382_v57 = vld [vmem:[#allocation30_spill] sm:$0xff] }
 0x241   :  { %v2083_v61 = vmax.f32 %v8374_v43, %v8375_v7  ;;  %v2078_v2 = vmax.f32 %v8373_v37, %v2077_v63  ;;  %v2465_v32 = vsel %vm2369_vm8, %v8378_v49, %v2464_v19  ;;  %v2217_v36 = vand.u32 3, %v8380_v25  ;;  %v4710_v37 = vpop.permute.xlu0 %4709 }
 0x242   :  { %v2141_v56 = vmax.f32 %v2139_v21, %v2140_v45  ;;  %v2466_v20 = vsel %vm2371_vm9, %v8379_v31, %v2465_v32  ;;  %v2218_v45 = vand.u32 3, %v8381_v27  ;;  %v2220_v28 = vand.u32 3, %v8382_v57 }
 0x243   :  { %v2084_v13 = vrot.slane %v2083_v61, 1  ;;  %v2467_v21 = vsel %vm2373_vm10, %v2071_v3, %v2466_v20  ;;  %v2789_v63 = vsel %vm2788_vm2, %v2564_v10, %v4706_v39  ;;  %vm7095_vm3 = vcmp.eq.s32.totalorder %v2217_v36, 3 }
 0x244   :  { %v7085_v55 = vsel %vm8067_vm15, %v2141_v56, %v2475_v15  ;;  %4754 = vrot.lane.b32.xlu0 %v4753_v33, %s4858_s29  ;;  %v2468_v3 = vsel %vm8068_vm14, %v2078_v2, %v2467_v21  ;;  %vm7102_vm6 = vcmp.eq.s32.totalorder %v2218_v45, 3  ;;  %v2219_v39 = vand.u32 3, %v8387_v11  ;;  %v4715_v2 = vpop.permute.xlu1 %4714 }
 0x245   :  { %v4773_v54 = vpack.i.bf16 %v6854_v18, %v7085_v55  ;;  %v2085_v43 = vmax.f32 %v2083_v61, %v2084_v13  ;;  %v2610_v46 = vrot.slane %v7085_v55, 1  ;;  %v2611_v61 = vrot.slane %v6854_v18, 1 }
 0x246   :  { %v4712_v19 = vunpack.i.h.bf16 %v4710_v37  ;;  %v4711_v56 = vunpack.i.l.bf16 %v4710_v37  ;;  %vm7111_vm7 = vcmp.eq.s32.totalorder %v2219_v39, 3  ;;  %vm7117_vm12 = vcmp.eq.s32.totalorder %v2220_v28, 3 }
 0x247   :  { %4774 = vrot.lane.b32.xlu1 %v4773_v54, %s4858_s29  ;;  %v2469_v10 = vsel %vm8067_vm15, %v2085_v43, %v2468_v3  ;;  %v2612_v33 = vsel %vm8066_vm0, %v2610_v46, %v2611_v61  ;;  %v8392_v13 = vrot.slane %v6391_v59, 1  ;;  %vm8393_vm13 = vcmask 261120  }
 0x248   :  { %v2609_v15 = vrot.slane %v2469_v10, 1  ;;  %v4763_v49 = vpack.i.bf16 %v2469_v10, %v6983_v5  ;;  %v2805_v20 = vsel %vm8393_vm13, %v2789_v63, %v4711_v56  ;;  %vm8394_vm11 = vmmov %vm8393_vm13  ;;  %vm2850_vm1 = vcmask 392192  }
 0x249   :  { %v2627_v31 = vsel %vm8066_vm0, %v2611_v61, %v8392_v13  ;;  %v2806_v25 = vsel %vm8394_vm11, %v2790_v53, %v4712_v19  ;;  %v2505_v53 = vrot.slane %v6808_v62, 7  ;;  %v2674_v43 = vsel %vm7111_vm7, 0.0, %v2612_v33  ;;  %v8410_v13 = vld [vmem:[#allocation5_spill] sm:$0xff] }
 0x24a   :  { %4764 = vrot.lane.b32.xlu2 %v4763_v49, %s4858_s29  ;;  %v2613_v21 = vsel %vm8066_vm0, %v2609_v15, %v2610_v46  ;;  %v2614_v27 = vsel %vm8066_vm0, %v2608_v60, %v2609_v15  ;;  %v2821_v63 = vpack.c.bf16 %v2806_v25, %v2805_v20  ;;  %v2675_v46 = vsel %vm7117_vm12, 0.0, %v2627_v31  ;;  %v8412_v20 = vld [vmem:[#allocation6_spill] sm:$0xff] }
 0x24b   :  { %v2672_v59 = vsel %vm7095_vm3, 0.0, %v2614_v27  ;;  %v2673_v37 = vsel %vm7102_vm6, 0.0, %v2613_v21  ;;  %v2503_v3 = vrot.slane %v6622_v48, 7  ;;  %v2513_v60 = vrot.slane %v2469_v10, 7 }
 0x24c   :  { %v4768_v54 = vpack.i.bf16 %v2673_v37, %v2672_v59  ;;  %4452 = vmatmul.msk.bf16.vlgmr.msra.gmra.mxu1 %vm2850_vm1, %v2821_v63  ;;  %vm7150_vm4 = vcmp.eq.s32.totalorder %v2209_v1, 0  ;;  %vm7156_vm3 = vcmp.eq.s32.totalorder %v2210_v9, 0  ;;  %v2504_v23 = vrot.slane %v6719_v58, 7  ;;  %v7343_v9 = vld [vmem:[%s7964_s4] ss:$0 sm:$0xff] }
 0x24d   :  { %v4778_v48 = vpack.i.bf16 %v2675_v46, %v2674_v43  ;;  %vm7161_vm6 = vcmp.eq.s32.totalorder %v2217_v36, 0  ;;  %v2512_v10 = vrot.slane %v6983_v5, 7  ;;  %vm8401_vm7 = vcmp.lt.s32.totalorder %v4951_v12, 1 }
 0x24e   :  { %4769 = vrot.lane.b32.xlu0 %v4768_v54, %s4856_s17  ;;  %v7168_v1 = vsel %vm8401_vm7, %v2504_v23, %v2505_v53  ;;  %vm8402_vm12 = vmmov %vm8401_vm7  ;;  %vm7174_vm13 = vcmp.eq.s32.totalorder %v2218_v45, 0  ;;  %v2511_v58 = vrot.slane %v6979_v40, 7  ;;  %v2510_v56 = vrot.slane %v6964_v24, 7  ;;  %v8409_v24 = vld [vmem:[#allocation32_spill] sm:$0xff] }
 0x24f   :  { %v7172_v61 = vsel %vm8402_vm12, %v2503_v3, %v2504_v23  ;;  %v2569_v5 = vsel %vm7156_vm3, 0.0, %v7168_v1  ;;  %vm8405_vm11 = vmmov %vm8401_vm7  ;;  %vm7196_vm12 = vcmp.eq.s32.totalorder %v2216_v8, 0  ;;  %v2514_v8 = vrot.slane %v7085_v55, 7 }
 0x250   :  { %v2568_v36 = vsel %vm7150_vm4, 0.0, %v7172_v61  ;;  %v7188_v19 = vsel %vm8405_vm11, %v2512_v10, %v2513_v60  ;;  %v7192_v45 = vsel %vm8401_vm7, %v2511_v58, %v2512_v10  ;;  %vm8408_vm4 = vmmov %vm8401_vm7  ;;  %v2502_v33 = vrot.slane %v8409_v24, 7 }
 0x251   :  { %v2576_v15 = vsel %vm7161_vm6, 0.0, %v7192_v45  ;;  %v2577_v49 = vsel %vm7174_vm13, 0.0, %v7188_v19  ;;  %v7209_v32 = vsel %vm8408_vm4, %v2510_v56, %v2511_v58  ;;  %v8411_v31 = vand.u32 3, %v8410_v13  ;;  %vm8416_vm0 = vmmov %vm8408_vm4 }
 0x252   :  { %4779 = vrot.lane.b32.xlu2 %v4778_v48, %s4856_s17  ;;  %v2575_v47 = vsel %vm7196_vm12, 0.0, %v7209_v32  ;;  %v8413_v25 = vand.u32 3, %v8412_v20  ;;  %v4717_v21 = vunpack.i.h.bf16 %v4715_v2  ;;  %vm7220_vm7 = vcmp.eq.s32.totalorder %v2219_v39, 0  ;;  %vm8418_vm15 = vmmov %vm8416_vm0 }
 0x253   :  { %vm2223_vm3 = vcmp.eq.s32.totalorder %v8411_v31, 0  ;;  %v7226_v59 = vsel %vm8408_vm4, %v2513_v60, %v2514_v8  ;;  %v4716_v37 = vunpack.i.l.bf16 %v4715_v2  ;;  %v2528_v55 = vsel %vm8416_vm0, %v2502_v33, %v2503_v3 }
 0x254   :  { %vm2224_vm11 = vcmp.eq.s32.totalorder %v8413_v25, 0  ;;  %v8417_v63 = vrot.slane %v6396_v14, 7  ;;  %v2578_v39 = vsel %vm7220_vm7, 0.0, %v7226_v59  ;;  %vm8419_vm4 = vcmask 261120  }
 0x255   :  { %v2567_v46 = vsel %vm2224_vm11, 0.0, %v2528_v55  ;;  %vm8420_vm0 = vmmov %vm8419_vm4  ;;  %v2506_v1 = vrot.slane %v6826_v17, 7  ;;  %v2507_v2 = vrot.slane %v6960_v0, 7  ;;  %vm7256_vm11 = vcmp.eq.s32.totalorder %v2220_v28, 0 }
 0x256   :  { %v2529_v54 = vsel %vm8418_vm15, %v8417_v63, %v2502_v33  ;;  %v2792_v60 = vsel %vm2788_vm2, %v2567_v46, %v4717_v21  ;;  %vm7245_vm15 = vcmp.eq.s32.totalorder %v2211_v35, 0  ;;  %v2508_v28 = vrot.slane %v6912_v29, 7 }
 0x257   :  { %v2566_v43 = vsel %vm2223_vm3, 0.0, %v2529_v54  ;;  %vm8423_vm3 = vcmp.lt.s32.totalorder %v4951_v12, 1  ;;  %vm3052_vm6 = vcmask 254976  }
 0x258   :  { %v2791_v62 = vsel %vm2788_vm2, %v2566_v43, %v4716_v37  ;;  %v2525_v58 = vsel %vm8423_vm3, %v2505_v53, %v2506_v1 }
 0x259   :  { %v2570_v24 = vsel %vm7245_vm15, 0.0, %v2525_v58  ;;  %vm8429_vm15 = vmmov %vm8423_vm3 }
 0x25a   :  { %v2524_v57 = vsel %vm8429_vm15, %v2506_v1, %v2507_v2  ;;  %vm7293_vm15 = vcmp.eq.s32.totalorder %v2215_v4, 0 }
 0x260   :  { %v4720_v7 = vpop.permute.xlu2 %4719 }
 0x261   :  { %v4722_v23 = vunpack.i.h.bf16 %v4720_v7  ;;  %v4721_v48 = vunpack.i.l.bf16 %v4720_v7 }
 0x263   :  { %v2807_v3 = vsel %vm8419_vm4, %v2791_v62, %v4721_v48  ;;  %v2808_v14 = vsel %vm8420_vm0, %v2792_v60, %v4722_v23  ;;  %vm8426_vm4 = vmmov %vm8423_vm3  ;;  %vm7271_vm0 = vcmp.eq.s32.totalorder %v2212_v6, 0  ;;  %vm7283_vm3 = vcmp.eq.s32.totalorder %v2214_v22, 0 }
 0x264   :  { %v2822_v10 = vpack.c.bf16 %v2808_v14, %v2807_v3  ;;  %v7264_v17 = vsel %vm8426_vm4, %v2514_v8, %v2515_v51  ;;  %v2571_v18 = vsel %vm7271_vm0, 0.0, %v2524_v57  ;;  %v2509_v51 = vrot.slane %v6925_v50, 7  ;;  %vm8434_vm0 = vmmov %vm8426_vm4 }
 0x265   :  { %v2579_v35 = vsel %vm7256_vm11, 0.0, %v7264_v17  ;;  %vm8435_vm14 = vmmov %vm8434_vm0  ;;  %vm8449_vm11 = vcmask 1046534  }
 0x266   :  { %4453 = vmatmul.msk.bf16.gmra.mxu1 %vm2850_vm1, %v2822_v10  ;;  %v2522_v6 = vsel %vm8426_vm4, %v2508_v28, %v2509_v51  ;;  %v2521_v50 = vsel %vm8434_vm0, %v2509_v51, %v2510_v56  ;;  %v2523_v22 = vsel %vm8435_vm14, %v2507_v2, %v2508_v28  ;;  %vm2229_vm14 = vcmp.eq.s32.totalorder %v2213_v41, 0 }
 0x267   :  { %v2573_v8 = vsel %vm7283_vm3, 0.0, %v2522_v6  ;;  %v2574_v34 = vsel %vm7293_vm15, 0.0, %v2521_v50  ;;  %vm8436_vm3 = vcmask 261120  }
 0x268   :  { %vm8437_vm4 = vmmov %vm8436_vm3 }
 0x269   :  { %vm8438_vm15 = vmmov %vm8436_vm3 }
 0x26a   :  { %vm8439_vm0 = vmmov %vm8436_vm3 }
 0x26b   :  { %vm8444_vm12 = vmmov %vm8439_vm0 }
 0x26c   :  { %vm8445_vm13 = vmmov %vm8439_vm0 }
 0x26d   :  { %vm8446_vm7 = vmmov %vm8439_vm0 }
 0x28c   :  { %v4725_v31 = vpop.permute.xlu0 %4724 }
 0x28d   :  { %v4727_v25 = vunpack.i.h.bf16 %v4725_v31  ;;  %v4726_v21 = vunpack.i.l.bf16 %v4725_v31 }
 0x28f   :  { %v2794_v52 = vsel %vm2788_vm2, %v2569_v5, %v4727_v25  ;;  %v2793_v4 = vsel %vm2788_vm2, %v2568_v36, %v4726_v21  ;;  %v2572_v5 = vsel %vm2229_vm14, 0.0, %v2523_v22  ;;  %vm8442_vm14 = vmmov %vm8439_vm0 }
 0x290   :  { %v4735_v54 = vpop.permute.xlu2 %4734 }
 0x291   :  { %v4737_v58 = vunpack.i.h.bf16 %v4735_v54  ;;  %v4736_v2 = vunpack.i.l.bf16 %v4735_v54 }
 0x293   :  { %v4730_v37 = vpop.permute.xlu1 %4729  ;;  %v2796_v57 = vsel %vm2788_vm2, %v2571_v18, %v4737_v58  ;;  %v2795_v28 = vsel %vm2788_vm2, %v2570_v24, %v4736_v2 }
 0x294   :  { %v4732_v55 = vunpack.i.h.bf16 %v4730_v37  ;;  %v4731_v63 = vunpack.i.l.bf16 %v4730_v37 }
 0x296   :  { %v2809_v43 = vsel %vm8436_vm3, %v2793_v4, %v4731_v63  ;;  %v2810_v56 = vsel %vm8437_vm4, %v2794_v52, %v4732_v55  ;;  %vm8440_vm3 = vmmov %vm8439_vm0 }
 0x297   :  { %v2823_v46 = vpack.c.bf16 %v2810_v56, %v2809_v43  ;;  %vm8441_vm4 = vmmov %vm8439_vm0 }
 0x299   :  { %4454 = vmatmul.msk.bf16.gmra.mxu1 %vm2850_vm1, %v2823_v46  ;;  %v4750_v7 = vpop.permute.xlu2 %4749 }
 0x29a   :  { %v4752_v48 = vunpack.i.h.bf16 %v4750_v7  ;;  %v4751_v3 = vunpack.i.l.bf16 %v4750_v7 }
 0x2a4   :  { %v4745_v62 = vpop.permute.xlu1 %4744  ;;  %v4765_v21 = vpop.permute.xlu2 %4764 }
 0x2a5   :  { %v4747_v60 = vunpack.i.h.bf16 %v4745_v62  ;;  %v4746_v23 = vunpack.i.l.bf16 %v4745_v62  ;;  %v4767_v52 = vunpack.i.h.bf16 %v4765_v21  ;;  %v4766_v4 = vunpack.i.l.bf16 %v4765_v21 }
 0x2a7   :  { %v2798_v36 = vsel %vm2788_vm2, %v2573_v8, %v4747_v60  ;;  %v2797_v14 = vsel %vm2788_vm2, %v2572_v5, %v4746_v23  ;;  %v2802_v40 = vsel %vm2788_vm2, %v2577_v49, %v4767_v52  ;;  %v2801_v32 = vsel %vm2788_vm2, %v2576_v15, %v4766_v4 }
 0x2a8   :  { %v2813_v10 = vsel %vm8438_vm15, %v2797_v14, %v4751_v3  ;;  %v2814_v1 = vsel %vm8439_vm0, %v2798_v36, %v4752_v48  ;;  %vm8443_vm15 = vmmov %vm8439_vm0 }
 0x2a9   :  { %v2825_v61 = vpack.c.bf16 %v2814_v1, %v2813_v10 }
 0x2ae   :  { %v4740_v0 = vpop.permute.xlu0 %4739  ;;  %v4760_v8 = vpop.permute.xlu1 %4759 }
 0x2af   :  { %v4742_v30 = vunpack.i.h.bf16 %v4740_v0  ;;  %v4741_v41 = vunpack.i.l.bf16 %v4740_v0  ;;  %v4762_v31 = vunpack.i.h.bf16 %v4760_v8  ;;  %v4761_v25 = vunpack.i.l.bf16 %v4760_v8 }
 0x2b1   :  { %v2811_v51 = vsel %vm8440_vm3, %v2795_v28, %v4741_v41  ;;  %v2812_v53 = vsel %vm8441_vm4, %v2796_v57, %v4742_v30  ;;  %vm8450_vm3 = vmmov %vm8449_vm11  ;;  %vm8451_vm4 = vcmask 1047559  }
 0x2b2   :  { %v2824_v6 = vpack.c.bf16 %v2812_v53, %v2811_v51 }
 0x2b4   :  { %4455 = vmatmul.msk.bf16.gmra.mxu1 %vm2850_vm1, %v2824_v6 }
 0x2b6   :  { %v4755_v29 = vpop.permute.xlu0 %4754 }
 0x2b7   :  { %v4757_v50 = vunpack.i.h.bf16 %v4755_v29  ;;  %v4756_v22 = vunpack.i.l.bf16 %v4755_v29 }
 0x2b9   :  { %v2800_v24 = vsel %vm2788_vm2, %v2575_v47, %v4757_v50  ;;  %v2799_v18 = vsel %vm2788_vm2, %v2574_v34, %v4756_v22  ;;  %v4775_v15 = vpop.permute.xlu1 %4774 }
 0x2ba   :  { %v2815_v37 = vsel %vm8442_vm14, %v2799_v18, %v4761_v25  ;;  %v2816_v55 = vsel %vm8443_vm15, %v2800_v24, %v4762_v31  ;;  %v4776_v5 = vunpack.i.l.bf16 %v4775_v15  ;;  %v4777_v36 = vunpack.i.h.bf16 %v4775_v15  ;;  %vm8452_vm14 = vmmov %vm8451_vm4 }
 0x2bb   :  { %v2826_v63 = vpack.c.bf16 %v2816_v55, %v2815_v37 }
 0x2bc   :  { %v2803_v0 = vsel %vm2788_vm2, %v2578_v39, %v4776_v5  ;;  %v2804_v57 = vsel %vm2788_vm2, %v2579_v35, %v4777_v36  ;;  %vm8447_vm2 = vcmask 1041409  }
 0x2c0   :  { %v4770_v54 = vpop.permute.xlu0 %4769 }
 0x2c1   :  { %v4772_v43 = vunpack.i.h.bf16 %v4770_v54  ;;  %v4771_v56 = vunpack.i.l.bf16 %v4770_v54 }
 0x2c3   :  { %v2817_v47 = vsel %vm8444_vm12, %v2801_v32, %v4771_v56  ;;  %v2818_v34 = vsel %vm8439_vm0, %v2802_v40, %v4772_v43  ;;  %vm8454_vm12 = vmmov %vm8450_vm3 }
 0x2c4   :  { %v2827_v46 = vpack.c.bf16 %v2818_v34, %v2817_v47  ;;  %4456 = vmatmul.msk.bf16.gmra.mxu1 %vm2850_vm1, %v2825_v61  ;;  %v4780_v61 = vpop.permute.xlu2 %4779 }
 0x2c5   :  { %v4781_v41 = vunpack.i.l.bf16 %v4780_v61  ;;  %v4782_v53 = vunpack.i.h.bf16 %v4780_v61 }
 0x2c7   :  { %v7364_v59 = vsel %vm8445_vm13, %v2803_v0, %v4781_v41  ;;  %v7367_v22 = vsel %vm8446_vm7, %v2804_v57, %v4782_v53  ;;  %vm8459_vm7 = vcmp.lt.s32.totalorder %v4951_v12, 7 }
 0x2c8   :  { %v2828_v21 = vpack.c.bf16 %v7367_v22, %v7364_v59 }
 0x2c9   :  { %v2884_v19 = vpop.f32.mrf.mxu1 }
 0x2ca   :  { %v2885_v49 = vadd.f32 %v7343_v9, %v2884_v19 }
 0x2cc   :  { %v2924_v11 = vmax.f32 %v2885_v49, 0.0 }
 0x2ce   :  { %v2956_v7 = vrot.slane %v2924_v11, 2  ;;  %v2957_v62 = vrot.slane %v2924_v11, 4  ;;  %v3053_v23 = vsel %vm3052_vm6, %v2924_v11, -inf  ;;  %v2958_v48 = vrot.slane %v2924_v11, 6 }
 0x2cf   :  { %v3054_v14 = vrot.slane %v3053_v23, 4 }
 0x2d0   :  { %v3060_v3 = vsel %vm3052_vm6, %v2956_v7, -inf  ;;  %v3067_v10 = vsel %vm3052_vm6, %v2957_v62, -inf  ;;  %v3074_v2 = vsel %vm3052_vm6, %v2958_v48, -inf }
 0x2d1   :  { %v2886_v45 = vpop.f32.mrf.mxu1  ;;  %v3061_v58 = vrot.slane %v3060_v3, 4  ;;  %v3068_v30 = vrot.slane %v3067_v10, 4  ;;  %v3055_v28 = vmax.f32 %v3053_v23, %v3054_v14  ;;  %v3075_v8 = vrot.slane %v3074_v2, 4 }
 0x2d2   :  { %v2887_v60 = vadd.f32 %v7343_v9, %v2886_v45 }
 0x2d3   :  { %v3062_v6 = vmax.f32 %v3060_v3, %v3061_v58  ;;  %v3069_v39 = vmax.f32 %v3067_v10, %v3068_v30  ;;  %v3056_v33 = vrot.slane %v3055_v28, 2  ;;  %v3076_v35 = vmax.f32 %v3074_v2, %v3075_v8 }
 0x2d4   :  { %4457 = vmatmul.msk.bf16.gmra.mxu1 %vm2850_vm1, %v2826_v63  ;;  %v2925_v1 = vmax.f32 %v2887_v60, 0.0 }
 0x2d5   :  { %v3063_v31 = vrot.slane %v3062_v6, 2  ;;  %v3070_v18 = vrot.slane %v3069_v39, 2  ;;  %v3057_v52 = vmax.f32 %v3055_v28, %v3056_v33  ;;  %v3077_v54 = vrot.slane %v3076_v35, 2 }
 0x2d6   :  { %v3081_v51 = vsel %vm3052_vm6, %v2925_v1, -inf  ;;  %v2959_v29 = vrot.slane %v2925_v1, 2  ;;  %v2960_v27 = vrot.slane %v2925_v1, 4  ;;  %v2961_v17 = vrot.slane %v2925_v1, 6 }
 0x2d7   :  { %v3082_v50 = vrot.slane %v3081_v51, 4  ;;  %v3064_v4 = vmax.f32 %v3062_v6, %v3063_v31  ;;  %v3071_v56 = vmax.f32 %v3069_v39, %v3070_v18  ;;  %v3058_v34 = vrot.slane %v3057_v52, 1 }
 0x2d8   :  { %v3088_v25 = vsel %vm3052_vm6, %v2959_v29, -inf  ;;  %v3095_v24 = vsel %vm3052_vm6, %v2960_v27, -inf  ;;  %v3102_v63 = vsel %vm3052_vm6, %v2961_v17, -inf  ;;  %v3078_v49 = vmax.f32 %v3076_v35, %v3077_v54 }
 0x2d9   :  { %v3083_v37 = vmax.f32 %v3081_v51, %v3082_v50  ;;  %v3089_v55 = vrot.slane %v3088_v25, 4  ;;  %v3096_v43 = vrot.slane %v3095_v24, 4  ;;  %v3103_v32 = vrot.slane %v3102_v63, 4 }
 0x2da   :  { %v3065_v19 = vrot.slane %v3064_v4, 1  ;;  %v3072_v15 = vrot.slane %v3071_v56, 1  ;;  %v3059_v3 = vmax.f32 %v3057_v52, %v3058_v34  ;;  %v3079_v36 = vrot.slane %v3078_v49, 1 }
 0x2db   :  { %v3084_v40 = vrot.slane %v3083_v37, 2  ;;  %v3090_v47 = vmax.f32 %v3088_v25, %v3089_v55  ;;  %v3097_v11 = vmax.f32 %v3095_v24, %v3096_v43  ;;  %v3104_v60 = vmax.f32 %v3102_v63, %v3103_v32 }
 0x2dc   :  { %v3066_v5 = vmax.f32 %v3064_v4, %v3065_v19  ;;  %v3073_v58 = vmax.f32 %v3071_v56, %v3072_v15  ;;  %v3080_v39 = vmax.f32 %v3078_v49, %v3079_v36 }
 0x2dd   :  { %v3085_v62 = vmax.f32 %v3083_v37, %v3084_v40  ;;  %v3091_v23 = vrot.slane %v3090_v47, 2  ;;  %v3098_v14 = vrot.slane %v3097_v11, 2  ;;  %v3105_v0 = vrot.slane %v3104_v60, 2 }
 0x2de   :  { %v3594_v50 = vsel %vm8447_vm2, %v3066_v5, %v3059_v3 }
 0x2df   :  { %v3086_v2 = vrot.slane %v3085_v62, 1  ;;  %v3092_v41 = vmax.f32 %v3090_v47, %v3091_v23  ;;  %v3099_v33 = vmax.f32 %v3097_v11, %v3098_v14  ;;  %v3106_v63 = vmax.f32 %v3104_v60, %v3105_v0 }
 0x2e0   :  { %v3595_v11 = vsel %vm2367_vm5, %v3073_v58, %v3594_v50 }
 0x2e1   :  { %v3087_v18 = vmax.f32 %v3085_v62, %v3086_v2  ;;  %v3093_v37 = vrot.slane %v3092_v41, 1  ;;  %v3100_v3 = vrot.slane %v3099_v33, 1 }
 0x2e3   :  { %v2889_v7 = vpop.f32.mrf.mxu1 }
 0x2e4   :  { %4458 = vmatmul.msk.bf16.gmra.mxu1 %vm2850_vm1, %v2827_v46  ;;  %v2890_v45 = vadd.f32 %v7343_v9, %v2889_v7 }
 0x2e6   :  { %v2926_v48 = vmax.f32 %v2890_v45, 0.0 }
 0x2e8   :  { %v2962_v46 = vrot.slane %v2926_v48, 2  ;;  %v2963_v10 = vrot.slane %v2926_v48, 4  ;;  %v2964_v1 = vrot.slane %v2926_v48, 6  ;;  %v3109_v61 = vsel %vm3052_vm6, %v2926_v48, -inf }
 0x2e9   :  { %v3110_v30 = vrot.slane %v3109_v61, 4 }
 0x2ea   :  { %v3116_v57 = vsel %vm3052_vm6, %v2962_v46, -inf  ;;  %v3123_v28 = vsel %vm3052_vm6, %v2963_v10, -inf  ;;  %v3130_v51 = vsel %vm3052_vm6, %v2964_v1, -inf  ;;  %v3596_v10 = vsel %vm2369_vm8, %v3080_v39, %v3595_v11 }
 0x2eb   :  { %v3111_v53 = vmax.f32 %v3109_v61, %v3110_v30  ;;  %v3117_v6 = vrot.slane %v3116_v57, 4  ;;  %v3124_v8 = vrot.slane %v3123_v28, 4  ;;  %v3131_v29 = vrot.slane %v3130_v51, 4  ;;  %v2891_v27 = vpop.f32.mrf.mxu1 }
 0x2ec   :  { %v2892_v17 = vadd.f32 %v7343_v9, %v2891_v27 }
 0x2ed   :  { %v3112_v31 = vrot.slane %v3111_v53, 2  ;;  %v3118_v35 = vmax.f32 %v3116_v57, %v3117_v6  ;;  %v3125_v25 = vmax.f32 %v3123_v28, %v3124_v8  ;;  %v3132_v24 = vmax.f32 %v3130_v51, %v3131_v29 }
 0x2ee   :  { %v2927_v55 = vmax.f32 %v2892_v17, 0.0  ;;  %v3094_v57 = vmax.f32 %v3092_v41, %v3093_v37  ;;  %v3597_v28 = vsel %vm2371_vm9, %v3087_v18, %v3596_v10 }
 0x2ef   :  { %v3113_v52 = vmax.f32 %v3111_v53, %v3112_v31  ;;  %v3119_v4 = vrot.slane %v3118_v35, 2  ;;  %v3126_v54 = vrot.slane %v3125_v25, 2  ;;  %v3133_v43 = vrot.slane %v3132_v24, 2 }
 0x2f0   :  { %v2965_v56 = vrot.slane %v2927_v55, 2  ;;  %v2966_v40 = vrot.slane %v2927_v55, 4  ;;  %v2967_v32 = vrot.slane %v2927_v55, 6  ;;  %v3137_v47 = vsel %vm3052_vm6, %v2927_v55, -inf }
 0x2f1   :  { %v3114_v34 = vrot.slane %v3113_v52, 1  ;;  %v3120_v19 = vmax.f32 %v3118_v35, %v3119_v4  ;;  %v3127_v49 = vmax.f32 %v3125_v25, %v3126_v54  ;;  %v3138_v7 = vrot.slane %v3137_v47, 4 }
 0x2f2   :  { %v3144_v45 = vsel %vm3052_vm6, %v2965_v56, -inf  ;;  %v3151_v15 = vsel %vm3052_vm6, %v2966_v40, -inf  ;;  %v3158_v62 = vsel %vm3052_vm6, %v2967_v32, -inf  ;;  %v3134_v48 = vmax.f32 %v3132_v24, %v3133_v43 }
 0x2f3   :  { %v3121_v60 = vrot.slane %v3120_v19, 1  ;;  %v3128_v23 = vrot.slane %v3127_v49, 1  ;;  %v3139_v5 = vmax.f32 %v3137_v47, %v3138_v7  ;;  %v3145_v36 = vrot.slane %v3144_v45, 4 }
 0x2f4   :  { %4459 = vmatmul.msk.bf16.gmra.mxu1 %vm2850_vm1, %v2828_v21  ;;  %v3152_v14 = vrot.slane %v3151_v15, 4  ;;  %v3159_v46 = vrot.slane %v3158_v62, 4  ;;  %v3115_v59 = vmax.f32 %v3113_v52, %v3114_v34  ;;  %v3135_v0 = vrot.slane %v3134_v48, 1  ;;  %vm8448_vm1 = vmmov %vm8447_vm2 }
 0x2f5   :  { %v3122_v22 = vmax.f32 %v3120_v19, %v3121_v60  ;;  %v3129_v21 = vmax.f32 %v3127_v49, %v3128_v23  ;;  %v3140_v1 = vrot.slane %v3139_v5, 2  ;;  %v3146_v61 = vmax.f32 %v3144_v45, %v3145_v36  ;;  %vm8453_vm15 = vmmov %vm8448_vm1 }
 0x2f6   :  { %v3153_v58 = vmax.f32 %v3151_v15, %v3152_v14  ;;  %v3160_v2 = vmax.f32 %v3158_v62, %v3159_v46  ;;  %v3136_v31 = vmax.f32 %v3134_v48, %v3135_v0  ;;  %v3101_v35 = vmax.f32 %v3099_v33, %v3100_v3  ;;  %vm8460_vm2 = vmmov %vm8451_vm4 }
 0x2f7   :  { %v3601_v30 = vsel %vm8448_vm1, %v3122_v22, %v3115_v59  ;;  %v3141_v51 = vmax.f32 %v3139_v5, %v3140_v1  ;;  %v3147_v53 = vrot.slane %v3146_v61, 2  ;;  %v3107_v25 = vrot.slane %v3106_v63, 1  ;;  %vm8461_vm1 = vmmov %vm8459_vm7 }
 0x2f8   :  { %v3154_v6 = vrot.slane %v3153_v58, 2  ;;  %v3161_v8 = vrot.slane %v3160_v2, 2  ;;  %v3602_v29 = vsel %vm2367_vm5, %v3129_v21, %v3601_v30  ;;  %v3598_v24 = vsel %vm2373_vm10, %v3094_v57, %v3597_v28 }
 0x2f9   :  { %v3142_v27 = vrot.slane %v3141_v51, 1  ;;  %v3148_v50 = vmax.f32 %v3146_v61, %v3147_v53  ;;  %v3603_v18 = vsel %vm2369_vm8, %v3136_v31, %v3602_v29  ;;  %v3599_v56 = vsel %vm8449_vm11, %v3101_v35, %v3598_v24  ;;  %vm8462_vm11 = vmmov %vm8453_vm15 }
 0x2fa   :  { %v3155_v17 = vmax.f32 %v3153_v58, %v3154_v6  ;;  %v3162_v39 = vmax.f32 %v3160_v2, %v3161_v8  ;;  %v3108_v40 = vmax.f32 %v3106_v63, %v3107_v25 }
 0x2fb   :  { %v3143_v55 = vmax.f32 %v3141_v51, %v3142_v27  ;;  %v3149_v52 = vrot.slane %v3148_v50, 1 }
 0x2fc   :  { %v3156_v41 = vrot.slane %v3155_v17, 1  ;;  %v3163_v37 = vrot.slane %v3162_v39, 1  ;;  %v7402_v34 = vsel %vm8451_vm4, %v3108_v40, %v3599_v56  ;;  %vm8464_vm4 = vmmov %vm8454_vm12 }
 0x2fd   :  { %v3150_v4 = vmax.f32 %v3148_v50, %v3149_v52  ;;  %v3604_v43 = vsel %vm2371_vm9, %v3143_v55, %v3603_v18 }
 0x2fe   :  { %v3157_v54 = vmax.f32 %v3155_v17, %v3156_v41  ;;  %v3164_v32 = vmax.f32 %v3162_v39, %v3163_v37 }
 0x2ff   :  { %v3605_v47 = vsel %vm2373_vm10, %v3150_v4, %v3604_v43 }
 0x300   :  { %v3606_v33 = vsel %vm8450_vm3, %v3157_v54, %v3605_v47  ;;  %vm8463_vm3 = vmmov %vm8462_vm11 }
 0x301   :  { %v7405_v19 = vsel %vm8452_vm14, %v3164_v32, %v3606_v33  ;;  %vm8465_vm14 = vmmov %vm8460_vm2 }
 0x302   :  { %v4783_v49 = vpack.i.bf16 %v7405_v19, %v7402_v34 }
 0x304   :  { %4784 = vrot.lane.b32.xlu0 %v4783_v49, %s4856_s17 }
 0x316   :  { %v2894_v11 = vpop.f32.mrf.mxu1 }
 0x317   :  { %v2895_v7 = vadd.f32 %v7343_v9, %v2894_v11 }
 0x319   :  { %v2928_v63 = vmax.f32 %v2895_v7, 0.0 }
 0x31b   :  { %v2968_v45 = vrot.slane %v2928_v63, 2  ;;  %v2969_v15 = vrot.slane %v2928_v63, 4  ;;  %v2970_v62 = vrot.slane %v2928_v63, 6  ;;  %v3165_v60 = vsel %vm3052_vm6, %v2928_v63, -inf }
 0x31c   :  { %v3166_v23 = vrot.slane %v3165_v60, 4 }
 0x31d   :  { %v3172_v48 = vsel %vm3052_vm6, %v2968_v45, -inf  ;;  %v3179_v3 = vsel %vm3052_vm6, %v2969_v15, -inf  ;;  %v3186_v5 = vsel %vm3052_vm6, %v2970_v62, -inf }
 0x31e   :  { %v3167_v36 = vmax.f32 %v3165_v60, %v3166_v23  ;;  %v3173_v14 = vrot.slane %v3172_v48, 4  ;;  %v3180_v46 = vrot.slane %v3179_v3, 4  ;;  %v2896_v59 = vpop.f32.mrf.mxu1  ;;  %v3187_v1 = vrot.slane %v3186_v5, 4 }
 0x31f   :  { %v2897_v22 = vadd.f32 %v7343_v9, %v2896_v59 }
 0x320   :  { %v3174_v21 = vmax.f32 %v3172_v48, %v3173_v14  ;;  %v3181_v10 = vmax.f32 %v3179_v3, %v3180_v46  ;;  %v3168_v58 = vrot.slane %v3167_v36, 2  ;;  %v3188_v6 = vmax.f32 %v3186_v5, %v3187_v1 }
 0x321   :  { %v2929_v61 = vmax.f32 %v2897_v22, 0.0  ;;  %v3658_v3 = vrot.slane %v7402_v34, 7 }
 0x322   :  { %v3175_v2 = vrot.slane %v3174_v21, 2  ;;  %v3182_v53 = vrot.slane %v3181_v10, 2  ;;  %v3169_v17 = vmax.f32 %v3167_v36, %v3168_v58  ;;  %v3189_v24 = vrot.slane %v3188_v6, 2 }
 0x323   :  { %v2971_v0 = vrot.slane %v2929_v61, 2  ;;  %v2972_v30 = vrot.slane %v2929_v61, 4  ;;  %v2973_v57 = vrot.slane %v2929_v61, 6  ;;  %v3193_v28 = vsel %vm3052_vm6, %v2929_v61, -inf }
 0x324   :  { %v3176_v51 = vmax.f32 %v3174_v21, %v3175_v2  ;;  %v3194_v8 = vrot.slane %v3193_v28, 4  ;;  %v3183_v25 = vmax.f32 %v3181_v10, %v3182_v53  ;;  %v3170_v4 = vrot.slane %v3169_v17, 1 }
 0x325   :  { %v3200_v29 = vsel %vm3052_vm6, %v2971_v0, -inf  ;;  %v3207_v27 = vsel %vm3052_vm6, %v2972_v30, -inf  ;;  %v3214_v50 = vsel %vm3052_vm6, %v2973_v57, -inf  ;;  %v3190_v56 = vmax.f32 %v3188_v6, %v3189_v24 }
 0x326   :  { %v3195_v39 = vmax.f32 %v3193_v28, %v3194_v8  ;;  %v3201_v31 = vrot.slane %v3200_v29, 4  ;;  %v3208_v35 = vrot.slane %v3207_v27, 4  ;;  %v3215_v55 = vrot.slane %v3214_v50, 4 }
 0x327   :  { %v3177_v52 = vrot.slane %v3176_v51, 1  ;;  %v3184_v43 = vrot.slane %v3183_v25, 1  ;;  %v3171_v7 = vmax.f32 %v3169_v17, %v3170_v4  ;;  %v3191_v15 = vrot.slane %v3190_v56, 1 }
 0x328   :  { %v3196_v41 = vrot.slane %v3195_v39, 2  ;;  %v3202_v37 = vmax.f32 %v3200_v29, %v3201_v31  ;;  %v3209_v18 = vmax.f32 %v3207_v27, %v3208_v35  ;;  %v3216_v40 = vmax.f32 %v3214_v50, %v3215_v55 }
 0x329   :  { %v3178_v32 = vmax.f32 %v3176_v51, %v3177_v52  ;;  %v3185_v45 = vmax.f32 %v3183_v25, %v3184_v43  ;;  %v3192_v21 = vmax.f32 %v3190_v56, %v3191_v15  ;;  %v3706_v25 = vrot.slane %v7402_v34, 1 }
 0x32a   :  { %v3203_v54 = vrot.slane %v3202_v37, 2  ;;  %v3197_v47 = vmax.f32 %v3195_v39, %v3196_v41  ;;  %v3210_v49 = vrot.slane %v3209_v18, 2  ;;  %v3217_v62 = vrot.slane %v3216_v40, 2 }
 0x32b   :  { %v3608_v60 = vsel %vm8453_vm15, %v3178_v32, %v3171_v7  ;;  %v3659_v15 = vrot.slane %v7405_v19, 7  ;;  %vm8466_vm15 = vmmov %vm8463_vm3 }
 0x32c   :  { %v3204_v33 = vmax.f32 %v3202_v37, %v3203_v54  ;;  %v3198_v23 = vrot.slane %v3197_v47, 1  ;;  %v3211_v36 = vmax.f32 %v3209_v18, %v3210_v49  ;;  %v3609_v10 = vsel %vm2367_vm5, %v3185_v45, %v3608_v60 }
 0x32d   :  { %v3218_v1 = vmax.f32 %v3216_v40, %v3217_v62  ;;  %v3610_v8 = vsel %vm2369_vm8, %v3192_v21, %v3609_v10  ;;  %v3707_v62 = vrot.slane %v7405_v19, 1  ;;  %v4517_v19 = vld [vmem:[%s7965_s5 + $0x10] sm:$0xff] }
 0x32e   :  { %v3205_v5 = vrot.slane %v3204_v33, 1  ;;  %v3199_v58 = vmax.f32 %v3197_v47, %v3198_v23  ;;  %v3212_v27 = vrot.slane %v3211_v36, 1 }
 0x32f   :  { %v3219_v24 = vrot.slane %v3218_v1, 1 }
 0x330   :  { %v3206_v29 = vmax.f32 %v3204_v33, %v3205_v5  ;;  %v3611_v55 = vsel %vm2371_vm9, %v3199_v58, %v3610_v8  ;;  %v3213_v54 = vmax.f32 %v3211_v36, %v3212_v27  ;;  %v3514_v33 = vand.u32 1, %v4951_v12 }
 0x331   :  { %v2899_v11 = vpop.f32.mrf.mxu1  ;;  %v3220_v60 = vmax.f32 %v3218_v1, %v3219_v24 }
 0x332   :  { %v2900_v63 = vadd.f32 %v7343_v9, %v2899_v11  ;;  %v3612_v49 = vsel %vm2373_vm10, %v3206_v29, %v3611_v55  ;;  %vm7445_vm0 = vcmp.eq.s32.totalorder %v3514_v33, 1 }
 0x333   :  { %v3613_v21 = vsel %vm8454_vm12, %v3213_v54, %v3612_v49  ;;  %vm8467_vm12 = vmmov %vm8464_vm4 }
 0x334   :  { %v2930_v48 = vmax.f32 %v2900_v63, 0.0  ;;  %v7464_v8 = vsel %vm8460_vm2, %v3220_v60, %v3613_v21 }
 0x336   :  { %v2974_v14 = vrot.slane %v2930_v48, 2  ;;  %v2975_v46 = vrot.slane %v2930_v48, 4  ;;  %v2976_v59 = vrot.slane %v2930_v48, 6  ;;  %v3221_v22 = vsel %vm3052_vm6, %v2930_v48, -inf }
 0x337   :  { %v3222_v61 = vrot.slane %v3221_v22, 4 }
 0x338   :  { %v3228_v2 = vsel %vm3052_vm6, %v2974_v14, -inf  ;;  %v3235_v0 = vsel %vm3052_vm6, %v2975_v46, -inf  ;;  %v3242_v30 = vsel %vm3052_vm6, %v2976_v59, -inf  ;;  %v3515_v46 = vand.u32 1, %v4965_v16 }
 0x339   :  { %v3223_v57 = vmax.f32 %v3221_v22, %v3222_v61  ;;  %v3229_v28 = vrot.slane %v3228_v2, 4  ;;  %v3236_v51 = vrot.slane %v3235_v0, 4  ;;  %v3243_v53 = vrot.slane %v3242_v30, 4  ;;  %v2901_v6 = vpop.f32.mrf.mxu1 }
 0x33a   :  { %v2902_v50 = vadd.f32 %v7343_v9, %v2901_v6  ;;  %vm7451_vm13 = vcmp.eq.s32.totalorder %v3515_v46, 1 }
 0x33b   :  { %v3224_v17 = vrot.slane %v3223_v57, 2  ;;  %v3230_v39 = vmax.f32 %v3228_v2, %v3229_v28  ;;  %v3237_v31 = vmax.f32 %v3235_v0, %v3236_v51  ;;  %v3244_v35 = vmax.f32 %v3242_v30, %v3243_v53 }
 0x33c   :  { %v2931_v52 = vmax.f32 %v2902_v50, 0.0  ;;  %v3720_v28 = vsel %vm8459_vm7, %v3706_v25, %v3707_v62  ;;  %vm8471_vm7 = vmmov %vm8461_vm1 }
 0x33d   :  { %v3225_v41 = vmax.f32 %v3223_v57, %v3224_v17  ;;  %v3231_v37 = vrot.slane %v3230_v39, 2  ;;  %v3238_v18 = vrot.slane %v3237_v31, 2  ;;  %v3245_v4 = vrot.slane %v3244_v35, 2 }
 0x33e   :  { %v2977_v43 = vrot.slane %v2931_v52, 2  ;;  %v2978_v56 = vrot.slane %v2931_v52, 4  ;;  %v3249_v40 = vsel %vm3052_vm6, %v2931_v52, -inf  ;;  %v2979_v47 = vrot.slane %v2931_v52, 6 }
 0x33f   :  { %v3232_v32 = vmax.f32 %v3230_v39, %v3231_v37  ;;  %v3239_v11 = vmax.f32 %v3237_v31, %v3238_v18  ;;  %v3246_v7 = vmax.f32 %v3244_v35, %v3245_v4  ;;  %v3250_v63 = vrot.slane %v3249_v40, 4 }
 0x340   :  { %v3256_v45 = vsel %vm3052_vm6, %v2977_v43, -inf  ;;  %v3226_v23 = vrot.slane %v3225_v41, 1  ;;  %v3263_v14 = vsel %vm3052_vm6, %v2978_v56, -inf  ;;  %v3270_v59 = vsel %vm3052_vm6, %v2979_v47, -inf }
 0x341   :  { %v2904_v48 = vpop.f32.mrf.mxu1  ;;  %v3233_v5 = vrot.slane %v3232_v32, 1  ;;  %v3257_v36 = vrot.slane %v3256_v45, 4  ;;  %v3240_v1 = vrot.slane %v3239_v11, 1  ;;  %v3247_v61 = vrot.slane %v3246_v7, 1 }
 0x342   :  { %v2905_v22 = vadd.f32 %v7343_v9, %v2904_v48  ;;  %v3251_v58 = vmax.f32 %v3249_v40, %v3250_v63  ;;  %v7455_v0 = vmax.f32 %v3225_v41, %v3226_v23  ;;  %v3264_v30 = vrot.slane %v3263_v14, 4 }
 0x343   :  { %v7461_v51 = vmax.f32 %v3232_v32, %v3233_v5  ;;  %v3258_v53 = vmax.f32 %v3256_v45, %v3257_v36  ;;  %v3271_v6 = vrot.slane %v3270_v59, 4  ;;  %v7467_v39 = vmax.f32 %v3239_v11, %v3240_v1 }
 0x344   :  { %v2932_v57 = vmax.f32 %v2905_v22, 0.0  ;;  %v7469_v31 = vmax.f32 %v3246_v7, %v3247_v61  ;;  %v3252_v35 = vrot.slane %v3251_v58, 2  ;;  %v3708_v37 = vrot.slane %v7464_v8, 1 }
 0x345   :  { %v3259_v4 = vrot.slane %v3258_v53, 2  ;;  %v3265_v54 = vmax.f32 %v3263_v14, %v3264_v30  ;;  %v3738_v63 = vsel %vm7445_vm0, 0.0, %v3720_v28  ;;  %v3272_v22 = vmax.f32 %v3270_v59, %v3271_v6  ;;  %vm8468_vm0 = vmmov %vm8460_vm2 }
 0x346   :  { %v2980_v29 = vrot.slane %v2932_v57, 2  ;;  %v2981_v27 = vrot.slane %v2932_v57, 4  ;;  %v2982_v50 = vrot.slane %v2932_v57, 6  ;;  %v3277_v17 = vsel %vm3052_vm6, %v2932_v57, -inf }
 0x347   :  { %v3278_v24 = vrot.slane %v3277_v17, 4  ;;  %v3719_v47 = vsel %vm8461_vm1, %v3707_v62, %v3708_v37  ;;  %v3253_v36 = vmax.f32 %v3251_v58, %v3252_v35  ;;  %v3260_v14 = vmax.f32 %v3258_v53, %v3259_v4 }
 0x348   :  { %v3284_v55 = vsel %vm3052_vm6, %v2980_v29, -inf  ;;  %v3291_v52 = vsel %vm3052_vm6, %v2981_v27, -inf  ;;  %v3298_v41 = vsel %vm3052_vm6, %v2982_v50, -inf  ;;  %v3739_v45 = vsel %vm7451_vm13, 0.0, %v3719_v47 }
 0x349   :  { %v2906_v18 = vpop.f32.mrf.mxu1  ;;  %v3279_v43 = vmax.f32 %v3277_v17, %v3278_v24  ;;  %v3285_v56 = vrot.slane %v3284_v55, 4  ;;  %v3292_v40 = vrot.slane %v3291_v52, 4  ;;  %v3299_v32 = vrot.slane %v3298_v41, 4 }
 0x34a   :  { %v2907_v49 = vadd.f32 %v7343_v9, %v2906_v18  ;;  %v4788_v48 = vpack.i.bf16 %v3739_v45, %v3738_v63  ;;  %v3266_v29 = vrot.slane %v3265_v54, 2  ;;  %v3254_v53 = vrot.slane %v3253_v36, 1 }
 0x34b   :  { %v3280_v11 = vrot.slane %v3279_v43, 2  ;;  %v3286_v7 = vmax.f32 %v3284_v55, %v3285_v56  ;;  %v3293_v60 = vmax.f32 %v3291_v52, %v3292_v40  ;;  %v3300_v23 = vmax.f32 %v3298_v41, %v3299_v32 }
 0x34c   :  { %v2933_v5 = vmax.f32 %v2907_v49, 0.0  ;;  %4789 = vrot.lane.b32.xlu1 %v4788_v48, %s4857_s30  ;;  %v3261_v24 = vrot.slane %v3260_v14, 1  ;;  %v3615_v40 = vsel %vm8462_vm11, %v7461_v51, %v7455_v0  ;;  %v3273_v32 = vrot.slane %v3272_v22, 2  ;;  %vm8474_vm11 = vmmov %vm8463_vm3 }
 0x34d   :  { %v3287_v21 = vrot.slane %v3286_v7, 2  ;;  %v3281_v1 = vmax.f32 %v3279_v43, %v3280_v11  ;;  %v3294_v62 = vrot.slane %v3293_v60, 2  ;;  %v3301_v10 = vrot.slane %v3300_v23, 2 }
 0x34e   :  { %v2983_v61 = vrot.slane %v2933_v5, 2  ;;  %v2984_v30 = vrot.slane %v2933_v5, 4  ;;  %v2985_v28 = vrot.slane %v2933_v5, 6  ;;  %v3305_v2 = vsel %vm3052_vm6, %v2933_v5, -inf }
 0x34f   :  { %v3288_v57 = vmax.f32 %v3286_v7, %v3287_v21  ;;  %v3295_v27 = vmax.f32 %v3293_v60, %v3294_v62  ;;  %v3306_v50 = vrot.slane %v3305_v2, 4  ;;  %v3282_v55 = vrot.slane %v3281_v1, 1 }
 0x350   :  { %v3312_v17 = vsel %vm3052_vm6, %v2983_v61, -inf  ;;  %v3319_v35 = vsel %vm3052_vm6, %v2984_v30, -inf  ;;  %v3302_v4 = vmax.f32 %v3300_v23, %v3301_v10  ;;  %v3326_v43 = vsel %vm3052_vm6, %v2985_v28, -inf }
 0x351   :  { %v2909_v58 = vpop.f32.mrf.mxu1  ;;  %v3289_v59 = vrot.slane %v3288_v57, 1  ;;  %v3313_v6 = vrot.slane %v3312_v17, 4  ;;  %v3307_v52 = vmax.f32 %v3305_v2, %v3306_v50  ;;  %v3320_v41 = vrot.slane %v3319_v35, 4 }
 0x352   :  { %v3296_v18 = vrot.slane %v3295_v27, 1  ;;  %v2910_v56 = vadd.f32 %v7343_v9, %v2909_v58  ;;  %v3327_v63 = vrot.slane %v3326_v43, 4  ;;  %v3255_v60 = vmax.f32 %v3253_v36, %v3254_v53 }
 0x353   :  { %v3290_v47 = vmax.f32 %v3288_v57, %v3289_v59  ;;  %v3314_v49 = vmax.f32 %v3312_v17, %v3313_v6  ;;  %v3308_v11 = vrot.slane %v3307_v52, 2  ;;  %v3321_v7 = vmax.f32 %v3319_v35, %v3320_v41 }
 0x354   :  { %v2934_v45 = vmax.f32 %v2910_v56, 0.0  ;;  %v3267_v48 = vmax.f32 %v3265_v54, %v3266_v29  ;;  %v3283_v5 = vmax.f32 %v3281_v1, %v3282_v55  ;;  %v3262_v21 = vmax.f32 %v3260_v14, %v3261_v24 }
 0x355   :  { %v3297_v23 = vmax.f32 %v3295_v27, %v3296_v18  ;;  %v3303_v62 = vrot.slane %v3302_v4, 1  ;;  %v3328_v61 = vmax.f32 %v3326_v43, %v3327_v63  ;;  %v3315_v28 = vrot.slane %v3314_v49, 2 }
 0x356   :  { %v2986_v30 = vrot.slane %v2934_v45, 2  ;;  %v3622_v10 = vsel %vm8463_vm3, %v3290_v47, %v3283_v5  ;;  %v2987_v2 = vrot.slane %v2934_v45, 4  ;;  %v2988_v0 = vrot.slane %v2934_v45, 6  ;;  %vm8475_vm3 = vmmov %vm8464_vm4 }
 0x357   :  { %v3309_v57 = vmax.f32 %v3307_v52, %v3308_v11  ;;  %v3322_v50 = vrot.slane %v3321_v7, 2  ;;  %v3333_v17 = vsel %vm3052_vm6, %v2934_v45, -inf  ;;  %v3268_v1 = vrot.slane %v3267_v48, 1 }
 0x358   :  { %v3340_v58 = vsel %vm3052_vm6, %v2986_v30, -inf  ;;  %v3334_v36 = vrot.slane %v3333_v17, 4  ;;  %v3274_v14 = vmax.f32 %v3272_v22, %v3273_v32  ;;  %v3304_v29 = vmax.f32 %v3302_v4, %v3303_v62 }
 0x359   :  { %v2911_v51 = vpop.f32.mrf.mxu1  ;;  %v3341_v54 = vrot.slane %v3340_v58, 4  ;;  %v3329_v27 = vrot.slane %v3328_v61, 2  ;;  %v3347_v53 = vsel %vm3052_vm6, %v2987_v2, -inf  ;;  %v3354_v59 = vsel %vm3052_vm6, %v2988_v0, -inf }
 0x35a   :  { %v3623_v6 = vsel %vm2367_vm5, %v3297_v23, %v3622_v10  ;;  %v3316_v35 = vmax.f32 %v3314_v49, %v3315_v28  ;;  %v3335_v24 = vmax.f32 %v3333_v17, %v3334_v36  ;;  %v3310_v52 = vrot.slane %v3309_v57, 1 }
 0x35b   :  { %v3342_v55 = vmax.f32 %v3340_v58, %v3341_v54  ;;  %v3323_v41 = vmax.f32 %v3321_v7, %v3322_v50  ;;  %v3348_v18 = vrot.slane %v3347_v53, 4  ;;  %v3355_v43 = vrot.slane %v3354_v59, 4 }
 0x35c   :  { %v3336_v56 = vrot.slane %v3335_v24, 2  ;;  %v3275_v47 = vrot.slane %v3274_v14, 1  ;;  %v3616_v22 = vsel %vm2367_vm5, %v7467_v39, %v3615_v40  ;;  %v2912_v4 = vadd.f32 %v7343_v9, %v2911_v51 }
 0x35d   :  { %v3330_v32 = vmax.f32 %v3328_v61, %v3329_v27  ;;  %v3343_v11 = vrot.slane %v3342_v55, 2  ;;  %v3349_v63 = vmax.f32 %v3347_v53, %v3348_v18  ;;  %v3269_v45 = vmax.f32 %v3267_v48, %v3268_v1 }
 0x35e   :  { %v3624_v5 = vsel %vm2369_vm8, %v3304_v29, %v3623_v6  ;;  %v3317_v49 = vrot.slane %v3316_v35, 1  ;;  %v3617_v23 = vsel %vm2369_vm8, %v7469_v31, %v3616_v22  ;;  %v2935_v7 = vmax.f32 %v2912_v4, 0.0 }
 0x35f   :  { %v3324_v30 = vrot.slane %v3323_v41, 1  ;;  %v3337_v10 = vmax.f32 %v3335_v24, %v3336_v56  ;;  %v3356_v28 = vmax.f32 %v3354_v59, %v3355_v43  ;;  %v3618_v2 = vsel %vm2371_vm9, %v3255_v60, %v3617_v23 }
 0x360   :  { %v3311_v39 = vmax.f32 %v3309_v57, %v3310_v52  ;;  %v3276_v40 = vmax.f32 %v3274_v14, %v3275_v47  ;;  %v3619_v61 = vsel %vm2373_vm10, %v3262_v21, %v3618_v2  ;;  %v2989_v0 = vrot.slane %v2935_v7, 2 }
 0x361   :  { %v2914_v62 = vpop.f32.mrf.mxu1  ;;  %v3331_v51 = vrot.slane %v3330_v32, 1  ;;  %v3344_v48 = vmax.f32 %v3342_v55, %v3343_v11  ;;  %v3350_v50 = vrot.slane %v3349_v63, 2  ;;  %v3620_v17 = vsel %vm8464_vm4, %v3269_v45, %v3619_v61  ;;  %vm8476_vm4 = vmmov %vm8468_vm0 }
 0x362   :  { %v7509_v58 = vsel %vm8465_vm14, %v3276_v40, %v3620_v17  ;;  %v2990_v31 = vrot.slane %v2935_v7, 4  ;;  %v2991_v36 = vrot.slane %v2935_v7, 6  ;;  %v2915_v54 = vadd.f32 %v7343_v9, %v2914_v62  ;;  %vm8477_vm14 = vmmov %vm8474_vm11 }
 0x363   :  { %v3318_v1 = vmax.f32 %v3316_v35, %v3317_v49  ;;  %v3325_v29 = vmax.f32 %v3323_v41, %v3324_v30  ;;  %v3338_v60 = vrot.slane %v3337_v10, 1  ;;  %v3357_v57 = vrot.slane %v3356_v28, 2 }
 0x364   :  { %v3625_v14 = vsel %vm2371_vm9, %v3311_v39, %v3624_v5  ;;  %v4793_v21 = vpack.i.bf16 %v7509_v58, %v7464_v8  ;;  %v3361_v27 = vsel %vm3052_vm6, %v2935_v7, -inf  ;;  %v3368_v53 = vsel %vm3052_vm6, %v2989_v0, -inf }
 0x365   :  { %v3345_v59 = vrot.slane %v3344_v48, 1  ;;  %v3351_v6 = vmax.f32 %v3349_v63, %v3350_v50  ;;  %v3362_v24 = vrot.slane %v3361_v27, 4  ;;  %v3369_v55 = vrot.slane %v3368_v53, 4 }
 0x366   :  { %v3332_v52 = vmax.f32 %v3330_v32, %v3331_v51  ;;  %4794 = vrot.lane.b32.xlu2 %v4793_v21, %s4856_s17  ;;  %v3375_v35 = vsel %vm3052_vm6, %v2990_v31, -inf  ;;  %v3382_v41 = vsel %vm3052_vm6, %v2991_v36, -inf  ;;  %v2936_v18 = vmax.f32 %v2915_v54, 0.0 }
 0x367   :  { %v3339_v56 = vmax.f32 %v3337_v10, %v3338_v60  ;;  %v7520_v47 = vmax.f32 %v3356_v28, %v3357_v57  ;;  %v3363_v22 = vmax.f32 %v3361_v27, %v3362_v24  ;;  %v3370_v4 = vmax.f32 %v3368_v53, %v3369_v55 }
 0x368   :  { %v2992_v11 = vrot.slane %v2936_v18, 2  ;;  %v2993_v45 = vrot.slane %v2936_v18, 4  ;;  %v2994_v5 = vrot.slane %v2936_v18, 6  ;;  %v3389_v63 = vsel %vm3052_vm6, %v2936_v18, -inf }
 0x369   :  { %v2916_v43 = vpop.f32.mrf.mxu1  ;;  %v3346_v49 = vmax.f32 %v3344_v48, %v3345_v59  ;;  %v3352_v32 = vrot.slane %v3351_v6, 1  ;;  %v3376_v23 = vrot.slane %v3375_v35, 4  ;;  %v3383_v7 = vrot.slane %v3382_v41, 4 }
 0x36a   :  { %v3390_v62 = vrot.slane %v3389_v63, 4  ;;  %v3396_v30 = vsel %vm3052_vm6, %v2992_v11, -inf  ;;  %v3403_v2 = vsel %vm3052_vm6, %v2993_v45, -inf  ;;  %v3410_v10 = vsel %vm3052_vm6, %v2994_v5, -inf }
 0x36b   :  { %v3359_v28 = vrot.slane %v7520_v47, 1  ;;  %v3709_v39 = vrot.slane %v7509_v58, 1  ;;  %v3364_v40 = vrot.slane %v3363_v22, 2  ;;  %v3371_v61 = vrot.slane %v3370_v4, 2 }
 0x36c   :  { %v3391_v0 = vmax.f32 %v3389_v63, %v3390_v62  ;;  %v3397_v51 = vrot.slane %v3396_v30, 4  ;;  %v3404_v50 = vrot.slane %v3403_v2, 4  ;;  %v3411_v48 = vrot.slane %v3410_v10, 4 }
 0x36d   :  { %v7528_v17 = vmax.f32 %v3351_v6, %v3352_v32  ;;  %v7531_v31 = vsel %vm8466_vm15, %v3346_v49, %v3339_v56  ;;  %v7533_v36 = vmax.f32 %v3375_v35, %v3376_v23  ;;  %v7535_v54 = vmax.f32 %v3382_v41, %v3383_v7 }
 0x36e   :  { %v3392_v60 = vrot.slane %v3391_v0, 2  ;;  %v3398_v57 = vmax.f32 %v3396_v30, %v3397_v51  ;;  %v3405_v21 = vmax.f32 %v3403_v2, %v3404_v50  ;;  %v3412_v27 = vmax.f32 %v3410_v10, %v3411_v48 }
 0x36f   :  { %v7537_v53 = vmax.f32 %v3363_v22, %v3364_v40  ;;  %v7539_v59 = vmax.f32 %v3370_v4, %v3371_v61  ;;  %v3516_v24 = vand.u32 1, %v8410_v13  ;;  %v3626_v6 = vsel %vm2373_vm10, %v3318_v1, %v3625_v14 }
 0x370   :  { %v3393_v18 = vmax.f32 %v3391_v0, %v3392_v60  ;;  %v3399_v56 = vrot.slane %v3398_v57, 2  ;;  %v3406_v11 = vrot.slane %v3405_v21, 2  ;;  %v3413_v35 = vrot.slane %v3412_v27, 2 }
 0x371   :  { %v2919_v55 = vpop.f32.mrf.mxu1  ;;  %v3378_v41 = vrot.slane %v7533_v36, 2  ;;  %v3385_v45 = vrot.slane %v7535_v54, 2  ;;  %v3627_v5 = vsel %vm8467_vm12, %v3325_v29, %v3626_v6  ;;  %v2917_v22 = vadd.f32 %v7343_v9, %v2916_v43  ;;  %vm8481_vm12 = vmmov %vm8475_vm3 }
 0x372   :  { %v3394_v63 = vrot.slane %v3393_v18, 1  ;;  %v3400_v4 = vmax.f32 %v3398_v57, %v3399_v56  ;;  %v3517_v49 = vand.u32 1, %v8412_v20  ;;  %v2920_v32 = vadd.f32 %v7343_v9, %v2919_v55 }
 0x373   :  { %v7550_v1 = vsel %vm8468_vm0, %v3332_v52, %v3627_v5  ;;  %vm7554_vm13 = vcmp.eq.s32.totalorder %v3516_v24, 1  ;;  %v3718_v29 = vsel %vm8471_vm7, %v3708_v37, %v3709_v39  ;;  %v2937_v43 = vmax.f32 %v2917_v22, 0.0  ;;  %vm8484_vm7 = vmmov %vm8461_vm1 }
 0x374   :  { %v3401_v23 = vrot.slane %v3400_v4, 1  ;;  %v3407_v7 = vmax.f32 %v3405_v21, %v3406_v11  ;;  %v3414_v62 = vmax.f32 %v3412_v27, %v3413_v35  ;;  %vm7564_vm2 = vcmp.eq.s32.totalorder %v3517_v49, 1 }
 0x375   :  { %v3710_v52 = vrot.slane %v7550_v1, 1  ;;  %v2995_v30 = vrot.slane %v2937_v43, 2  ;;  %v2996_v2 = vrot.slane %v2937_v43, 4  ;;  %v2997_v10 = vrot.slane %v2937_v43, 6 }
 0x376   :  { %v3395_v40 = vmax.f32 %v3393_v18, %v3394_v63  ;;  %v3740_v61 = vsel %vm7554_vm13, 0.0, %v3718_v29  ;;  %v3417_v37 = vsel %vm3052_vm6, %v2937_v43, -inf  ;;  %v2938_v0 = vmax.f32 %v2920_v32, 0.0 }
 0x377   :  { %v3717_v51 = vsel %vm8461_vm1, %v3709_v39, %v3710_v52  ;;  %v3418_v50 = vrot.slane %v3417_v37, 4  ;;  %v3424_v48 = vsel %vm3052_vm6, %v2995_v30, -inf  ;;  %v3431_v60 = vsel %vm3052_vm6, %v2996_v2, -inf }
 0x378   :  { %v3408_v57 = vrot.slane %v3407_v7, 1  ;;  %v3741_v21 = vsel %vm7564_vm2, 0.0, %v3717_v51  ;;  %v3425_v27 = vrot.slane %v3424_v48, 4  ;;  %v3432_v6 = vrot.slane %v3431_v60, 4  ;;  %vm8485_vm2 = vmmov %vm8461_vm1 }
 0x379   :  { %v3402_v55 = vmax.f32 %v3400_v4, %v3401_v23  ;;  %v4798_v18 = vpack.i.bf16 %v3741_v21, %v3740_v61  ;;  %v3419_v56 = vmax.f32 %v3417_v37, %v3418_v50  ;;  %v3438_v11 = vsel %vm3052_vm6, %v2997_v10, -inf  ;;  %vm8486_vm1 = vmmov %vm8475_vm3 }
 0x37a   :  { %v3415_v35 = vrot.slane %v3414_v62, 1  ;;  %v3426_v5 = vmax.f32 %v3424_v48, %v3425_v27  ;;  %v3433_v22 = vmax.f32 %v3431_v60, %v3432_v6  ;;  %v3439_v39 = vrot.slane %v3438_v11, 4 }
 0x37b   :  { %4799 = vrot.lane.b32.xlu0 %v4798_v18, %s4857_s30  ;;  %v3420_v63 = vrot.slane %v3419_v56, 2  ;;  %v2998_v32 = vrot.slane %v2938_v0, 2  ;;  %v2999_v14 = vrot.slane %v2938_v0, 4  ;;  %v3000_v29 = vrot.slane %v2938_v0, 6 }
 0x37c   :  { %v3409_v43 = vmax.f32 %v3407_v7, %v3408_v57  ;;  %v3427_v9 = vrot.slane %v3426_v5, 2  ;;  %v3434_v30 = vrot.slane %v3433_v22, 2  ;;  %v3445_v2 = vsel %vm3052_vm6, %v2938_v0, -inf }
 0x37d   :  { %v3636_v4 = vsel %vm8474_vm11, %v3402_v55, %v3395_v40  ;;  %v3446_v23 = vrot.slane %v3445_v2, 4  ;;  %v3452_v10 = vsel %vm3052_vm6, %v2998_v32, -inf  ;;  %v3459_v61 = vsel %vm3052_vm6, %v2999_v14, -inf  ;;  %vm8487_vm11 = vmmov %vm8468_vm0 }
 0x37e   :  { %v3366_v37 = vrot.slane %v7537_v53, 1  ;;  %v3379_v51 = vmax.f32 %v7533_v36, %v3378_v41  ;;  %v3440_v50 = vmax.f32 %v3438_v11, %v3439_v39  ;;  %v3453_v48 = vrot.slane %v3452_v10, 4 }
 0x37f   :  { %v3421_v60 = vmax.f32 %v3419_v56, %v3420_v63  ;;  %v3447_v21 = vmax.f32 %v3445_v2, %v3446_v23  ;;  %v3460_v7 = vrot.slane %v3459_v61, 4  ;;  %v3466_v57 = vsel %vm3052_vm6, %v3000_v29, -inf }
 0x380   :  { %v3637_v0 = vsel %vm2367_vm5, %v3409_v43, %v3636_v4  ;;  %v3428_v27 = vmax.f32 %v3426_v5, %v3427_v9  ;;  %v3435_v40 = vmax.f32 %v3433_v22, %v3434_v30  ;;  %v3454_v6 = vmax.f32 %v3452_v10, %v3453_v48  ;;  %v2921_v22 = vpop.f32.mrf.mxu1  ;;  %v4520_v30 = vld [vmem:[%s7965_s5 + $0x28] sm:$0xff]  ;;  %v4519_v48 = vld [vmem:[%s7965_s5 + $0x20] sm:$0xff] }
 0x381   :  { %v3416_v55 = vmax.f32 %v3414_v62, %v3415_v35  ;;  %v3448_v18 = vrot.slane %v3447_v21, 2  ;;  %v3461_v32 = vmax.f32 %v3459_v61, %v3460_v7  ;;  %v3467_v14 = vrot.slane %v3466_v57, 4  ;;  %v4829_v61 = vld [vmem:[%s7964_s4] ss:$0 sm:$0xff]  ;;  %3875 = vmatpush.bf16.msrb.mxu2 %v4520_v30 }
 0x382   :  { %v3360_v36 = vmax.f32 %v7520_v47, %v3359_v28  ;;  %v3373_v41 = vrot.slane %v7539_v59, 1  ;;  %v3441_v56 = vrot.slane %v3440_v50, 2  ;;  %v3455_v11 = vrot.slane %v3454_v6, 2 }
 0x383   :  { %v3367_v39 = vmax.f32 %v7537_v53, %v3366_v37  ;;  %v3638_v63 = vsel %vm2369_vm8, %v3416_v55, %v3637_v0  ;;  %v3422_v29 = vrot.slane %v3421_v60, 1  ;;  %v3462_v5 = vrot.slane %v3461_v32, 2 }
 0x384   :  { %v3429_v43 = vrot.slane %v3428_v27, 1  ;;  %v3436_v62 = vrot.slane %v3435_v40, 1  ;;  %v3456_v35 = vmax.f32 %v3454_v6, %v3455_v11  ;;  %v3380_v9 = vrot.slane %v3379_v51, 1 }
 0x385   :  { %v3449_v47 = vmax.f32 %v3447_v21, %v3448_v18  ;;  %v3463_v28 = vmax.f32 %v3461_v32, %v3462_v5  ;;  %v3468_v2 = vmax.f32 %v3466_v57, %v3467_v14  ;;  %v3386_v53 = vmax.f32 %v7535_v54, %v3385_v45  ;;  %3876 = vmatpush.bf16.msrb.mxu2 %v4519_v48 }
 0x386   :  { %v3442_v4 = vmax.f32 %v3440_v50, %v3441_v56  ;;  %v3374_v23 = vmax.f32 %v7539_v59, %v3373_v41  ;;  %v3630_v10 = vsel %vm2367_vm5, %v7528_v17, %v7531_v31  ;;  %v2922_v37 = vadd.f32 %v4829_v61, %v2921_v22 }
 0x387   :  { %v3423_v21 = vmax.f32 %v3421_v60, %v3422_v29  ;;  %v3457_v7 = vrot.slane %v3456_v35, 1  ;;  %v3381_v54 = vmax.f32 %v3379_v51, %v3380_v9  ;;  %v3387_v45 = vrot.slane %v3386_v53, 1 }
 0x388   :  { %v3430_v50 = vmax.f32 %v3428_v27, %v3429_v43  ;;  %v3437_v59 = vmax.f32 %v3435_v40, %v3436_v62  ;;  %v3631_v57 = vsel %vm2369_vm8, %v3360_v36, %v3630_v10  ;;  %v2939_v0 = vmax.f32 %v2922_v37, 0.0 }
 0x389   :  { %v3450_v17 = vrot.slane %v3449_v47, 1  ;;  %v3464_v31 = vrot.slane %v3463_v28, 1  ;;  %v3469_v6 = vrot.slane %v3468_v2, 2  ;;  %v3632_v55 = vsel %vm2371_vm9, %v3367_v39, %v3631_v57 }
 0x38a   :  { %v3388_v18 = vmax.f32 %v3386_v53, %v3387_v45  ;;  %v3633_v32 = vsel %vm2373_vm10, %v3374_v23, %v3632_v55  ;;  %v3001_v14 = vrot.slane %v2939_v0, 2  ;;  %v3002_v41 = vrot.slane %v2939_v0, 4 }
 0x38b   :  { %v3443_v60 = vrot.slane %v3442_v4, 1  ;;  %v3458_v56 = vmax.f32 %v3456_v35, %v3457_v7  ;;  %v3634_v51 = vsel %vm8475_vm3, %v3381_v54, %v3633_v32  ;;  %v3003_v27 = vrot.slane %v2939_v0, 6 }
 0x38c   :  { %v7617_v40 = vsel %vm8476_vm4, %v3388_v18, %v3634_v51  ;;  %v3473_v36 = vsel %vm3052_vm6, %v2939_v0, -inf  ;;  %v3480_v11 = vsel %vm3052_vm6, %v3001_v14, -inf  ;;  %v3487_v39 = vsel %vm3052_vm6, %v3002_v41, -inf }
 0x38d   :  { %v3451_v29 = vmax.f32 %v3449_v47, %v3450_v17  ;;  %v3465_v5 = vmax.f32 %v3463_v28, %v3464_v31  ;;  %v3470_v22 = vmax.f32 %v3468_v2, %v3469_v6  ;;  %v4803_v43 = vpack.i.bf16 %v7617_v40, %v7550_v1 }
 0x38e   :  { %v3474_v62 = vrot.slane %v3473_v36, 4  ;;  %v3481_v35 = vrot.slane %v3480_v11, 4  ;;  %v3488_v9 = vrot.slane %v3487_v39, 4  ;;  %v3494_v30 = vsel %vm3052_vm6, %v3003_v27, -inf }
 0x38f   :  { %v3444_v53 = vmax.f32 %v3442_v4, %v3443_v60  ;;  %v3639_v23 = vsel %vm2371_vm9, %v3423_v21, %v3638_v63  ;;  %v3643_v10 = vsel %vm8477_vm14, %v3458_v56, %v3451_v29  ;;  %4804 = vrot.lane.b32.xlu1 %v4803_v43, %s4856_s17  ;;  %v3495_v61 = vrot.slane %v3494_v30, 4 }
 0x390   :  { %v3475_v37 = vmax.f32 %v3473_v36, %v3474_v62  ;;  %v3482_v47 = vmax.f32 %v3480_v11, %v3481_v35  ;;  %v3489_v28 = vmax.f32 %v3487_v39, %v3488_v9  ;;  %vm8478_vm15 = vcmp.lt.s32.totalorder %v4951_v12, 1 }
 0x391   :  { %v7634_v2 = vsel %vm8478_vm15, %v3658_v3, %v3659_v15  ;;  %v3471_v48 = vrot.slane %v3470_v22, 1  ;;  %v3711_v4 = vrot.slane %v7617_v40, 1  ;;  %v3496_v63 = vmax.f32 %v3494_v30, %v3495_v61 }
 0x392   :  { %v3518_v21 = vand.u32 1, %v5182_v26  ;;  %v3644_v7 = vsel %vm2367_vm5, %v3465_v5, %v3643_v10  ;;  %v3476_v54 = vrot.slane %v3475_v37, 2  ;;  %v3483_v45 = vrot.slane %v3482_v47, 2 }
 0x393   :  { %v3490_v57 = vrot.slane %v3489_v28, 2  ;;  %v3497_v0 = vrot.slane %v3496_v63, 2  ;;  %v3519_v17 = vand.u32 1, %v5185_v38  ;;  %v3640_v31 = vsel %vm2373_vm10, %v3430_v50, %v3639_v23 }
 0x394   :  { %vm7643_vm6 = vcmp.eq.s32.totalorder %v3518_v21, 1  ;;  %v3477_v55 = vmax.f32 %v3475_v37, %v3476_v54  ;;  %v3484_v18 = vmax.f32 %v3482_v47, %v3483_v45  ;;  %v3641_v14 = vsel %vm8481_vm12, %v3437_v59, %v3640_v31  ;;  %vm8493_vm12 = vmmov %vm8485_vm2  ;;  %v4515_v31 = vld [vmem:[%s7965_s5] sm:$0xff] }
 0x395   :  { %v3491_v32 = vmax.f32 %v3489_v28, %v3490_v57  ;;  %v3498_v41 = vmax.f32 %v3496_v63, %v3497_v0  ;;  %v7649_v60 = vsel %vm8468_vm0, %v3444_v53, %v3641_v14  ;;  %vm7653_vm13 = vcmp.eq.s32.totalorder %v3519_v17, 1 }
 0x396   :  { %v3716_v50 = vsel %vm8484_vm7, %v3710_v52, %v3711_v4  ;;  %v3478_v51 = vrot.slane %v3477_v55, 1  ;;  %v3485_v27 = vrot.slane %v3484_v18, 1  ;;  %v3712_v59 = vrot.slane %v7649_v60, 1 }
 0x397   :  { %v3492_v36 = vrot.slane %v3491_v32, 1  ;;  %v3472_v11 = vmax.f32 %v3470_v22, %v3471_v48  ;;  %v3499_v39 = vrot.slane %v3498_v41, 1  ;;  %v3742_v9 = vsel %vm7643_vm6, 0.0, %v3716_v50  ;;  %vm8492_vm6 = vmmov %vm8485_vm2 }
 0x398   :  { %v3479_v29 = vmax.f32 %v3477_v55, %v3478_v51  ;;  %v3486_v5 = vmax.f32 %v3484_v18, %v3485_v27  ;;  %v3715_v62 = vsel %vm8485_vm2, %v3711_v4, %v3712_v59  ;;  %v3521_v22 = vand.u32 1, %v8359_v44  ;;  %v4785_v55 = vpop.permute.xlu0 %4784 }
 0x399   :  { %v3493_v43 = vmax.f32 %v3491_v32, %v3492_v36  ;;  %v3645_v35 = vsel %vm2369_vm8, %v3472_v11, %v3644_v7  ;;  %v3743_v52 = vsel %vm7653_vm13, 0.0, %v3715_v62  ;;  %v3500_v23 = vmax.f32 %v3498_v41, %v3499_v39 }
 0x39a   :  { %v3646_v30 = vsel %vm2371_vm9, %v3479_v29, %v3645_v35  ;;  %v4808_v53 = vpack.i.bf16 %v3743_v52, %v3742_v9  ;;  %v3520_v61 = vand.u32 1, %v8358_v42  ;;  %v3661_v47 = vrot.slane %v7509_v58, 7 }
 0x39b   :  { %v3647_v10 = vsel %vm2373_vm10, %v3486_v5, %v3646_v30  ;;  %vm3705_vm4 = vcmp.eq.s32.totalorder %v3521_v22, 1  ;;  %v3660_v63 = vrot.slane %v7464_v8, 7  ;;  %vm7689_vm14 = vcmp.eq.s32.totalorder %v3516_v24, 0 }
 0x39c   :  { %v3648_v37 = vsel %vm8486_vm1, %v3493_v43, %v3647_v10  ;;  %4809 = vrot.lane.b32.xlu2 %v4808_v53, %s4857_s30  ;;  %vm3704_vm3 = vcmp.eq.s32.totalorder %v3520_v61, 1  ;;  %vm7695_vm15 = vcmp.eq.s32.totalorder %v3517_v49, 0  ;;  %vm8494_vm0 = vcmp.lt.s32.totalorder %v4951_v12, 1  ;;  %v4524_v12 = vld [vmem:[%s7967_s7 + $0x18] sm:$0xff] }
 0x39d   :  { %v7677_v28 = vsel %vm8487_vm11, %v3500_v23, %v3648_v37  ;;  %v3671_v8 = vsel %vm8494_vm0, %v3659_v15, %v3660_v63  ;;  %vm8495_vm13 = vmmov %vm8494_vm0  ;;  %v4516_v15 = vld [vmem:[%s7965_s5 + $0x8] sm:$0xff]  ;;  %vm3522_vm7 = vcmp.eq.s32.totalorder %v3514_v33, 0  ;;  %vm3523_vm1 = vcmp.eq.s32.totalorder %v3515_v46, 0  ;;  %4363 = vmatpush.bf16.msrb.mxu3 %v4524_v12 }
 0x39e   :  { %v4813_v48 = vpack.i.bf16 %v7677_v28, %v7649_v60  ;;  %v3713_v4 = vrot.slane %v7677_v28, 1  ;;  %v3670_v49 = vsel %vm8495_vm13, %v3660_v63, %v3661_v47  ;;  %v3692_v57 = vsel %vm7689_vm14, 0.0, %v3671_v8  ;;  %vm8496_vm2 = vmmov %vm8494_vm0 }
 0x39f   :  { %v3693_v0 = vsel %vm7695_vm15, 0.0, %v3670_v49  ;;  %v3665_v6 = vrot.slane %v7677_v28, 7  ;;  %v4787_v32 = vunpack.i.h.bf16 %v4785_v55  ;;  %v4786_v41 = vunpack.i.l.bf16 %v4785_v55  ;;  %vm8501_vm14 = vmmov %vm8494_vm0 }
 0x3a0   :  { %4814 = vrot.lane.b32.xlu0 %v4813_v48, %s4856_s17  ;;  %v3714_v54 = vsel %vm8492_vm6, %v3712_v59, %v3713_v4  ;;  %v3721_v13 = vsel %vm8493_vm12, %v3713_v4, %v3706_v25  ;;  %v4518_v25 = vld [vmem:[%s7965_s5 + $0x18] sm:$0xff]  ;;  %v3662_v50 = vrot.slane %v7550_v1, 7  ;;  %v3691_v51 = vsel %vm3523_vm1, 0.0, %v7634_v2  ;;  %vm8507_vm13 = vmmov %vm8496_vm2 }
 0x3a1   :  { %v3744_v20 = vsel %vm3704_vm3, 0.0, %v3714_v54  ;;  %v3745_v24 = vsel %vm3705_vm4, 0.0, %v3721_v13  ;;  %3877 = vmatpush.bf16.msrb.mxu2 %v4518_v25  ;;  %v3673_v18 = vsel %vm8496_vm2, %v3665_v6, %v3658_v3  ;;  %vm8497_vm11 = vcmask 261120  }
 0x3a2   :  { %v4818_v45 = vpack.i.bf16 %v3745_v24, %v3744_v20  ;;  %v3690_v14 = vsel %vm3522_vm7, 0.0, %v3673_v18  ;;  %vm8498_vm3 = vmmov %vm8497_vm11  ;;  %vm7744_vm4 = vcmp.eq.s32.totalorder %v3518_v21, 0  ;;  %v3669_v16 = vsel %vm8501_vm14, %v3661_v47, %v3662_v50 }
 0x3a3   :  { %v3802_v33 = vsel %vm8497_vm11, %v3690_v14, %v4786_v41  ;;  %v3803_v34 = vsel %vm8498_vm3, %v3691_v51, %v4787_v32  ;;  %vm8502_vm15 = vcmask 523264   ;;  %v3694_v59 = vsel %vm7744_vm4, 0.0, %v3669_v16  ;;  %vm8508_vm7 = vmmov %vm8498_vm3 }
 0x3a4   :  { %4819 = vrot.lane.b32.xlu1 %v4818_v45, %s4857_s30  ;;  %vm8503_vm6 = vmmov %vm8502_vm15  ;;  %vm8504_vm12 = vcmask 785408   ;;  %v3663_v11 = vrot.slane %v7617_v40, 7  ;;  %vm7758_vm0 = vcmp.eq.s32.totalorder %v3519_v17, 0  ;;  %v3664_v54 = vrot.slane %v7649_v60, 7 }
 0x3a5   :  { %3878 = vmatpush.bf16.msrb.mxu2 %v4517_v19  ;;  %vm8509_vm2 = vmmov %vm8498_vm3 }
 0x3a6   :  { %v3668_v21 = vsel %vm8507_vm13, %v3662_v50, %v3663_v11  ;;  %vm8510_vm1 = vmmov %vm8503_vm6  ;;  %v3667_v8 = vsel %vm8507_vm13, %v3663_v11, %v3664_v54 }
 0x3a7   :  { %v3695_v39 = vsel %vm7758_vm0, 0.0, %v3668_v21  ;;  %vm8511_vm11 = vmmov %vm8510_vm1  ;;  %vm3528_vm0 = vcmp.eq.s32.totalorder %v3520_v61, 0 }
 0x3a8   :  { %vm8512_vm3 = vmmov %vm8504_vm12 }
 0x3a9   :  { %3879 = vmatpush.bf16.msrb.mxu2 %v4516_v15  ;;  %vm8513_vm4 = vmmov %vm8509_vm2 }
 0x3aa   :  { %vm8514_vm14 = vmmov %vm8509_vm2 }
 0x3ad   :  { %3880 = vmatpush.bf16.msrb.mxu2 %v4515_v31  ;;  %v7799_v31 = vld [vmem:[%s7966_s6] ss:$0 sm:$0xff] }
 0x3be   :  { %v4790_v56 = vpop.permute.xlu1 %4789 }
 0x3bf   :  { %v4792_v27 = vunpack.i.h.bf16 %v4790_v56  ;;  %v4791_v36 = vunpack.i.l.bf16 %v4790_v56 }
 0x3c0   :  { %v4795_v29 = vpop.permute.xlu2 %4794 }
 0x3c1   :  { %v3810_v46 = vsel %vm8502_vm15, %v3802_v33, %v4791_v36  ;;  %v3811_v1 = vsel %vm8503_vm6, %v3803_v34, %v4792_v27  ;;  %v4797_v5 = vunpack.i.h.bf16 %v4795_v29  ;;  %v4796_v43 = vunpack.i.l.bf16 %v4795_v29  ;;  %vm8515_vm15 = vmmov %vm8510_vm1 }
 0x3c2   :  { %v3818_v2 = vpack.c.bf16 %v3811_v1, %v3810_v46  ;;  %vm8516_vm6 = vmmov %vm8510_vm1 }
 0x3c3   :  { %v3804_v40 = vsel %vm8508_vm7, %v3692_v57, %v4796_v43  ;;  %v3805_v38 = vsel %vm8509_vm2, %v3693_v0, %v4797_v5  ;;  %vm3529_vm7 = vcmp.eq.s32.totalorder %v3521_v22, 0  ;;  %vm8518_vm2 = vmmov %vm8507_vm13  ;;  %v3696_v57 = vsel %vm3528_vm0, 0.0, %v3667_v8  ;;  %v4523_v22 = vld [vmem:[%s7967_s7 + $0x10] sm:$0xff] }
 0x3c4   :  { %4484 = vmatmul.msk.bf16.vlgmr.msrb.gmra.mxu2 %vm8504_vm12, %v3818_v2  ;;  %vm8517_vm12 = vmmov %vm8512_vm3  ;;  %v3666_v20 = vsel %vm8518_vm2, %v3664_v54, %v3665_v6  ;;  %4364 = vmatpush.bf16.msrb.mxu3 %v4523_v22  ;;  %vm8526_vm0 = vcmask 1046534  }
 0x3c5   :  { %v3697_v0 = vsel %vm3529_vm7, 0.0, %v3666_v20  ;;  %vm8527_vm13 = vmmov %vm8526_vm0  ;;  %vm8528_vm7 = vcmask 1047559  }
 0x3c6   :  { %vm8529_vm2 = vmmov %vm8528_vm7 }
 0x3ed   :  { %v4800_v62 = vpop.permute.xlu0 %4799 }
 0x3ee   :  { %v4802_v35 = vunpack.i.h.bf16 %v4800_v62  ;;  %v4801_v9 = vunpack.i.l.bf16 %v4800_v62 }
 0x3f0   :  { %v3812_v17 = vsel %vm8510_vm1, %v3804_v40, %v4801_v9  ;;  %v3813_v52 = vsel %vm8511_vm11, %v3805_v38, %v4802_v35  ;;  %vm8519_vm1 = vmmov %vm8513_vm4 }
 0x3f1   :  { %v3819_v30 = vpack.c.bf16 %v3813_v52, %v3812_v17  ;;  %vm8520_vm11 = vmmov %vm8519_vm1 }
 0x3f3   :  { %4485 = vmatmul.msk.bf16.gmra.mxu2 %vm8512_vm3, %v3819_v30  ;;  %vm8521_vm3 = vmmov %vm8516_vm6 }
 0x3f6   :  { %v4810_v53 = vpop.permute.xlu2 %4809 }
 0x3f7   :  { %v4812_v47 = vunpack.i.h.bf16 %v4810_v53  ;;  %v4811_v28 = vunpack.i.l.bf16 %v4810_v53 }
 0x401   :  { %v4805_v23 = vpop.permute.xlu1 %4804 }
 0x402   :  { %v4807_v10 = vunpack.i.h.bf16 %v4805_v23  ;;  %v4806_v37 = vunpack.i.l.bf16 %v4805_v23 }
 0x404   :  { %v3807_v48 = vsel %vm8513_vm4, %v3695_v39, %v4807_v10  ;;  %v3806_v4 = vsel %vm8514_vm14, %v3694_v59, %v4806_v37  ;;  %vm8522_vm4 = vmmov %vm8521_vm3 }
 0x405   :  { %v3814_v63 = vsel %vm8515_vm15, %v3806_v4, %v4811_v28  ;;  %v3815_v58 = vsel %vm8516_vm6, %v3807_v48, %v4812_v47  ;;  %vm8523_vm14 = vmmov %vm8517_vm12  ;;  %vm3966_vm15 = vcmask 517120   ;;  %vm8524_vm6 = vcmask 1041409  }
 0x406   :  { %v3820_v7 = vpack.c.bf16 %v3815_v58, %v3814_v63 }
 0x408   :  { %4486 = vmatmul.msk.bf16.gmra.mxu2 %vm8517_vm12, %v3820_v7  ;;  %vm8525_vm12 = vmmov %vm8524_vm6 }
 0x412   :  { %v4815_v13 = vpop.permute.xlu0 %4814 }
 0x413   :  { %v4817_v24 = vunpack.i.h.bf16 %v4815_v13  ;;  %v4816_v49 = vunpack.i.l.bf16 %v4815_v13 }
 0x415   :  { %v3809_v19 = vsel %vm8519_vm1, %v3697_v0, %v4817_v24  ;;  %v3808_v42 = vsel %vm8520_vm11, %v3696_v57, %v4816_v49  ;;  %vm8530_vm1 = vmmov %vm8521_vm3 }
 0x416   :  { %v4820_v45 = vpop.permute.xlu1 %4819  ;;  %vm8531_vm11 = vmmov %vm8524_vm6 }
 0x417   :  { %v4822_v25 = vunpack.i.h.bf16 %v4820_v45  ;;  %v4821_v60 = vunpack.i.l.bf16 %v4820_v45 }
 0x419   :  { %v3816_v61 = vsel %vm8521_vm3, %v3808_v42, %v4821_v60  ;;  %v3817_v15 = vsel %vm8522_vm4, %v3809_v19, %v4822_v25  ;;  %vm8532_vm3 = vmmov %vm8524_vm6 }
 0x41a   :  { %v3821_v44 = vpack.c.bf16 %v3817_v15, %v3816_v61  ;;  %vm8533_vm4 = vmmov %vm8526_vm0 }
 0x41c   :  { %4487 = vmatmul.msk.bf16.gmra.mxu2 %vm8523_vm14, %v3821_v44  ;;  %vm8534_vm14 = vmmov %vm8526_vm0 }
 0x447   :  { %v3882_v6 = vpop.f32.mrf.mxu2 }
 0x448   :  { %v3883_v55 = vadd.f32 %v7799_v31, %v3882_v6 }
 0x44a   :  { %v3902_v18 = vmax.f32 %v3883_v55, 0.0 }
 0x44c   :  { %v3918_v14 = vrot.slane %v3902_v18, 2  ;;  %v3919_v41 = vrot.slane %v3902_v18, 4  ;;  %v3920_v50 = vrot.slane %v3902_v18, 6  ;;  %v3967_v51 = vsel %vm3966_vm15, %v3902_v18, -inf }
 0x44d   :  { %v3968_v34 = vrot.slane %v3967_v51, 4 }
 0x44e   :  { %v3974_v27 = vsel %vm3966_vm15, %v3918_v14, -inf  ;;  %v3981_v36 = vsel %vm3966_vm15, %v3919_v41, -inf  ;;  %v3988_v16 = vsel %vm3966_vm15, %v3920_v50, -inf }
 0x44f   :  { %v3884_v32 = vpop.f32.mrf.mxu2  ;;  %v3975_v3 = vrot.slane %v3974_v27, 4  ;;  %v3982_v46 = vrot.slane %v3981_v36, 4  ;;  %v3969_v2 = vmax.f32 %v3967_v51, %v3968_v34  ;;  %v3989_v11 = vrot.slane %v3988_v16, 4 }
 0x450   :  { %v3885_v56 = vadd.f32 %v7799_v31, %v3884_v32 }
 0x451   :  { %v3976_v59 = vmax.f32 %v3974_v27, %v3975_v3  ;;  %v3983_v21 = vmax.f32 %v3981_v36, %v3982_v46  ;;  %v3970_v43 = vrot.slane %v3969_v2, 2  ;;  %v3990_v35 = vmax.f32 %v3988_v16, %v3989_v11 }
 0x452   :  { %v3903_v33 = vmax.f32 %v3885_v56, 0.0 }
 0x453   :  { %v3977_v62 = vrot.slane %v3976_v59, 2  ;;  %v3984_v9 = vrot.slane %v3983_v21, 2  ;;  %v3971_v52 = vmax.f32 %v3969_v2, %v3970_v43  ;;  %v3991_v53 = vrot.slane %v3990_v35, 2 }
 0x454   :  { %v3921_v1 = vrot.slane %v3903_v33, 2  ;;  %v3995_v26 = vsel %vm3966_vm15, %v3903_v33, -inf  ;;  %v3922_v39 = vrot.slane %v3903_v33, 4  ;;  %v3923_v23 = vrot.slane %v3903_v33, 6 }
 0x455   :  { %v3996_v29 = vrot.slane %v3995_v26, 4  ;;  %v3978_v30 = vmax.f32 %v3976_v59, %v3977_v62  ;;  %v3985_v10 = vmax.f32 %v3983_v21, %v3984_v9  ;;  %v3972_v48 = vrot.slane %v3971_v52, 1 }
 0x456   :  { %v4002_v5 = vsel %vm3966_vm15, %v3921_v1, -inf  ;;  %v4009_v17 = vsel %vm3966_vm15, %v3922_v39, -inf  ;;  %v3992_v63 = vmax.f32 %v3990_v35, %v3991_v53  ;;  %v4016_v58 = vsel %vm3966_vm15, %v3923_v23, -inf }
 0x457   :  { %v4003_v40 = vrot.slane %v4002_v5, 4  ;;  %v3997_v38 = vmax.f32 %v3995_v26, %v3996_v29  ;;  %v4010_v47 = vrot.slane %v4009_v17, 4  ;;  %v3979_v4 = vrot.slane %v3978_v30, 1 }
 0x458   :  { %v3986_v7 = vrot.slane %v3985_v10, 1  ;;  %v3973_v20 = vmax.f32 %v3971_v52, %v3972_v48  ;;  %v3993_v49 = vrot.slane %v3992_v63, 1  ;;  %v4017_v45 = vrot.slane %v4016_v58, 4 }
 0x459   :  { %v4004_v37 = vmax.f32 %v4002_v5, %v4003_v40  ;;  %v3998_v28 = vrot.slane %v3997_v38, 2  ;;  %v4011_v13 = vmax.f32 %v4009_v17, %v4010_v47  ;;  %v3980_v24 = vmax.f32 %v3978_v30, %v3979_v4  ;;  %v4522_v4 = vld [vmem:[%s7967_s7 + $0x8] sm:$0xff] }
 0x45a   :  { %v3987_v57 = vmax.f32 %v3985_v10, %v3986_v7  ;;  %v3994_v19 = vmax.f32 %v3992_v63, %v3993_v49  ;;  %v4191_v42 = vpack.c.bf16 %v3973_v20, %v3973_v20  ;;  %v4018_v15 = vmax.f32 %v4016_v58, %v4017_v45  ;;  %4365 = vmatpush.bf16.msrb.mxu3 %v4522_v4 }
 0x45b   :  { %v4005_v54 = vrot.slane %v4004_v37, 2  ;;  %v3999_v8 = vmax.f32 %v3997_v38, %v3998_v28  ;;  %v4012_v25 = vrot.slane %v4011_v13, 2  ;;  %v4192_v61 = vpack.c.bf16 %v3980_v24, %v3980_v24 }
 0x45c   :  { %v4193_v22 = vpack.c.bf16 %v3987_v57, %v3987_v57  ;;  %v4194_v14 = vpack.c.bf16 %v3994_v19, %v3994_v19  ;;  %v4267_v41 = vunpack.c.l.b16 %v4191_v42  ;;  %v4019_v50 = vrot.slane %v4018_v15, 2 }
 0x45d   :  { %v4006_v0 = vmax.f32 %v4004_v37, %v4005_v54  ;;  %v4000_v60 = vrot.slane %v3999_v8, 1  ;;  %v4013_v55 = vmax.f32 %v4011_v13, %v4012_v25  ;;  %v4268_v56 = vunpack.c.l.b16 %v4192_v61 }
 0x45e   :  { %v7813_v34 = vunpack.c.l.b16 %v4193_v22  ;;  %v7818_v43 = vunpack.c.l.b16 %v4194_v14  ;;  %v7823_v35 = vmax.f32 %v4018_v15, %v4019_v50 }
 0x45f   :  { %v4007_v6 = vrot.slane %v4006_v0, 1  ;;  %v4001_v18 = vmax.f32 %v3999_v8, %v4000_v60  ;;  %v4014_v16 = vrot.slane %v4013_v55, 1  ;;  %v7821_v62 = vsel %vm8524_vm6, %v4268_v56, %v4267_v41  ;;  %vm8536_vm6 = vmmov %vm8529_vm2 }
 0x461   :  { %v4008_v3 = vmax.f32 %v4006_v0, %v4007_v6  ;;  %v4195_v1 = vpack.c.bf16 %v4001_v18, %v4001_v18  ;;  %v7826_v30 = vmax.f32 %v4013_v55, %v4014_v16 }
 0x463   :  { %v4196_v53 = vpack.c.bf16 %v4008_v3, %v4008_v3  ;;  %v7828_v23 = vunpack.c.l.b16 %v4195_v1 }
 0x476   :  { %v3887_v44 = vpop.f32.mrf.mxu2 }
 0x477   :  { %v3888_v12 = vadd.f32 %v7799_v31, %v3887_v44 }
 0x479   :  { %v3904_v32 = vmax.f32 %v3888_v12, 0.0 }
 0x47b   :  { %v3924_v51 = vrot.slane %v3904_v32, 2  ;;  %v3925_v27 = vrot.slane %v3904_v32, 4  ;;  %v3926_v36 = vrot.slane %v3904_v32, 6  ;;  %v4023_v33 = vsel %vm3966_vm15, %v3904_v32, -inf  ;;  %v4521_v32 = vld [vmem:[%s7967_s7] sm:$0xff] }
 0x47c   :  { %v4024_v46 = vrot.slane %v4023_v33, 4  ;;  %4366 = vmatpush.bf16.msrb.mxu3 %v4521_v32 }
 0x47d   :  { %v4030_v2 = vsel %vm3966_vm15, %v3924_v51, -inf  ;;  %v4037_v59 = vsel %vm3966_vm15, %v3925_v27, -inf  ;;  %v4044_v11 = vsel %vm3966_vm15, %v3926_v36, -inf  ;;  %v7840_v51 = vunpack.c.l.b16 %v4196_v53 }
 0x47e   :  { %v4025_v26 = vmax.f32 %v4023_v33, %v4024_v46  ;;  %v4031_v21 = vrot.slane %v4030_v2, 4  ;;  %v4038_v39 = vrot.slane %v4037_v59, 4  ;;  %v4045_v29 = vrot.slane %v4044_v11, 4  ;;  %v3889_v5 = vpop.f32.mrf.mxu2 }
 0x47f   :  { %v3890_v9 = vadd.f32 %v7799_v31, %v3889_v5 }
 0x480   :  { %v4026_v40 = vrot.slane %v4025_v26, 2  ;;  %v4032_v38 = vmax.f32 %v4030_v2, %v4031_v21  ;;  %v4039_v17 = vmax.f32 %v4037_v59, %v4038_v39  ;;  %v4046_v52 = vmax.f32 %v4044_v11, %v4045_v29 }
 0x481   :  { %v3905_v10 = vmax.f32 %v3890_v9, 0.0 }
 0x482   :  { %v4027_v37 = vmax.f32 %v4025_v26, %v4026_v40  ;;  %v4033_v47 = vrot.slane %v4032_v38, 2  ;;  %v4040_v28 = vrot.slane %v4039_v17, 2  ;;  %v4047_v48 = vrot.slane %v4046_v52, 2 }
 0x483   :  { %v3927_v63 = vrot.slane %v3905_v10, 2  ;;  %v3928_v58 = vrot.slane %v3905_v10, 4  ;;  %v3929_v7 = vrot.slane %v3905_v10, 6  ;;  %v4051_v54 = vsel %vm3966_vm15, %v3905_v10, -inf }
 0x484   :  { %v4028_v13 = vrot.slane %v4027_v37, 1  ;;  %v4034_v8 = vmax.f32 %v4032_v38, %v4033_v47  ;;  %v4041_v20 = vmax.f32 %v4039_v17, %v4040_v28  ;;  %v4048_v24 = vmax.f32 %v4046_v52, %v4047_v48 }
 0x485   :  { %v4052_v49 = vrot.slane %v4051_v54, 4  ;;  %v4058_v45 = vsel %vm3966_vm15, %v3927_v63, -inf  ;;  %v4065_v57 = vsel %vm3966_vm15, %v3928_v58, -inf  ;;  %v4072_v0 = vsel %vm3966_vm15, %v3929_v7, -inf }
 0x486   :  { %v4029_v25 = vmax.f32 %v4027_v37, %v4028_v13  ;;  %v4035_v60 = vrot.slane %v4034_v8, 1  ;;  %v4042_v19 = vrot.slane %v4041_v20, 1  ;;  %v4049_v42 = vrot.slane %v4048_v24, 1 }
 0x487   :  { %v4053_v61 = vmax.f32 %v4051_v54, %v4052_v49  ;;  %v4059_v15 = vrot.slane %v4058_v45, 4  ;;  %v4066_v44 = vrot.slane %v4065_v57, 4  ;;  %v4073_v12 = vrot.slane %v4072_v0, 4 }
 0x488   :  { %v4036_v22 = vmax.f32 %v4034_v8, %v4035_v60  ;;  %v4043_v6 = vmax.f32 %v4041_v20, %v4042_v19  ;;  %v4050_v55 = vmax.f32 %v4048_v24, %v4049_v42  ;;  %v4199_v18 = vpack.c.bf16 %v4029_v25, %v4029_v25 }
 0x489   :  { %v4054_v14 = vrot.slane %v4053_v61, 2  ;;  %v4060_v41 = vmax.f32 %v4058_v45, %v4059_v15  ;;  %v4067_v56 = vmax.f32 %v4065_v57, %v4066_v44  ;;  %v4074_v50 = vmax.f32 %v4072_v0, %v4073_v12 }
 0x48a   :  { %v4200_v27 = vpack.c.bf16 %v4036_v22, %v4036_v22  ;;  %v4201_v36 = vpack.c.bf16 %v4043_v6, %v4043_v6  ;;  %v4202_v33 = vpack.c.bf16 %v4050_v55, %v4050_v55  ;;  %v4275_v59 = vunpack.c.l.b16 %v4199_v18 }
 0x48b   :  { %v4055_v3 = vmax.f32 %v4053_v61, %v4054_v14  ;;  %v4061_v16 = vrot.slane %v4060_v41, 2  ;;  %v4068_v46 = vrot.slane %v4067_v56, 2  ;;  %v4075_v1 = vrot.slane %v4074_v50, 2  ;;  %v3892_v2 = vpop.f32.mrf.mxu2 }
 0x48c   :  { %v4276_v11 = vunpack.c.l.b16 %v4200_v27  ;;  %v7842_v26 = vunpack.c.l.b16 %v4201_v36  ;;  %v3893_v21 = vadd.f32 %v7799_v31, %v3892_v2  ;;  %v7845_v40 = vunpack.c.l.b16 %v4202_v33 }
 0x48d   :  { %v4056_v39 = vrot.slane %v4055_v3, 1  ;;  %v4062_v29 = vmax.f32 %v4060_v41, %v4061_v16  ;;  %v4069_v5 = vmax.f32 %v4067_v56, %v4068_v46  ;;  %v4076_v9 = vmax.f32 %v4074_v50, %v4075_v1 }
 0x48e   :  { %v7848_v38 = vsel %vm8525_vm12, %v4276_v11, %v4275_v59  ;;  %v3906_v17 = vmax.f32 %v3893_v21, 0.0  ;;  %v4021_v52 = vrot.slane %v7823_v35, 1  ;;  %v4197_v13 = vpack.c.bf16 %v7826_v30, %v7826_v30 }
 0x48f   :  { %v4057_v53 = vmax.f32 %v4055_v3, %v4056_v39  ;;  %v4063_v10 = vrot.slane %v4062_v29, 1  ;;  %v4070_v37 = vrot.slane %v4069_v5, 1  ;;  %v4077_v47 = vrot.slane %v4076_v9, 1 }
 0x490   :  { %v3930_v28 = vrot.slane %v3906_v17, 2  ;;  %v3931_v48 = vrot.slane %v3906_v17, 4  ;;  %v3932_v4 = vrot.slane %v3906_v17, 6  ;;  %v4079_v63 = vsel %vm3966_vm15, %v3906_v17, -inf }
 0x491   :  { %v4064_v58 = vmax.f32 %v4062_v29, %v4063_v10  ;;  %v4203_v7 = vpack.c.bf16 %v4057_v53, %v4057_v53  ;;  %v4080_v54 = vrot.slane %v4079_v63, 4  ;;  %v7858_v49 = vmax.f32 %v7823_v35, %v4021_v52 }
 0x492   :  { %v4086_v8 = vsel %vm3966_vm15, %v3930_v28, -inf  ;;  %v4093_v20 = vsel %vm3966_vm15, %v3931_v48, -inf  ;;  %v4100_v24 = vsel %vm3966_vm15, %v3932_v4, -inf  ;;  %v7860_v45 = vmax.f32 %v4069_v5, %v4070_v37 }
 0x493   :  { %v4204_v57 = vpack.c.bf16 %v4064_v58, %v4064_v58  ;;  %v4081_v0 = vmax.f32 %v4079_v63, %v4080_v54  ;;  %v4087_v25 = vrot.slane %v4086_v8, 4  ;;  %v3894_v60 = vpop.f32.mrf.mxu2  ;;  %v4094_v19 = vrot.slane %v4093_v20, 4 }
 0x494   :  { %v4101_v42 = vrot.slane %v4100_v24, 4  ;;  %v3895_v61 = vadd.f32 %v7799_v31, %v3894_v60  ;;  %v7863_v30 = vmax.f32 %v4076_v9, %v4077_v47  ;;  %v7865_v15 = vunpack.c.l.b16 %v4203_v7 }
 0x495   :  { %v7867_v44 = vunpack.c.l.b16 %v4204_v57  ;;  %v4082_v12 = vrot.slane %v4081_v0, 2  ;;  %v4088_v22 = vmax.f32 %v4086_v8, %v4087_v25  ;;  %v4095_v35 = vmax.f32 %v4093_v20, %v4094_v19 }
 0x496   :  { %v4102_v6 = vmax.f32 %v4100_v24, %v4101_v42  ;;  %v3907_v55 = vmax.f32 %v3895_v61, 0.0  ;;  %v4198_v18 = vpack.c.bf16 %v7858_v49, %v7858_v49  ;;  %v4205_v41 = vpack.c.bf16 %v7860_v45, %v7860_v45 }
 0x497   :  { %v4083_v32 = vmax.f32 %v4081_v0, %v4082_v12  ;;  %v4089_v14 = vrot.slane %v4088_v22, 2  ;;  %v4206_v56 = vpack.c.bf16 %v7863_v30, %v7863_v30  ;;  %v4096_v50 = vrot.slane %v4095_v35, 2 }
 0x498   :  { %v4103_v27 = vrot.slane %v4102_v6, 2  ;;  %v3933_v36 = vrot.slane %v3907_v55, 2  ;;  %v3934_v33 = vrot.slane %v3907_v55, 4  ;;  %v3935_v46 = vrot.slane %v3907_v55, 6 }
 0x499   :  { %v4084_v3 = vrot.slane %v4083_v32, 1  ;;  %v4090_v16 = vmax.f32 %v4088_v22, %v4089_v14  ;;  %v4107_v1 = vsel %vm3966_vm15, %v3907_v55, -inf  ;;  %v4097_v2 = vmax.f32 %v4095_v35, %v4096_v50 }
 0x49a   :  { %v4104_v59 = vmax.f32 %v4102_v6, %v4103_v27  ;;  %v4108_v11 = vrot.slane %v4107_v1, 4  ;;  %v4114_v21 = vsel %vm3966_vm15, %v3933_v36, -inf  ;;  %v4121_v9 = vsel %vm3966_vm15, %v3934_v33, -inf }
 0x49b   :  { %v4085_v39 = vmax.f32 %v4083_v32, %v4084_v3  ;;  %v4091_v29 = vrot.slane %v4090_v16, 1  ;;  %v4115_v5 = vrot.slane %v4114_v21, 4  ;;  %v4098_v17 = vrot.slane %v4097_v2, 1 }
 0x49c   :  { %v4105_v52 = vrot.slane %v4104_v59, 1  ;;  %v4109_v53 = vmax.f32 %v4107_v1, %v4108_v11  ;;  %v4122_v10 = vrot.slane %v4121_v9, 4  ;;  %v4128_v48 = vsel %vm3966_vm15, %v3935_v46, -inf }
 0x49d   :  { %v4092_v37 = vmax.f32 %v4090_v16, %v4091_v29  ;;  %v4207_v47 = vpack.c.bf16 %v4085_v39, %v4085_v39  ;;  %v4116_v28 = vmax.f32 %v4114_v21, %v4115_v5  ;;  %v4099_v4 = vmax.f32 %v4097_v2, %v4098_v17 }
 0x49e   :  { %v4106_v63 = vmax.f32 %v4104_v59, %v4105_v52  ;;  %v4110_v58 = vrot.slane %v4109_v53, 2  ;;  %v4123_v7 = vmax.f32 %v4121_v9, %v4122_v10  ;;  %v4129_v20 = vrot.slane %v4128_v48, 4 }
 0x49f   :  { %v4208_v54 = vpack.c.bf16 %v4092_v37, %v4092_v37  ;;  %v4117_v8 = vrot.slane %v4116_v28, 2  ;;  %v4273_v24 = vunpack.c.l.b16 %v4197_v13  ;;  %v3897_v49 = vpop.f32.mrf.mxu2  ;;  %v4209_v45 = vpack.c.bf16 %v4099_v4, %v4099_v4 }
 0x4a0   :  { %v4210_v57 = vpack.c.bf16 %v4106_v63, %v4106_v63  ;;  %v4111_v0 = vmax.f32 %v4109_v53, %v4110_v58  ;;  %v4124_v25 = vrot.slane %v4123_v7, 2  ;;  %v7879_v60 = vunpack.c.l.b16 %v4207_v47 }
 0x4a1   :  { %v7881_v19 = vunpack.c.l.b16 %v4208_v54  ;;  %v4118_v42 = vmax.f32 %v4116_v28, %v4117_v8  ;;  %v4130_v61 = vmax.f32 %v4128_v48, %v4129_v20  ;;  %v7883_v30 = vunpack.c.l.b16 %v4209_v45 }
 0x4a2   :  { %v4112_v12 = vrot.slane %v4111_v0, 1  ;;  %v4125_v22 = vmax.f32 %v4123_v7, %v4124_v25  ;;  %v4274_v35 = vunpack.c.l.b16 %v4198_v18  ;;  %v7885_v6 = vunpack.c.l.b16 %v4210_v57 }
 0x4a3   :  { %v4119_v55 = vrot.slane %v4118_v42, 1  ;;  %v4131_v13 = vrot.slane %v4130_v61, 2  ;;  %v4281_v32 = vunpack.c.l.b16 %v4205_v41  ;;  %v4300_v50 = vsel %vm2367_vm5, %v7813_v34, %v7821_v62 }
 0x4a4   :  { %v4113_v14 = vmax.f32 %v4111_v0, %v4112_v12  ;;  %v4307_v27 = vsel %vm2367_vm5, %v7842_v26, %v7848_v38  ;;  %v3898_v36 = vadd.f32 %v7799_v31, %v3897_v49  ;;  %v4282_v33 = vunpack.c.l.b16 %v4206_v56 }
 0x4a5   :  { %v4301_v18 = vsel %vm2369_vm8, %v7818_v43, %v4300_v50  ;;  %v4308_v3 = vsel %vm2369_vm8, %v7845_v40, %v4307_v27  ;;  %v4126_v16 = vrot.slane %v4125_v22, 1  ;;  %v7902_v46 = vmax.f32 %v4118_v42, %v4119_v55 }
 0x4a6   :  { %v4302_v41 = vsel %vm2371_vm9, %v7828_v23, %v4301_v18  ;;  %v4309_v34 = vsel %vm2371_vm9, %v7865_v15, %v4308_v3  ;;  %v3908_v62 = vmax.f32 %v3898_v36, 0.0  ;;  %v4211_v26 = vpack.c.bf16 %v4113_v14, %v4113_v14 }
 0x4a7   :  { %v4303_v38 = vsel %vm2373_vm10, %v7840_v51, %v4302_v41  ;;  %v4310_v43 = vsel %vm2373_vm10, %v7867_v44, %v4309_v34  ;;  %v3899_v56 = vpop.f32.mrf.mxu2  ;;  %v7908_v1 = vmax.f32 %v4125_v22, %v4126_v16  ;;  %v7912_v59 = vmax.f32 %v4130_v61, %v4131_v13 }
 0x4a8   :  { %v4304_v40 = vsel %vm8526_vm0, %v4273_v24, %v4303_v38  ;;  %v4311_v23 = vsel %vm8527_vm13, %v4281_v32, %v4310_v43  ;;  %v3936_v2 = vrot.slane %v3908_v62, 2  ;;  %v3937_v21 = vrot.slane %v3908_v62, 4 }
 0x4a9   :  { %v4305_v15 = vsel %vm8528_vm7, %v4274_v35, %v4304_v40  ;;  %v4312_v11 = vsel %vm8529_vm2, %v4282_v33, %v4311_v23  ;;  %v3938_v39 = vrot.slane %v3908_v62, 6  ;;  %v4135_v29 = vsel %vm3966_vm15, %v3908_v62, -inf }
 0x4aa   :  { %v4327_v51 = vpack.c.b16 %v4312_v11, %v4305_v15  ;;  %v4142_v44 = vsel %vm3966_vm15, %v3936_v2, -inf  ;;  %v3900_v5 = vadd.f32 %v7799_v31, %v3899_v56  ;;  %v4136_v9 = vrot.slane %v4135_v29, 4 }
 0x4ab   :  { %v4143_v17 = vrot.slane %v4142_v44, 4  ;;  %v4149_v52 = vsel %vm3966_vm15, %v3937_v21, -inf  ;;  %v4156_v53 = vsel %vm3966_vm15, %v3938_v39, -inf  ;;  %v7921_v10 = vunpack.c.l.b16 %v4211_v26 }
 0x4ac   :  { %4504 = vmatmul.msk.bf16.vlgmr.msrb.gmra.mxu3 %vm8530_vm1, %v4327_v51  ;;  %v4150_v37 = vrot.slane %v4149_v52, 4  ;;  %v4157_v47 = vrot.slane %v4156_v53, 4  ;;  %v3909_v28 = vmax.f32 %v3900_v5, 0.0  ;;  %v4137_v48 = vmax.f32 %v4135_v29, %v4136_v9 }
 0x4ad   :  { %v4144_v4 = vmax.f32 %v4142_v44, %v4143_v17  ;;  %v4133_v63 = vrot.slane %v7912_v59, 1  ;;  %v4212_v31 = vpack.c.bf16 %v7902_v46, %v7902_v46  ;;  %v4213_v17 = vpack.c.bf16 %v7908_v1, %v7908_v1 }
 0x4ae   :  { %v4151_v58 = vmax.f32 %v4149_v52, %v4150_v37  ;;  %v4158_v7 = vmax.f32 %v4156_v53, %v4157_v47  ;;  %v3939_v54 = vrot.slane %v3909_v28, 2  ;;  %v3940_v8 = vrot.slane %v3909_v28, 4 }
 0x4af   :  { %v4138_v20 = vrot.slane %v4137_v48, 2  ;;  %v4145_v24 = vrot.slane %v4144_v4, 2  ;;  %v3941_v49 = vrot.slane %v3909_v28, 6  ;;  %v4163_v45 = vsel %vm3966_vm15, %v3909_v28, -inf }
 0x4b0   :  { %v4152_v57 = vrot.slane %v4151_v58, 2  ;;  %v4159_v0 = vrot.slane %v4158_v7, 2  ;;  %v4164_v25 = vrot.slane %v4163_v45, 4  ;;  %v4170_v42 = vsel %vm3966_vm15, %v3939_v54, -inf }
 0x4b1   :  { %v4139_v61 = vmax.f32 %v4137_v48, %v4138_v20  ;;  %v4146_v12 = vmax.f32 %v4144_v4, %v4145_v24  ;;  %v4171_v22 = vrot.slane %v4170_v42, 4  ;;  %v4177_v35 = vsel %vm3966_vm15, %v3940_v8, -inf }
 0x4b2   :  { %v4153_v55 = vmax.f32 %v4151_v58, %v4152_v57  ;;  %v4160_v13 = vmax.f32 %v4158_v7, %v4159_v0  ;;  %v4165_v32 = vmax.f32 %v4163_v45, %v4164_v25  ;;  %v4178_v14 = vrot.slane %v4177_v35, 4 }
 0x4b3   :  { %v4140_v50 = vrot.slane %v4139_v61, 1  ;;  %v4147_v27 = vrot.slane %v4146_v12, 1  ;;  %v4172_v36 = vmax.f32 %v4170_v42, %v4171_v22  ;;  %v4184_v33 = vsel %vm3966_vm15, %v3941_v49, -inf  ;;  %vm8535_vm15 = vmmov %vm8529_vm2 }
 0x4b4   :  { %v4154_v18 = vrot.slane %v4153_v55, 1  ;;  %v4161_v3 = vrot.slane %v4160_v13, 1  ;;  %v4166_v16 = vrot.slane %v4165_v32, 2  ;;  %v4179_v41 = vmax.f32 %v4177_v35, %v4178_v14 }
 0x4b5   :  { %v4141_v34 = vmax.f32 %v4139_v61, %v4140_v50  ;;  %v4148_v62 = vmax.f32 %v4146_v12, %v4147_v27  ;;  %v4173_v46 = vrot.slane %v4172_v36, 2  ;;  %v4185_v26 = vrot.slane %v4184_v33, 4 }
 0x4b6   :  { %v4155_v38 = vmax.f32 %v4153_v55, %v4154_v18  ;;  %v4162_v43 = vmax.f32 %v4160_v13, %v4161_v3  ;;  %v4167_v56 = vmax.f32 %v4165_v32, %v4166_v16  ;;  %v4180_v40 = vrot.slane %v4179_v41, 2 }
 0x4b7   :  { %v4215_v23 = vpack.c.bf16 %v4141_v34, %v4141_v34  ;;  %v4216_v2 = vpack.c.bf16 %v4148_v62, %v4148_v62  ;;  %v4174_v15 = vmax.f32 %v4172_v36, %v4173_v46  ;;  %v4186_v11 = vmax.f32 %v4184_v33, %v4185_v26  ;;  %v4826_v36 = vld [vmem:[%s7968_s8] ss:$0 sm:$0xff]  ;;  %s4860_s8 = smov 128  }
 0x4b8   :  { %v4217_v21 = vpack.c.bf16 %v4155_v38, %v4155_v38  ;;  %v4218_v39 = vpack.c.bf16 %v4162_v43, %v4162_v43  ;;  %v4168_v51 = vrot.slane %v4167_v56, 1  ;;  %v4181_v29 = vmax.f32 %v4179_v41, %v4180_v40 }
 0x4b9   :  { %v4291_v44 = vunpack.c.l.b16 %v4215_v23  ;;  %v4175_v5 = vrot.slane %v4174_v15, 1  ;;  %v4187_v9 = vrot.slane %v4186_v11, 2  ;;  %v4292_v52 = vunpack.c.l.b16 %v4216_v2 }
 0x4ba   :  { %v4293_v53 = vunpack.c.l.b16 %v4217_v21  ;;  %v4169_v37 = vmax.f32 %v4167_v56, %v4168_v51  ;;  %v4134_v47 = vmax.f32 %v7912_v59, %v4133_v63  ;;  %v4294_v28 = vunpack.c.l.b16 %v4218_v39 }
 0x4bb   :  { %v4176_v48 = vmax.f32 %v4174_v15, %v4175_v5  ;;  %v4182_v4 = vrot.slane %v4181_v29, 1  ;;  %v4188_v58 = vmax.f32 %v4186_v11, %v4187_v9  ;;  %v4288_v8 = vunpack.c.l.b16 %v4212_v31 }
 0x4bc   :  { %v4219_v7 = vpack.c.bf16 %v4169_v37, %v4169_v37  ;;  %v4214_v54 = vpack.c.bf16 %v4134_v47, %v4134_v47  ;;  %v4313_v20 = vsel %vm8531_vm11, %v7881_v19, %v7879_v60  ;;  %v4289_v0 = vunpack.c.l.b16 %v4213_v17 }
 0x4bd   :  { %v4183_v24 = vmax.f32 %v4181_v29, %v4182_v4  ;;  %v4189_v49 = vrot.slane %v4188_v58, 1  ;;  %v4220_v45 = vpack.c.bf16 %v4176_v48, %v4176_v48  ;;  %v4314_v1 = vsel %vm2367_vm5, %v7883_v30, %v4313_v20 }
 0x4be   :  { %v4295_v57 = vunpack.c.l.b16 %v4219_v7  ;;  %v4315_v59 = vsel %vm2369_vm8, %v7885_v6, %v4314_v1  ;;  %v4320_v63 = vsel %vm8532_vm3, %v4292_v52, %v4291_v44  ;;  %v4290_v55 = vunpack.c.l.b16 %v4214_v54 }
 0x4bf   :  { %v4190_v25 = vmax.f32 %v4188_v58, %v4189_v49  ;;  %v4221_v42 = vpack.c.bf16 %v4183_v24, %v4183_v24  ;;  %v4296_v31 = vunpack.c.l.b16 %v4220_v45  ;;  %v4316_v61 = vsel %vm2371_vm9, %v7921_v10, %v4315_v59 }
 0x4c0   :  { %v4317_v60 = vsel %vm2373_vm10, %v4288_v8, %v4316_v61  ;;  %v4321_v19 = vsel %vm2367_vm5, %v4293_v53, %v4320_v63  ;;  %vm8537_vm5 = vmmov %vm8530_vm1 }
 0x4c1   :  { %v4222_v12 = vpack.c.bf16 %v4190_v25, %v4190_v25  ;;  %v4297_v22 = vunpack.c.l.b16 %v4221_v42  ;;  %v4322_v30 = vsel %vm2369_vm8, %v4294_v28, %v4321_v19  ;;  %v4318_v35 = vsel %vm8533_vm4, %v4289_v0, %v4317_v60 }
 0x4c2   :  { %v4323_v6 = vsel %vm2371_vm9, %v4295_v57, %v4322_v30  ;;  %v4319_v10 = vsel %vm8535_vm15, %v4290_v55, %v4318_v35 }
 0x4c3   :  { %v4298_v13 = vunpack.c.l.b16 %v4222_v12  ;;  %v4324_v32 = vsel %vm2373_vm10, %v4296_v31, %v4323_v6 }
 0x4c4   :  { %v4325_v14 = vsel %vm8534_vm14, %v4297_v22, %v4324_v32 }
 0x4c5   :  { %v4326_v50 = vsel %vm8536_vm6, %v4298_v13, %v4325_v14 }
 0x4c6   :  { %v4328_v27 = vpack.c.b16 %v4326_v50, %v4319_v10 }
 0x4c8   :  { %4505 = vmatmul.msk.bf16.gmra.mxu3 %vm8537_vm5, %v4328_v27 }
 0x52f   :  { %v4368_v33 = vpop.f32.mrf.mxu3 }
 0x530   :  { %v4369_v18 = vadd.f32 %v4826_v36, %v4368_v33 }
 0x532   :  { %4378 = vst [vmem:[#allocation2] sm:$0xff] %v4369_v18 }
 0x537   :  { %v4370_v3 = vpop.f32.mrf.mxu3 }
 0x538   :  { %v4371_v16 = vadd.f32 %v4826_v36, %v4370_v3 }
 0x53a   :  { %4379 = vst [vmem:[#allocation2 + $0x8] sm:$0xff] %v4371_v16 }
 0x54b   :  { %v4373_v41 = vpop.f32.mrf.mxu3 }
 0x54c   :  { %v4374_v34 = vadd.f32 %v4826_v36, %v4373_v41 }
 0x54e   :  { %4380 = vst [vmem:[#allocation2 + $0x10] sm:$0xff] %v4374_v34 }
 0x553   :  { %v4375_v62 = vpop.f32.mrf.mxu3 }
 0x554   :  { %v4376_v46 = vadd.f32 %v4826_v36, %v4375_v62 }
 0x556   :  { %4381 = vst [vmem:[#allocation2 + $0x18] sm:$0xff] %v4376_v46 }
 0x557   :  { %4394 = dma.vmem_to_hbm [thread:$0]  %s4387_s3, 512, %s4389_s22, [#allocation3], %s4860_s8, %s4860_s8, %s4861_s0  }
 0x558   :  { %4854 = dma.done.wait [#allocation3], 512  }
 0x559   :  { %4855 = vsyncadd [#allocation3], 4294966784 }
 0x55a   :  { %4399 = vsyncpa [#allocation3], 1 }

</bundles_post_ra>
